<compile_context>
chip_gen: v6e
topology: v6e:2x2x1
jax: 0.10.0
libtpu: 0.0.40
codegen_flags: <defaults>
</compile_context>

<pallas_src>
import functools

import jax
import jax.numpy as jnp
import numpy as np
from jax import lax
from jax.experimental import pallas as pl
from jax.experimental.pallas import tpu as pltpu


# ----------------------------------------------------------------------------
# Fused kernel: one batch element per grid step, everything stays in VMEM.
# ----------------------------------------------------------------------------
def _fused_kernel(x_ref, wt_ref, st_ref, bt_ref, w1_ref, s1_ref, b1_ref,
                  w2_ref, b2_ref, aupT_ref, o_ref, *, H, W, Cin, F, C, heads):
    f32 = jnp.float32
    bf16 = jnp.bfloat16

    def pad_hw(v):
        # (h, w, c) -> (h+2, w+2, c), zero border (in-VMEM, no HBM round trip)
        h, w, c = v.shape
        zr = jnp.zeros((1, w, c), v.dtype)
        v = jnp.concatenate([zr, v, zr], axis=0)
        zc = jnp.zeros((h + 2, 1, c), v.dtype)
        return jnp.concatenate([zc, v, zc], axis=1)

    def im2col3x3(v):
        # v: (h+2, w+2, c) -> (h*w, 9*c), tap order (dy, dx, c) to match weight reshape
        h = v.shape[0] - 2
        w = v.shape[1] - 2
        c = v.shape[2]
        taps = [v[dy:dy + h, dx:dx + w, :] for dy in range(3) for dx in range(3)]
        return jnp.concatenate(taps, axis=-1).reshape(h * w, 9 * c)

    # ---- transfer: Conv2d(Cin, F, 3, pad=1) + BN + ReLU -----------------------
    px = im2col3x3(pad_hw(x_ref[0]))                                 # (H*W, 9*Cin) bf16
    t = jnp.dot(px, wt_ref[...], preferred_element_type=f32)        # (H*W, F) f32
    t = jnp.maximum(t * st_ref[...] + bt_ref[...], 0.0)

    # ---- both heads' Conv2d(F, F, 3, pad=1, bias=False) + BN + ReLU -----------
    # Computed transposed (channel rows, spatial lanes) so the epilogue and the
    # downstream 1x1 / upsample matmuls are lane-dense.
    pt = im2col3x3(pad_hw(t.astype(bf16).reshape(H, W, F)))          # (H*W, 9*F) bf16
    hT = lax.dot_general(w1_ref[...], pt,                            # (heads*F, H*W) f32
                         (((1,), (1,)), ((), ())),
                         preferred_element_type=f32)
    hT = jnp.maximum(hT * s1_ref[...] + b1_ref[...], 0.0).astype(bf16)

    # ---- per head: Dropout(identity) + Conv2d(F, C, 1) + bilinear x2 ----------
    for hd in range(heads):
        hh = hT[hd * F:(hd + 1) * F, :]                              # (F, H*W) bf16
        zT = jnp.dot(w2_ref[hd], hh, preferred_element_type=f32)     # (C, H*W) f32
        zT = zT + b2_ref[hd]                                         # bias (C, 1)
        outT = jnp.dot(zT, aupT_ref[...],                            # (C, 4*H*W) f32
                       preferred_element_type=f32)
        o_ref[0, hd] = outT.astype(o_ref.dtype)                      # lane width 4*H*W


def transfer_net_fused(x_nhwc, kp, *, H, W, Cin, F, C, heads):
    N = x_nhwc.shape[0]
    HW = H * W
    kernel = functools.partial(_fused_kernel, H=H, W=W, Cin=Cin, F=F, C=C,
                               heads=heads)
    return pl.pallas_call(
        kernel,
        out_shape=jax.ShapeDtypeStruct((N, heads, C, 4 * HW), jnp.float32),
        grid=(N,),
        in_specs=[
            pl.BlockSpec((1, H, W, Cin), lambda n: (n, 0, 0, 0)),
            pl.BlockSpec((9 * Cin, F), lambda n: (0, 0)),
            pl.BlockSpec((1, F), lambda n: (0, 0)),
            pl.BlockSpec((1, F), lambda n: (0, 0)),
            pl.BlockSpec((heads * F, 9 * F), lambda n: (0, 0)),
            pl.BlockSpec((heads * F, 1), lambda n: (0, 0)),
            pl.BlockSpec((heads * F, 1), lambda n: (0, 0)),
            pl.BlockSpec((heads, C, F), lambda n: (0, 0, 0)),
            pl.BlockSpec((heads, C, 1), lambda n: (0, 0, 0)),
            pl.BlockSpec((HW, 4 * HW), lambda n: (0, 0)),
        ],
        out_specs=pl.BlockSpec((1, heads, C, 4 * HW), lambda n: (n, 0, 0, 0)),
        compiler_params=pltpu.CompilerParams(dimension_semantics=("parallel",)),
    )(x_nhwc, kp["wt"], kp["st"], kp["bt"], kp["w1T"], kp["s1"], kp["b1"],
      kp["w2T"], kp["b2"], kp["aupT"])


# ----------------------------------------------------------------------------
# Glue: parameter init, BN folding, bilinear matrix, kernel-ready param packing.
# ----------------------------------------------------------------------------
def bilinear_matrix(n_in, n_out):
    """Row i maps input samples to output sample i (align_corners=True)."""
    i = np.arange(n_out, dtype=np.float64)
    src = i * (n_in - 1) / (n_out - 1)
    lo = np.floor(src).astype(np.int64)
    hi = np.minimum(lo + 1, n_in - 1)
    w_hi = src - lo
    w_lo = 1.0 - w_hi
    A = np.zeros((n_out, n_in), np.float64)
    A[np.arange(n_out), lo] += w_lo
    A[np.arange(n_out), hi] += w_hi
    return A.astype(np.float32)


def fold_bn(conv_bias, gamma, beta, mean, var, eps=1e-5):
    scale = gamma / jnp.sqrt(var + eps)
    bias = (conv_bias - mean) * scale + beta
    return scale, bias


def init_params(key, in_channels, features, num_classes, output_task_list):
    ks = iter(jax.random.split(key, 64))
    p = {}
    p["transfer_w"] = 0.1 * jax.random.normal(next(ks), (3, 3, in_channels, features), jnp.float32)
    tb = 0.1 * jax.random.normal(next(ks), (features,), jnp.float32)
    g = 1.0 + 0.1 * jax.random.normal(next(ks), (features,), jnp.float32)
    b = 0.1 * jax.random.normal(next(ks), (features,), jnp.float32)
    m = 0.05 * jax.random.normal(next(ks), (features,), jnp.float32)
    v = 1.0 + jnp.abs(0.1 * jax.random.normal(next(ks), (features,), jnp.float32))
    p["transfer_scale"], p["transfer_bias"] = fold_bn(tb, g, b, m, v)
    for it in output_task_list:
        w1 = 0.1 * jax.random.normal(next(ks), (3, 3, features, features), jnp.float32)
        g = 1.0 + 0.1 * jax.random.normal(next(ks), (features,), jnp.float32)
        b = 0.1 * jax.random.normal(next(ks), (features,), jnp.float32)
        m = 0.05 * jax.random.normal(next(ks), (features,), jnp.float32)
        v = 1.0 + jnp.abs(0.1 * jax.random.normal(next(ks), (features,), jnp.float32))
        s1, b1 = fold_bn(jnp.zeros((features,), jnp.float32), g, b, m, v)  # conv bias=False
        w2 = 0.1 * jax.random.normal(next(ks), (features, num_classes), jnp.float32)
        b2 = 0.1 * jax.random.normal(next(ks), (num_classes,), jnp.float32)
        p["out_%s" % it] = dict(w1=w1, s1=s1, b1=b1, w2=w2, b2=b2)
    return p


def prepare_kernel_params(params, output_task_list, H, W):
    F = params["transfer_w"].shape[-1]
    Cin = params["transfer_w"].shape[2]
    heads = len(output_task_list)
    C = params["out_%s" % output_task_list[0]]["w2"].shape[-1]
    kp = {}
    kp["wt"] = params["transfer_w"].reshape(9 * Cin, F).astype(jnp.bfloat16)
    kp["st"] = params["transfer_scale"].reshape(1, F).astype(jnp.float32)
    kp["bt"] = params["transfer_bias"].reshape(1, F).astype(jnp.float32)
    w1_cat = jnp.concatenate([params["out_%s" % it]["w1"] for it in output_task_list],
                             axis=-1)                                # (3,3,F,heads*F)
    kp["w1T"] = jnp.transpose(w1_cat, (3, 0, 1, 2)).reshape(heads * F, 9 * F).astype(jnp.bfloat16)
    kp["s1"] = jnp.concatenate([params["out_%s" % it]["s1"] for it in output_task_list]
                               ).reshape(heads * F, 1).astype(jnp.float32)
    kp["b1"] = jnp.concatenate([params["out_%s" % it]["b1"] for it in output_task_list]
                               ).reshape(heads * F, 1).astype(jnp.float32)
    kp["w2T"] = jnp.stack([params["out_%s" % it]["w2"].T for it in output_task_list]
                          ).astype(jnp.bfloat16)                     # (heads, C, F)
    kp["b2"] = jnp.stack([params["out_%s" % it]["b2"] for it in output_task_list]
                         ).reshape(heads, C, 1).astype(jnp.float32)
    Ah = bilinear_matrix(H, 2 * H)
    Aw = bilinear_matrix(W, 2 * W)
    kp["aupT"] = jnp.asarray(np.kron(Ah, Aw).T)                      # (H*W, 4*H*W) f32
    return kp


def transfer_net_forward(x_list, kp, output_task_list):
    # x_list: list of NCHW arrays (PyTorch convention)
    cat_x = jnp.concatenate(x_list, axis=1) if len(x_list) > 1 else x_list[0]
    N, Cin, H, W = cat_x.shape
    x = jnp.transpose(cat_x, (0, 2, 3, 1)).astype(jnp.bfloat16)      # NCHW -> NHWC
    heads = len(output_task_list)
    F = kp["wt"].shape[-1]
    C = kp["w2T"].shape[1]
    out = transfer_net_fused(x, kp, H=H, W=W, Cin=Cin, F=F, C=C, heads=heads)
    # (N, heads, C, 4*H*W) -> list of NCHW (N, C, 2H, 2W); reshape only, no transpose.
    return [out[:, i].reshape(N, C, 2 * H, 2 * W) for i in range(heads)]


# Pure-JAX f32 reference (for correctness check of the Pallas kernel).
def ref_forward(x_list, params, output_task_list, Ah, Aw):
    cat_x = jnp.concatenate(x_list, axis=1) if len(x_list) > 1 else x_list[0]
    x = jnp.transpose(cat_x, (0, 2, 3, 1))

    def conv3(xx, w, s, b):
        y = lax.conv_general_dilated(xx, w, (1, 1), "SAME",
                                     dimension_numbers=("NHWC", "HWIO", "NHWC"))
        return jnp.maximum(y * s + b, 0.0)

    t = conv3(x, params["transfer_w"], params["transfer_scale"], params["transfer_bias"])
    outs = []
    for it in output_task_list:
        pp = params["out_%s" % it]
        h = conv3(t, pp["w1"], pp["s1"], pp["b1"])
        z = jnp.einsum("nhwf,fc->nhwc", h, pp["w2"]) + pp["b2"]
        u = jnp.einsum("ph,nhwc->npwc", Ah, z)
        u = jnp.einsum("qw,npwc->npqc", Aw, u)
        outs.append(jnp.transpose(u, (0, 3, 1, 2)))
    return outs


if __name__ == "__main__":
    # 2 input tasks -> in_channels = 4, 2 output tasks -> num_classes = 2
    input_task_list = ["depth", "normal"]
    output_task_list = ["seg", "edge"]
    features = 32
    in_channels = len(input_task_list) * 2
    num_classes = 2
    N, H, W = 2, 16, 16

    key = jax.random.PRNGKey(0)
    kx1, kx2, kparam = jax.random.split(key, 3)
    # each input task tensor: (N, 2, H, W) NCHW
    x_list = [jax.random.normal(kx1, (N, 2, H, W), jnp.float32),
              jax.random.normal(kx2, (N, 2, H, W), jnp.float32)]

    params = init_params(kparam, in_channels, features, num_classes, output_task_list)
    kparams = prepare_kernel_params(params, output_task_list, H, W)

    outs = transfer_net_forward(x_list, kparams, output_task_list)
    outs = [jax.block_until_ready(o) for o in outs]

    Ah = jnp.asarray(bilinear_matrix(H, 2 * H))
    Aw = jnp.asarray(bilinear_matrix(W, 2 * W))
    refs = ref_forward(x_list, params, output_task_list, Ah, Aw)
    for o, r in zip(outs, refs):
        assert o.shape == (N, num_classes, 2 * H, 2 * W), o.shape
        # bf16 matmul operands (f32 accumulation) -> loosened tolerance vs f32 reference
        assert bool(jnp.allclose(o, r, rtol=5e-2, atol=5e-2)), "mismatch vs reference"

    print("KERNEL_OK")
</pallas_src>

<mosaic_0001>
module attributes {stable_mosaic.version = 11 : i64} {
  func.func @_fused_kernel(%arg0: i32, %arg1: memref<1x16x16x4xbf16, #tpu.memory_space<vmem>>, %arg2: memref<36x32xbf16, #tpu.memory_space<vmem>>, %arg3: memref<1x32xf32, #tpu.memory_space<vmem>>, %arg4: memref<1x32xf32, #tpu.memory_space<vmem>>, %arg5: memref<64x288xbf16, #tpu.memory_space<vmem>>, %arg6: memref<64x1xf32, #tpu.memory_space<vmem>>, %arg7: memref<64x1xf32, #tpu.memory_space<vmem>>, %arg8: memref<2x2x32xbf16, #tpu.memory_space<vmem>>, %arg9: memref<2x2x1xf32, #tpu.memory_space<vmem>>, %arg10: memref<256x1024xf32, #tpu.memory_space<vmem>>, %arg11: memref<1x2x2x1024xf32, #tpu.memory_space<vmem>>) attributes {dimension_semantics = [#tpu.dimension_semantics<parallel>], iteration_bounds = array<i64: 2>, scalar_prefetch = 0 : i64, scratch_operands = 0 : i64, tpu.core_type = #tpu.core_type<tc>, window_params = [{transform_indices = @transform_0, window_bounds = array<i64: 1, 16, 16, 4>}, {pipeline_mode = #tpu.pipeline_mode<synchronous>, transform_indices = @transform_1, window_bounds = array<i64: 36, 32>}, {pipeline_mode = #tpu.pipeline_mode<synchronous>, transform_indices = @transform_2, window_bounds = array<i64: 1, 32>}, {pipeline_mode = #tpu.pipeline_mode<synchronous>, transform_indices = @transform_3, window_bounds = array<i64: 1, 32>}, {pipeline_mode = #tpu.pipeline_mode<synchronous>, transform_indices = @transform_4, window_bounds = array<i64: 64, 288>}, {pipeline_mode = #tpu.pipeline_mode<synchronous>, transform_indices = @transform_5, window_bounds = array<i64: 64, 1>}, {pipeline_mode = #tpu.pipeline_mode<synchronous>, transform_indices = @transform_6, window_bounds = array<i64: 64, 1>}, {pipeline_mode = #tpu.pipeline_mode<synchronous>, transform_indices = @transform_7, window_bounds = array<i64: 2, 2, 32>}, {pipeline_mode = #tpu.pipeline_mode<synchronous>, transform_indices = @transform_8, window_bounds = array<i64: 2, 2, 1>}, {pipeline_mode = #tpu.pipeline_mode<synchronous>, transform_indices = @transform_9, window_bounds = array<i64: 256, 1024>}, {transform_indices = @transform_10, window_bounds = array<i64: 1, 2, 2, 1024>}]} {
    %c0 = arith.constant 0 : index
    %c0_0 = arith.constant 0 : index
    %c0_1 = arith.constant 0 : index
    %c0_2 = arith.constant 0 : index
    %0 = vector.load %arg1[%c0, %c0_0, %c0_1, %c0_2] : memref<1x16x16x4xbf16, #tpu.memory_space<vmem>>, vector<1x16x16x4xbf16>
    %1 = vector.shape_cast %0 : vector<1x16x16x4xbf16> to vector<16x16x4xbf16>
    %cst = arith.constant 0.000000e+00 : bf16
    %2 = vector.broadcast %cst : bf16 to vector<1x16x4xbf16>
    %3 = tpu.concatenate %2, %1, %2 in 0 : vector<1x16x4xbf16>, vector<16x16x4xbf16>, vector<1x16x4xbf16> -> vector<18x16x4xbf16>
    %cst_3 = arith.constant 0.000000e+00 : bf16
    %4 = vector.broadcast %cst_3 : bf16 to vector<18x1x4xbf16>
    %5 = tpu.concatenate %4, %3, %4 in 1 : vector<18x1x4xbf16>, vector<18x16x4xbf16>, vector<18x1x4xbf16> -> vector<18x18x4xbf16>
    %6 = vector.extract_strided_slice %5 {offsets = [0, 0, 0], sizes = [16, 16, 4], strides = [1, 1, 1]} : vector<18x18x4xbf16> to vector<16x16x4xbf16>
    %7 = vector.extract_strided_slice %5 {offsets = [0, 1, 0], sizes = [16, 16, 4], strides = [1, 1, 1]} : vector<18x18x4xbf16> to vector<16x16x4xbf16>
    %8 = vector.extract_strided_slice %5 {offsets = [0, 2, 0], sizes = [16, 16, 4], strides = [1, 1, 1]} : vector<18x18x4xbf16> to vector<16x16x4xbf16>
    %9 = vector.extract_strided_slice %5 {offsets = [1, 0, 0], sizes = [16, 16, 4], strides = [1, 1, 1]} : vector<18x18x4xbf16> to vector<16x16x4xbf16>
    %10 = vector.extract_strided_slice %5 {offsets = [1, 1, 0], sizes = [16, 16, 4], strides = [1, 1, 1]} : vector<18x18x4xbf16> to vector<16x16x4xbf16>
    %11 = vector.extract_strided_slice %5 {offsets = [1, 2, 0], sizes = [16, 16, 4], strides = [1, 1, 1]} : vector<18x18x4xbf16> to vector<16x16x4xbf16>
    %12 = vector.extract_strided_slice %5 {offsets = [2, 0, 0], sizes = [16, 16, 4], strides = [1, 1, 1]} : vector<18x18x4xbf16> to vector<16x16x4xbf16>
    %13 = vector.extract_strided_slice %5 {offsets = [2, 1, 0], sizes = [16, 16, 4], strides = [1, 1, 1]} : vector<18x18x4xbf16> to vector<16x16x4xbf16>
    %14 = vector.extract_strided_slice %5 {offsets = [2, 2, 0], sizes = [16, 16, 4], strides = [1, 1, 1]} : vector<18x18x4xbf16> to vector<16x16x4xbf16>
    %15 = tpu.concatenate %6, %7, %8, %9, %10, %11, %12, %13, %14 in 2 : vector<16x16x4xbf16>, vector<16x16x4xbf16>, vector<16x16x4xbf16>, vector<16x16x4xbf16>, vector<16x16x4xbf16>, vector<16x16x4xbf16>, vector<16x16x4xbf16>, vector<16x16x4xbf16>, vector<16x16x4xbf16> -> vector<16x16x36xbf16>
    %16 = vector.shape_cast %15 : vector<16x16x36xbf16> to vector<256x36xbf16>
    %c0_4 = arith.constant 0 : index
    %c0_5 = arith.constant 0 : index
    %17 = vector.load %arg2[%c0_4, %c0_5] : memref<36x32xbf16, #tpu.memory_space<vmem>>, vector<36x32xbf16>
    %cst_6 = arith.constant dense<0.000000e+00> : vector<256x32xf32>
    %18 = tpu.matmul %16, %17, %cst_6 {dimension_numbers = #tpu.dot_dimension_numbers<[1], [0], [0], [1], [0, 0, 1, 1], [], []>} : vector<256x36xbf16>, vector<36x32xbf16>, vector<256x32xf32> -> vector<256x32xf32>
    %c0_7 = arith.constant 0 : index
    %c0_8 = arith.constant 0 : index
    %19 = vector.load %arg3[%c0_7, %c0_8] : memref<1x32xf32, #tpu.memory_space<vmem>>, vector<1x32xf32>
    %20 = vector.broadcast %19 : vector<1x32xf32> to vector<256x32xf32>
    %21 = arith.mulf %18, %20 : vector<256x32xf32>
    %c0_9 = arith.constant 0 : index
    %c0_10 = arith.constant 0 : index
    %22 = vector.load %arg4[%c0_9, %c0_10] : memref<1x32xf32, #tpu.memory_space<vmem>>, vector<1x32xf32>
    %23 = vector.broadcast %22 : vector<1x32xf32> to vector<256x32xf32>
    %24 = arith.addf %21, %23 : vector<256x32xf32>
    %cst_11 = arith.constant 0.000000e+00 : f32
    %25 = vector.broadcast %cst_11 : f32 to vector<256x32xf32>
    %26 = arith.maximumf %24, %25 : vector<256x32xf32>
    %27 = arith.truncf %26 : vector<256x32xf32> to vector<256x32xbf16>
    %28 = vector.shape_cast %27 : vector<256x32xbf16> to vector<16x16x32xbf16>
    %cst_12 = arith.constant 0.000000e+00 : bf16
    %29 = vector.broadcast %cst_12 : bf16 to vector<1x16x32xbf16>
    %30 = tpu.concatenate %29, %28, %29 in 0 : vector<1x16x32xbf16>, vector<16x16x32xbf16>, vector<1x16x32xbf16> -> vector<18x16x32xbf16>
    %cst_13 = arith.constant 0.000000e+00 : bf16
    %31 = vector.broadcast %cst_13 : bf16 to vector<18x1x32xbf16>
    %32 = tpu.concatenate %31, %30, %31 in 1 : vector<18x1x32xbf16>, vector<18x16x32xbf16>, vector<18x1x32xbf16> -> vector<18x18x32xbf16>
    %33 = vector.extract_strided_slice %32 {offsets = [0, 0, 0], sizes = [16, 16, 32], strides = [1, 1, 1]} : vector<18x18x32xbf16> to vector<16x16x32xbf16>
    %34 = vector.extract_strided_slice %32 {offsets = [0, 1, 0], sizes = [16, 16, 32], strides = [1, 1, 1]} : vector<18x18x32xbf16> to vector<16x16x32xbf16>
    %35 = vector.extract_strided_slice %32 {offsets = [0, 2, 0], sizes = [16, 16, 32], strides = [1, 1, 1]} : vector<18x18x32xbf16> to vector<16x16x32xbf16>
    %36 = vector.extract_strided_slice %32 {offsets = [1, 0, 0], sizes = [16, 16, 32], strides = [1, 1, 1]} : vector<18x18x32xbf16> to vector<16x16x32xbf16>
    %37 = vector.extract_strided_slice %32 {offsets = [1, 1, 0], sizes = [16, 16, 32], strides = [1, 1, 1]} : vector<18x18x32xbf16> to vector<16x16x32xbf16>
    %38 = vector.extract_strided_slice %32 {offsets = [1, 2, 0], sizes = [16, 16, 32], strides = [1, 1, 1]} : vector<18x18x32xbf16> to vector<16x16x32xbf16>
    %39 = vector.extract_strided_slice %32 {offsets = [2, 0, 0], sizes = [16, 16, 32], strides = [1, 1, 1]} : vector<18x18x32xbf16> to vector<16x16x32xbf16>
    %40 = vector.extract_strided_slice %32 {offsets = [2, 1, 0], sizes = [16, 16, 32], strides = [1, 1, 1]} : vector<18x18x32xbf16> to vector<16x16x32xbf16>
    %41 = vector.extract_strided_slice %32 {offsets = [2, 2, 0], sizes = [16, 16, 32], strides = [1, 1, 1]} : vector<18x18x32xbf16> to vector<16x16x32xbf16>
    %42 = tpu.concatenate %33, %34, %35, %36, %37, %38, %39, %40, %41 in 2 : vector<16x16x32xbf16>, vector<16x16x32xbf16>, vector<16x16x32xbf16>, vector<16x16x32xbf16>, vector<16x16x32xbf16>, vector<16x16x32xbf16>, vector<16x16x32xbf16>, vector<16x16x32xbf16>, vector<16x16x32xbf16> -> vector<16x16x288xbf16>
    %43 = vector.shape_cast %42 : vector<16x16x288xbf16> to vector<256x288xbf16>
    %c0_14 = arith.constant 0 : index
    %c0_15 = arith.constant 0 : index
    %44 = vector.load %arg5[%c0_14, %c0_15] : memref<64x288xbf16, #tpu.memory_space<vmem>>, vector<64x288xbf16>
    %cst_16 = arith.constant dense<0.000000e+00> : vector<64x256xf32>
    %45 = tpu.matmul %44, %43, %cst_16 {dimension_numbers = #tpu.dot_dimension_numbers<[1], [1], [0], [0], [0, 0, 1, 0], [], []>} : vector<64x288xbf16>, vector<256x288xbf16>, vector<64x256xf32> -> vector<64x256xf32>
    %c0_17 = arith.constant 0 : index
    %c0_18 = arith.constant 0 : index
    %46 = vector.load %arg6[%c0_17, %c0_18] : memref<64x1xf32, #tpu.memory_space<vmem>>, vector<64x1xf32>
    %47 = vector.broadcast %46 : vector<64x1xf32> to vector<64x256xf32>
    %48 = arith.mulf %45, %47 : vector<64x256xf32>
    %c0_19 = arith.constant 0 : index
    %c0_20 = arith.constant 0 : index
    %49 = vector.load %arg7[%c0_19, %c0_20] : memref<64x1xf32, #tpu.memory_space<vmem>>, vector<64x1xf32>
    %50 = vector.broadcast %49 : vector<64x1xf32> to vector<64x256xf32>
    %51 = arith.addf %48, %50 : vector<64x256xf32>
    %cst_21 = arith.constant 0.000000e+00 : f32
    %52 = vector.broadcast %cst_21 : f32 to vector<64x256xf32>
    %53 = arith.maximumf %51, %52 : vector<64x256xf32>
    %54 = arith.truncf %53 : vector<64x256xf32> to vector<64x256xbf16>
    %55 = vector.extract_strided_slice %54 {offsets = [0, 0], sizes = [32, 256], strides = [1, 1]} : vector<64x256xbf16> to vector<32x256xbf16>
    %c0_22 = arith.constant 0 : index
    %c0_23 = arith.constant 0 : index
    %c0_24 = arith.constant 0 : index
    %56 = vector.load %arg8[%c0_22, %c0_23, %c0_24] : memref<2x2x32xbf16, #tpu.memory_space<vmem>>, vector<1x2x32xbf16>
    %57 = vector.shape_cast %56 : vector<1x2x32xbf16> to vector<2x32xbf16>
    %cst_25 = arith.constant dense<0.000000e+00> : vector<2x256xf32>
    %58 = tpu.matmul %57, %55, %cst_25 {dimension_numbers = #tpu.dot_dimension_numbers<[1], [0], [0], [1], [0, 0, 1, 1], [], []>} : vector<2x32xbf16>, vector<32x256xbf16>, vector<2x256xf32> -> vector<2x256xf32>
    %c0_26 = arith.constant 0 : index
    %c0_27 = arith.constant 0 : index
    %c0_28 = arith.constant 0 : index
    %59 = vector.load %arg9[%c0_26, %c0_27, %c0_28] : memref<2x2x1xf32, #tpu.memory_space<vmem>>, vector<1x2x1xf32>
    %60 = vector.shape_cast %59 : vector<1x2x1xf32> to vector<2x1xf32>
    %61 = vector.broadcast %60 : vector<2x1xf32> to vector<2x256xf32>
    %62 = arith.addf %58, %61 : vector<2x256xf32>
    %c0_29 = arith.constant 0 : index
    %c0_30 = arith.constant 0 : index
    %63 = vector.load %arg10[%c0_29, %c0_30] : memref<256x1024xf32, #tpu.memory_space<vmem>>, vector<256x1024xf32>
    %cst_31 = arith.constant dense<0.000000e+00> : vector<2x1024xf32>
    %64 = tpu.matmul %62, %63, %cst_31 {dimension_numbers = #tpu.dot_dimension_numbers<[1], [0], [0], [1], [0, 0, 1, 1], [], []>} : vector<2x256xf32>, vector<256x1024xf32>, vector<2x1024xf32> -> vector<2x1024xf32>
    %c0_32 = arith.constant 0 : index
    %c0_33 = arith.constant 0 : index
    %c0_34 = arith.constant 0 : index
    %c0_35 = arith.constant 0 : index
    %65 = vector.load %arg11[%c0_32, %c0_33, %c0_34, %c0_35] : memref<1x2x2x1024xf32, #tpu.memory_space<vmem>>, vector<1x1x2x1024xf32>
    %66 = vector.shape_cast %65 : vector<1x1x2x1024xf32> to vector<2x1024xf32>
    %67 = vector.shape_cast %64 : vector<2x1024xf32> to vector<1x1x2x1024xf32>
    tpu.vector_store %arg11[%c0_32, %c0_33, %c0_34, %c0_35], %67 {strides = array<i32>} : memref<1x2x2x1024xf32, #tpu.memory_space<vmem>>, vector<1x1x2x1024xf32>,
    %68 = vector.extract_strided_slice %54 {offsets = [32, 0], sizes = [32, 256], strides = [1, 1]} : vector<64x256xbf16> to vector<32x256xbf16>
    %c1 = arith.constant 1 : index
    %c0_36 = arith.constant 0 : index
    %c0_37 = arith.constant 0 : index
    %69 = vector.load %arg8[%c1, %c0_36, %c0_37] : memref<2x2x32xbf16, #tpu.memory_space<vmem>>, vector<1x2x32xbf16>
    %70 = vector.shape_cast %69 : vector<1x2x32xbf16> to vector<2x32xbf16>
    %cst_38 = arith.constant dense<0.000000e+00> : vector<2x256xf32>
    %71 = tpu.matmul %70, %68, %cst_38 {dimension_numbers = #tpu.dot_dimension_numbers<[1], [0], [0], [1], [0, 0, 1, 1], [], []>} : vector<2x32xbf16>, vector<32x256xbf16>, vector<2x256xf32> -> vector<2x256xf32>
    %c1_39 = arith.constant 1 : index
    %c0_40 = arith.constant 0 : index
    %c0_41 = arith.constant 0 : index
    %72 = vector.load %arg9[%c1_39, %c0_40, %c0_41] : memref<2x2x1xf32, #tpu.memory_space<vmem>>, vector<1x2x1xf32>
    %73 = vector.shape_cast %72 : vector<1x2x1xf32> to vector<2x1xf32>
    %74 = vector.broadcast %73 : vector<2x1xf32> to vector<2x256xf32>
    %75 = arith.addf %71, %74 : vector<2x256xf32>
    %c0_42 = arith.constant 0 : index
    %c0_43 = arith.constant 0 : index
    %76 = vector.load %arg10[%c0_42, %c0_43] : memref<256x1024xf32, #tpu.memory_space<vmem>>, vector<256x1024xf32>
    %cst_44 = arith.constant dense<0.000000e+00> : vector<2x1024xf32>
    %77 = tpu.matmul %75, %76, %cst_44 {dimension_numbers = #tpu.dot_dimension_numbers<[1], [0], [0], [1], [0, 0, 1, 1], [], []>} : vector<2x256xf32>, vector<256x1024xf32>, vector<2x1024xf32> -> vector<2x1024xf32>
    %c0_45 = arith.constant 0 : index
    %c1_46 = arith.constant 1 : index
    %c0_47 = arith.constant 0 : index
    %c0_48 = arith.constant 0 : index
    %78 = vector.load %arg11[%c0_45, %c1_46, %c0_47, %c0_48] : memref<1x2x2x1024xf32, #tpu.memory_space<vmem>>, vector<1x1x2x1024xf32>
    %79 = vector.shape_cast %78 : vector<1x1x2x1024xf32> to vector<2x1024xf32>
    %80 = vector.shape_cast %77 : vector<2x1024xf32> to vector<1x1x2x1024xf32>
    tpu.vector_store %arg11[%c0_45, %c1_46, %c0_47, %c0_48], %80 {strides = array<i32>} : memref<1x2x2x1024xf32, #tpu.memory_space<vmem>>, vector<1x1x2x1024xf32>,
    return
  }
  func.func @transform_0(%arg0: i32) -> (i32, i32, i32, i32) {
    %c0_i32 = arith.constant 0 : i32
    %c0_i32_0 = arith.constant 0 : i32
    %c0_i32_1 = arith.constant 0 : i32
    %c0_i32_2 = arith.constant 0 : i32
    return %arg0, %c0_i32, %c0_i32_0, %c0_i32_1 : i32, i32, i32, i32
  }
  func.func @transform_1(%arg0: i32) -> (i32, i32) {
    %c0_i32 = arith.constant 0 : i32
    %c0_i32_0 = arith.constant 0 : i32
    %c0_i32_1 = arith.constant 0 : i32
    return %c0_i32, %c0_i32_0 : i32, i32
  }
  func.func @transform_2(%arg0: i32) -> (i32, i32) {
    %c0_i32 = arith.constant 0 : i32
    %c0_i32_0 = arith.constant 0 : i32
    %c0_i32_1 = arith.constant 0 : i32
    return %c0_i32, %c0_i32_0 : i32, i32
  }
  func.func @transform_3(%arg0: i32) -> (i32, i32) {
    %c0_i32 = arith.constant 0 : i32
    %c0_i32_0 = arith.constant 0 : i32
    %c0_i32_1 = arith.constant 0 : i32
    return %c0_i32, %c0_i32_0 : i32, i32
  }
  func.func @transform_4(%arg0: i32) -> (i32, i32) {
    %c0_i32 = arith.constant 0 : i32
    %c0_i32_0 = arith.constant 0 : i32
    %c0_i32_1 = arith.constant 0 : i32
    return %c0_i32, %c0_i32_0 : i32, i32
  }
  func.func @transform_5(%arg0: i32) -> (i32, i32) {
    %c0_i32 = arith.constant 0 : i32
    %c0_i32_0 = arith.constant 0 : i32
    %c0_i32_1 = arith.constant 0 : i32
    return %c0_i32, %c0_i32_0 : i32, i32
  }
  func.func @transform_6(%arg0: i32) -> (i32, i32) {
    %c0_i32 = arith.constant 0 : i32
    %c0_i32_0 = arith.constant 0 : i32
    %c0_i32_1 = arith.constant 0 : i32
    return %c0_i32, %c0_i32_0 : i32, i32
  }
  func.func @transform_7(%arg0: i32) -> (i32, i32, i32) {
    %c0_i32 = arith.constant 0 : i32
    %c0_i32_0 = arith.constant 0 : i32
    %c0_i32_1 = arith.constant 0 : i32
    %c0_i32_2 = arith.constant 0 : i32
    return %c0_i32, %c0_i32_0, %c0_i32_1 : i32, i32, i32
  }
  func.func @transform_8(%arg0: i32) -> (i32, i32, i32) {
    %c0_i32 = arith.constant 0 : i32
    %c0_i32_0 = arith.constant 0 : i32
    %c0_i32_1 = arith.constant 0 : i32
    %c0_i32_2 = arith.constant 0 : i32
    return %c0_i32, %c0_i32_0, %c0_i32_1 : i32, i32, i32
  }
  func.func @transform_9(%arg0: i32) -> (i32, i32) {
    %c0_i32 = arith.constant 0 : i32
    %c0_i32_0 = arith.constant 0 : i32
    %c0_i32_1 = arith.constant 0 : i32
    return %c0_i32, %c0_i32_0 : i32, i32
  }
  func.func @transform_10(%arg0: i32) -> (i32, i32, i32, i32) {
    %c0_i32 = arith.constant 0 : i32
    %c0_i32_0 = arith.constant 0 : i32
    %c0_i32_1 = arith.constant 0 : i32
    %c0_i32_2 = arith.constant 0 : i32
    return %arg0, %c0_i32, %c0_i32_0, %c0_i32_1 : i32, i32, i32, i32
  }
}

</mosaic_0001>

<bundles_post_ra>
// kernel: tpu_custom_call.1
= control target key start
LH: loop header
LB: loop body
LE: loop exit
PB: predicated region body
PF: predicated region fallthrough
CT: control target
= control target key end

     0   :  { %15 = vsyncpa [#allocation3], 0  ;;  %s6587_s0 = inlined_call_operand.vmem [shape: bf16[2,16,16,4], index: 0, kind: input, shape index: {}]   ;;  %s6588_s1 = inlined_call_operand.vmem [shape: bf16[36,32], index: 1, kind: input, shape index: {}]   ;;  %s6589_s2 = inlined_call_operand.vmem [shape: f32[1,32], index: 2, kind: input, shape index: {}]   ;;  %s6590_s3 = inlined_call_operand.vmem [shape: f32[1,32], index: 3, kind: input, shape index: {}]   ;;  %s6591_s4 = inlined_call_operand.vmem [shape: bf16[64,288], index: 4, kind: input, shape index: {}]   ;;  %s6592_s5 = inlined_call_operand.vmem [shape: f32[64,1], index: 5, kind: input, shape index: {}]   ;;  %s6593_s6 = inlined_call_operand.vmem [shape: f32[64,1], index: 6, kind: input, shape index: {}]   ;;  %s6594_s7 = inlined_call_operand.vmem [shape: bf16[2,2,32], index: 7, kind: input, shape index: {}]   ;;  %s6595_s8 = inlined_call_operand.vmem [shape: f32[2,2,1], index: 8, kind: input, shape index: {}]   ;;  %s6596_s9 = inlined_call_operand.hbm [shape: f32[256,1024], index: 9, kind: input, shape index: {}]   ;;  %s6597_s10 = inlined_call_operand.hbm [shape: f32[2,2,2,1024], index: 10, kind: output, shape index: {}]  }
   0x1   :  { %16 = vsyncpa [#allocation4], 0 }
   0x2   :  { %18 = vsyncpa [#allocation4 + $0x1], 0  ;;  %s4948_s13 = smov 0   ;;  %s4950_s14 = smov 0  }
   0x3   :  { %s4952_s15 = smov 0   ;;  %s4954_s16 = smov 0  }
   0x4 LB: > { %s4969_s17 = sadd.s32 4294967295, %s4874_s16   ;;  %s4512_s18 = sadd.s32 4294967294, %s4874_s16   ;;  %s4874_s16 = sphi %s4954_s16, %s6675_s16   ;;  %s4870_s15 = sphi %s4952_s15, %s6674_s15   ;;  %s4866_s14 = sphi %s4950_s14, %s6673_s14   ;;  %s4862_s13 = sphi %s4948_s13, %s6672_s13  }
   0x5   : > { %s4973_s19 = sadd.s32 1, %s4874_s16   ;;  %s246_s20 = sadd.s32 1, %s4870_s15 }
   0x6   : > { %s243_s21 = ssub.s32 %s4874_s16, %s4973_s19  ;;  %p256_p0 = scmp.ne.s32.totalorder %s4870_s15, %s4866_s14 }
   0x7   : > { %p244_p1 = scmp.eq.s32.totalorder %s243_s21, 0  ;;  %p257_p2 = scmp.eq.s32.totalorder %s4969_s17, 1 }
   0x8   : > { %p262_p3 = scmp.ne.s32.totalorder %s4866_s14, %s4862_s13  ;;  %p263_p4 = scmp.eq.s32.totalorder %s4512_s18, 1 }
   0x9   : > { %s4984_s22 = scalar_select %p244_p1, %s4870_s15, %s246_s20  }
   0xa   : > { %p4986_p5 = por %p257_p2, %p256_p0  ;;  %p4990_p6 = por %p263_p4, %p262_p3 }
   0xb   : > { %p4513_p7 = scmp.ge.s32.totalorder %s4874_s16, 1  ;;  %p270_p8 = scmp.lt.s32.totalorder %s4874_s16, 3 }
   0xc   : > { %s6621_s24 = scalar_select %p4990_p6, 1, 0 }
   0xd   : > { %p4691_p9 = scmp.eq.s32.totalorder %s4969_s17, 0  ;;  %p4997_p10 = pnand %p4513_p7, %p270_p8 }
   0xe   : > { %s4876_s26 = smov [#allocation2]  }
   0xf   : > { %s306_s27 = sshll.u32 %s4876_s26, 4  ;;  %p4683_p11 = pneg %p4997_p10  ;;  %s307_s27 = int_to_ptr.vmem [resolvable:$true] %s306_s27 }
  0x10   : > { %s4795_s28 = scalar_lea.vmem %s307_s27, 32768  ;;  %p4803_p3 = scmp.lt.s32.totalorder %s307_s27, %s307_s27 }
  0x11   : > { %p4684_p12 = pnand %p4691_p9, %p4683_p11  ;;  %p4796_p0 = scmp.ne.s32.totalorder %s307_s27, %s4795_s28 }
  0x12   : > { %p4804_p4 = scmp.lt.s32.totalorder %s4795_s28, %s4795_s28 }
  0x13   : > { %p4786_p13 = pneg %p4684_p12 }
  0x14   : > { %p4805_p6 = por %p4804_p4, %p4803_p3 }
  0x15   : > { %p4798_p1 = pnand %p4796_p0, %p4786_p13 }
  0x17   : > { %p4799_p2 = pneg %p4798_p1 }
  0x19   : > { %p4806_p7 = pnand %p4805_p6, %p4799_p2 }
  0x1b   : > { %4809 = shalt.err (!%p4806_p7)
}
  0x1c   : > { %s4877_s29 = smov 1024   ;;  %s4878_s30 = smov 64  }
  0x1d   : > { %4686 = dma.hbm_to_vmem [thread:$0]  (!%p4684_p12), %s6596_s9, 32768, %s307_s27, [#allocation3], %s4877_s29, %s4877_s29, %s4878_s30  }
  0x1e   : > { %330 = sbr.rel (%p4997_p10) target bundleno = 1804 (0x70c), region = 60 }
  0x23   : > { %4853 = dma.done.wait (%p4691_p9), [#allocation3], 32768  }
  0x24   : > { %4855 = vsyncadd (%p4691_p9), [#allocation3], 4294934528  ;;  %vm639_vm0 = vcmask 1040384   ;;  %vm640_vm1 = vsmask.f32 256  ;;  %v6602_v0 = vmov 0  }
  0x25   : > { %v489_v1 = vrot.slane %v6602_v0, 7  ;;  %vm5015_vm2 = vmand %vm639_vm0, %vm640_vm1  ;;  %4747 = vset.pattern.permute.xlu1 %v6602_v0  ;;  %4748 = vset.pattern.permute.xlu0 %v6602_v0  ;;  %p368_p6 = scmp.lt.s32.totalorder %s4969_s17, 1  ;;  %vm933_vm3 = vcmask 1046528   ;;  %vm676_vm4 = vsmask.f32 7424  ;;  %s4880_s21 = smov 8  }
  0x26   : > { %s4881_s28 = smov 4   ;;  %s4882_s29 = smov 12   ;;  %vm1540_vm5 = vcmask 1041408   ;;  %vm1454_vm6 = vcmask 261120   ;;  %vm1223_vm7 = vcmask 31744   ;;  %vm1256_vm8 = vcmask 64512  }
  0x27   : > { %v5024_v3 = vsel %vm5015_vm2, 0, %v489_v1  ;;  %v659_v4 = vsel %vm5015_vm2, %v489_v1, 0  ;;  %s369_s18 = scalar_select %p368_p6, %s4969_s17, 1  ;;  %vm1289_vm9 = vcmask 97280   ;;  %vm1322_vm10 = vcmask 130048  }
  0x28   : > { %6625 = vst [vmem:[#allocation8_spill] sm:$0xff] %v5024_v3  ;;  %v934_v5 = vrot.slane %v5024_v3, 1  ;;  %v935_v6 = vrot.slane %v659_v4, 1  ;;  %v678_v7 = vshrl.u32 %v5024_v3, 16  ;;  %v680_v8 = vshll.u32 %v5024_v3, 16  ;;  %s6600_s30 = smov 24  }
  0x29   : > { %v685_v9 = vshll.u32 %v659_v4, 16  ;;  %s4585_s20 = sshll.u32 %s369_s18, 7  ;;  %s4884_s11 = smov 20   ;;  %vm1355_vm11 = vcmask 162816   ;;  %vm1388_vm12 = vcmask 195584   ;;  %vm1421_vm13 = vcmask 228352  }
  0x2a   : > { %v5033_v10 = vsel %vm933_vm3, %v934_v5, %v935_v6  ;;  %v682_v11 = vrot.slane %v680_v8, 1  ;;  %s5040_s27 = scalar_lea.vmem %s6587_s0, %s4585_s20  ;;  %s6619_s12 = smov 16   ;;  %vm1507_vm14 = vcmask 293888   ;;  %vm2503_vm15 = vcmask 523264  }
  0x2b   : > { %982 = vrot.lane.b32.xlu1 %v5033_v10, %s4880_s21  ;;  %v687_v12 = vrot.slane %v685_v9, 1  ;;  %v4749_v14 = vld [vmem:[%s5040_s27 + $0x8] sm:$0xff]   ;;  %v4750_v15 = vld [vmem:[%s5040_s27] sm:$0xff]   ;;  %v4751_v21 = vld [vmem:[%s5040_s27 + $0x10] sm:$0xff]   ;;  %s6598_s18 = smov 28   ;;  %s4887_s26 = smov 32  }
  0x2c   : > { %v683_v13 = vor.u32 %v682_v11, %v678_v7  ;;  %v501_v17 = vshrl.u32 %v4749_v14, 16  ;;  %v504_v18 = vshll.u32 %v4749_v14, 16  ;;  %v494_v19 = vshrl.u32 %v4750_v15, 16  ;;  %v4752_v52 = vld [vmem:[%s5040_s27 + $0x18] sm:$0xff]   ;;  %v4753_v7 = vld [vmem:[%s5040_s27 + $0x20] sm:$0xff]   ;;  %s4889_s20 = smov 96  }
  0x2d   : > { %v497_v20 = vshll.u32 %v4750_v15, 16  ;;  %v508_v24 = vshrl.u32 %v4751_v21, 16  ;;  %v511_v25 = vshll.u32 %v4751_v21, 16  ;;  %v515_v60 = vshrl.u32 %v4752_v52, 16 }
  0x2e   : > { %v5045_v16 = vsel %vm676_vm4, %v683_v13, %v687_v12  ;;  %v503_v22 = vrot.slane %v501_v17, 7  ;;  %v496_v23 = vrot.slane %v494_v19, 7  ;;  %v518_v4 = vshll.u32 %v4752_v52, 16  ;;  %v4758_v13 = vld [vmem:[%s6588_s1 + $0x10] ss:$0 sps:$4 sm:$0x33]  }
  0x2f   : > { %869 = vrot.lane.b32.xlu0 %v5045_v16, %s4881_s28  ;;  %v510_v28 = vrot.slane %v508_v24, 7  ;;  %v517_v1 = vrot.slane %v515_v60, 7  ;;  %v522_v12 = vshrl.u32 %v4753_v7, 16  ;;  %v525_v19 = vshll.u32 %v4753_v7, 16  ;;  %4668 = vmatprep.subr.msk.bf16.mxu0 %vm1540_vm5, %v4758_v13 }
  0x30   : > { %v506_v26 = vor.u32 %v504_v18, %v503_v22  ;;  %v499_v27 = vor.u32 %v497_v20, %v496_v23  ;;  %v660_v29 = vsel %vm5015_vm2, %v496_v23, 0  ;;  %v661_v35 = vsel %vm5015_vm2, %v503_v22, 0  ;;  %v4760_v20 = vld [vmem:[%s6588_s1 + $0x8] sm:$0xff]  }
  0x31   : > { %v513_v32 = vor.u32 %v511_v25, %v510_v28  ;;  %v938_v34 = vrot.slane %v660_v29, 1  ;;  %v697_v39 = vshll.u32 %v660_v29, 16  ;;  %v941_v43 = vrot.slane %v661_v35, 1 }
  0x32   : > { %v5054_v30 = vsel %vm5015_vm2, 0, %v506_v26  ;;  %v5060_v31 = vsel %vm5015_vm2, 0, %v499_v27  ;;  %v709_v44 = vshll.u32 %v661_v35, 16  ;;  %v662_v51 = vsel %vm5015_vm2, %v510_v28, 0  ;;  %v4761_v26 = vld [vmem:[%s6588_s1] sm:$0xff]  }
  0x33   : > { %1017 = vrot.lane.b32.xlu1 %v5054_v30, %s4882_s29  ;;  %1015 = vrot.lane.b32.xlu0 %v5060_v31, %s4882_s29  ;;  %v937_v33 = vrot.slane %v5060_v31, 1  ;;  %v692_v36 = vshll.u32 %v5060_v31, 16  ;;  %v5070_v37 = vsel %vm5015_vm2, 0, %v513_v32  ;;  %v690_v38 = vshrl.u32 %v5060_v31, 16 }
  0x34   : > { %v704_v40 = vshll.u32 %v5054_v30, 16  ;;  %v940_v42 = vrot.slane %v5054_v30, 1  ;;  %v702_v46 = vshrl.u32 %v5054_v30, 16  ;;  %v716_v48 = vshll.u32 %v5070_v37, 16 }
  0x35   : > { %v694_v41 = vrot.slane %v692_v36, 1  ;;  %v939_v45 = vsel %vm933_vm3, %v937_v33, %v938_v34  ;;  %v699_v50 = vrot.slane %v697_v39, 1  ;;  %v711_v54 = vrot.slane %v709_v44, 1 }
  0x36   : > { %v706_v47 = vrot.slane %v704_v40, 1  ;;  %v942_v53 = vsel %vm933_vm3, %v940_v42, %v941_v43  ;;  %v714_v56 = vshrl.u32 %v5070_v37, 16  ;;  %v718_v57 = vrot.slane %v716_v48, 1 }
  0x37   : > { %1129 = vrot.lane.b32.xlu1 %v5070_v37, %s6600_s30  ;;  %1127 = vrot.lane.b32.xlu0 %v5054_v30, %s6600_s30  ;;  %v695_v49 = vor.u32 %v694_v41, %v690_v38  ;;  %v721_v58 = vshll.u32 %v662_v51, 16  ;;  %v520_v6 = vor.u32 %v518_v4, %v517_v1  ;;  %v943_v8 = vrot.slane %v5070_v37, 1  ;;  %v4754_v38 = vld [vmem:[%s5040_s27 + $0x28] sm:$0xff]   ;;  %s6626_s30 = smov 24  }
  0x38   : > { %v707_v55 = vor.u32 %v706_v47, %v702_v46  ;;  %v719_v62 = vor.u32 %v718_v57, %v714_v56  ;;  %v944_v9 = vrot.slane %v662_v51, 1  ;;  %v663_v17 = vsel %vm5015_vm2, %v517_v1, 0 }
  0x39   : > { %v700_v59 = vsel %vm676_vm4, %v695_v49, %v699_v50  ;;  %v723_v63 = vrot.slane %v721_v58, 1  ;;  %v5102_v11 = vsel %vm5015_vm2, 0, %v520_v6  ;;  %v524_v18 = vrot.slane %v522_v12, 7  ;;  %v4755_v50 = vld [vmem:[%s5040_s27 + $0x30] sm:$0xff]  }
  0x3a   : > { %v712_v61 = vsel %vm676_vm4, %v707_v55, %v711_v54  ;;  %v728_v14 = vshll.u32 %v5102_v11, 16  ;;  %v945_v15 = vsel %vm933_vm3, %v943_v8, %v944_v9  ;;  %v1542_v21 = vsel %vm1540_vm5, %v4758_v13, 0  ;;  %v4756_v13 = vld [vmem:[%s5040_s27 + $0x38] sm:$0xff]  }
  0x3b   : > { %984 = vrot.lane.b32.xlu1 %v939_v45, %s4880_s21  ;;  %1095 = vrot.lane.b32.xlu0 %v939_v45, %s4884_s11  ;;  %v724_v5 = vsel %vm676_vm4, %v719_v62, %v723_v63  ;;  %v726_v22 = vshrl.u32 %v5102_v11, 16  ;;  %v733_v24 = vshll.u32 %v663_v17, 16  ;;  %v527_v25 = vor.u32 %v525_v19, %v524_v18 }
  0x3c   : > { %v730_v23 = vrot.slane %v728_v14, 1  ;;  %4631 = vmatpush3.bf16.msra.mxu0 %v1542_v21  ;;  %v947_v32 = vrot.slane %v663_v17, 1  ;;  %v946_v34 = vrot.slane %v5102_v11, 1  ;;  %v664_v36 = vsel %vm5015_vm2, %v524_v18, 0 }
  0x3d   : > { %4632 = vmatprep.subr.bf16.mxu0 %v4760_v20  ;;  %v735_v28 = vrot.slane %v733_v24, 1  ;;  %v5126_v29 = vsel %vm5015_vm2, 0, %v527_v25  ;;  %v745_v42 = vshll.u32 %v664_v36, 16  ;;  %v529_v43 = vshrl.u32 %v4754_v38, 16 }
  0x3e   : > { %v731_v27 = vor.u32 %v730_v23, %v726_v22  ;;  %v740_v35 = vshll.u32 %v5126_v29, 16  ;;  %v948_v39 = vsel %vm933_vm3, %v946_v34, %v947_v32  ;;  %v738_v40 = vshrl.u32 %v5126_v29, 16 }
  0x3f   : > { %1097 = vrot.lane.b32.xlu1 %v942_v53, %s4884_s11  ;;  %871 = vrot.lane.b32.xlu0 %v700_v59, %s4881_s28  ;;  %v747_v45 = vrot.slane %v745_v42, 1  ;;  %v531_v46 = vrot.slane %v529_v43, 7  ;;  %v532_v47 = vshll.u32 %v4754_v38, 16  ;;  %v949_v51 = vrot.slane %v5126_v29, 1 }
  0x40   : > { %4633 = vmatpush3.bf16.msra.mxu0 %v4760_v20  ;;  %v736_v33 = vsel %vm676_vm4, %v731_v27, %v735_v28  ;;  %v742_v41 = vrot.slane %v740_v35, 1  ;;  %v950_v52 = vrot.slane %v664_v36, 1  ;;  %v536_v54 = vshrl.u32 %v4755_v50, 16 }
  0x41   : > { %4634 = vmatprep.subr.bf16.mxu0 %v4761_v26  ;;  %v534_v49 = vor.u32 %v532_v47, %v531_v46  ;;  %v665_v57 = vsel %vm5015_vm2, %v531_v46, 0  ;;  %v543_v19 = vshrl.u32 %v4756_v13, 16  ;;  %v546_v23 = vshll.u32 %v4756_v13, 16 }
  0x42   : > { %v743_v44 = vor.u32 %v742_v41, %v738_v40  ;;  %v951_v56 = vsel %vm933_vm3, %v949_v51, %v950_v52  ;;  %v538_v58 = vrot.slane %v536_v54, 7  ;;  %v757_v62 = vshll.u32 %v665_v57, 16  ;;  %v4759_v52 = vld [vmem:[%s5040_s27 + $0x48] sm:$0xff]  }
  0x43   : > { %1061 = vrot.lane.b32.xlu1 %v712_v61, %s6619_s12  ;;  %1059 = vrot.lane.b32.xlu0 %v700_v59, %s6619_s12  ;;  %v539_v59 = vshll.u32 %v4755_v50, 16  ;;  %v953_v8 = vrot.slane %v665_v57, 1  ;;  %v545_v22 = vrot.slane %v543_v19, 7  ;;  %vm2536_vm0 = vcmask 785408  }
  0x44   : > { %4635 = vmatpush3.bf16.msra.mxu0 %v4761_v26  ;;  %v748_v48 = vsel %vm676_vm4, %v743_v44, %v747_v45  ;;  %v759_v4 = vrot.slane %v757_v62, 1  ;;  %v666_v12 = vsel %vm5015_vm2, %v538_v58, 0  ;;  %v4757_v26 = vld [vmem:[%s5040_s27 + $0x40] sm:$0xff]  }
  0x45   : > { %4669 = vmatprep.subr.msk.bf16.mxu0 %vm1454_vm6, %v5033_v10  ;;  %v541_v63 = vor.u32 %v539_v59, %v538_v58  ;;  %v769_v18 = vshll.u32 %v666_v12, 16  ;;  %v548_v25 = vor.u32 %v546_v23, %v545_v22  ;;  %v956_v28 = vrot.slane %v666_v12, 1 }
  0x46   : > { %v667_v36 = vsel %vm5015_vm2, %v545_v22, 0  ;;  %v557_v58 = vshrl.u32 %v4759_v52, 16 }
  0x47   : > { %1161 = vrot.lane.b32.xlu1 %v724_v5, %s6598_s18  ;;  %1159 = vrot.lane.b32.xlu0 %v712_v61, %s6598_s18  ;;  %s6627_s18 = smov 28   ;;  %v771_v21 = vrot.slane %v769_v18, 1  ;;  %v5201_v32 = vsel %vm5015_vm2, 0, %v548_v25  ;;  %v781_v42 = vshll.u32 %v667_v36, 16 }
  0x48   : > { %v776_v34 = vshll.u32 %v5201_v32, 16  ;;  %v774_v40 = vshrl.u32 %v5201_v32, 16 }
  0x49   : > { %v783_v45 = vrot.slane %v781_v42, 1 }
  0x4a   : > { %v778_v41 = vrot.slane %v776_v34, 1 }
  0x4b   : > { %873 = vrot.lane.b32.xlu1 %v712_v61, %s4881_s28  ;;  %1191 = vrot.lane.b32.xlu0 %v942_v53, %s4887_s26 }
  0x4c   : > { %v779_v44 = vor.u32 %v778_v41, %v774_v40 }
  0x4e   : > { %v784_v47 = vsel %vm676_vm4, %v779_v44, %v783_v45 }
  0x4f   : > { %875 = vrot.lane.b32.xlu1 %v724_v5, %s4881_s28  ;;  %1193 = vrot.lane.b32.xlu0 %v945_v15, %s4887_s26 }
  0x53   : > { %988 = vrot.lane.b32.xlu1 %v945_v15, %s4880_s21  ;;  %986 = vrot.lane.b32.xlu0 %v942_v53, %s4880_s21  ;;  %v5157_v53 = vsel %vm5015_vm2, 0, %v534_v49  ;;  %v959_v49 = vrot.slane %v667_v36, 1 }
  0x54   : > { %v752_v55 = vshll.u32 %v5157_v53, 16  ;;  %v750_v60 = vshrl.u32 %v5157_v53, 16  ;;  %v952_v7 = vrot.slane %v5157_v53, 1 }
  0x56   : > { %v754_v61 = vrot.slane %v752_v55, 1  ;;  %v954_v14 = vsel %vm933_vm3, %v952_v7, %v953_v8  ;;  %v4762_v8 = vld [vmem:[%s5040_s27 + $0x50] sm:$0xff]  }
  0x57   : > { %1021 = vrot.lane.b32.xlu1 %v5102_v11, %s4882_s29  ;;  %1019 = vrot.lane.b32.xlu0 %v5070_v37, %s4882_s29 }
  0x58   : > { %v755_v1 = vor.u32 %v754_v61, %v750_v60 }
  0x5a   : > { %v760_v6 = vsel %vm676_vm4, %v755_v1, %v759_v4  ;;  %v560_v1 = vshll.u32 %v4759_v52, 16 }
  0x5b   : > { %1065 = vrot.lane.b32.xlu1 %v736_v33, %s6619_s12  ;;  %1063 = vrot.lane.b32.xlu0 %v724_v5, %s6619_s12  ;;  %v5172_v5 = vsel %vm5015_vm2, 0, %v541_v63  ;;  %v559_v63 = vrot.slane %v557_v58, 7  ;;  %v4763_v58 = vld [vmem:[%s5040_s27 + $0x58] sm:$0xff]  }
  0x5c   : > { %v764_v9 = vshll.u32 %v5172_v5, 16  ;;  %v955_v27 = vrot.slane %v5172_v5, 1 }
  0x5d   : > { %v562_v7 = vor.u32 %v560_v1, %v559_v63  ;;  %v669_v22 = vsel %vm5015_vm2, %v559_v63, 0 }
  0x5e   : > { %v766_v17 = vrot.slane %v764_v9, 1  ;;  %v957_v35 = vsel %vm933_vm3, %v955_v27, %v956_v28  ;;  %v805_v28 = vshll.u32 %v669_v22, 16 }
  0x5f   : > { %1101 = vrot.lane.b32.xlu1 %v948_v39, %s4884_s11  ;;  %1099 = vrot.lane.b32.xlu0 %v945_v15, %s4884_s11  ;;  %v762_v15 = vshrl.u32 %v5172_v5, 16 }
  0x60   : > { %v807_v41 = vrot.slane %v805_v28, 1 }
  0x61   : > { %v767_v20 = vor.u32 %v766_v17, %v762_v15  ;;  %v5250_v15 = vsel %vm5015_vm2, 0, %v562_v7  ;;  %v564_v17 = vshrl.u32 %v4762_v8, 16 }
  0x62   : > { %v800_v19 = vshll.u32 %v5250_v15, 16 }
  0x63   : > { %1133 = vrot.lane.b32.xlu1 %v5126_v29, %s6626_s30  ;;  %1131 = vrot.lane.b32.xlu0 %v5102_v11, %s6626_s30  ;;  %v772_v24 = vsel %vm676_vm4, %v767_v20, %v771_v21  ;;  %v566_v23 = vrot.slane %v564_v17, 7 }
  0x64   : > { %v802_v27 = vrot.slane %v800_v19, 1 }
  0x67   : > { %1165 = vrot.lane.b32.xlu1 %v748_v48, %s6627_s18  ;;  %1163 = vrot.lane.b32.xlu0 %v736_v33, %s6627_s18 }
  0x6b   : > { %877 = vrot.lane.b32.xlu1 %v736_v33, %s4881_s28  ;;  %1195 = vrot.lane.b32.xlu0 %v948_v39, %s4887_s26  ;;  %v550_v33 = vshrl.u32 %v4757_v26, 16 }
  0x6d   : > { %v552_v38 = vrot.slane %v550_v33, 7 }
  0x6f   : > { %879 = vrot.lane.b32.xlu1 %v748_v48, %s4881_s28  ;;  %1197 = vrot.lane.b32.xlu0 %v951_v56, %s4887_s26  ;;  %v668_v51 = vsel %vm5015_vm2, %v552_v38, 0 }
  0x70   : > { %v793_v57 = vshll.u32 %v668_v51, 16 }
  0x72   : > { %v795_v62 = vrot.slane %v793_v57, 1  ;;  %v670_v57 = vsel %vm5015_vm2, %v566_v23, 0 }
  0x73   : > { %992 = vrot.lane.b32.xlu1 %v951_v56, %s4880_s21  ;;  %990 = vrot.lane.b32.xlu0 %v948_v39, %s4880_s21  ;;  %v553_v39 = vshll.u32 %v4757_v26, 16  ;;  %v798_v26 = vshrl.u32 %v5250_v15, 16 }
  0x75   : > { %v555_v43 = vor.u32 %v553_v39, %v552_v38  ;;  %v803_v40 = vor.u32 %v802_v27, %v798_v26  ;;  %v968_v26 = vrot.slane %v670_v57, 1 }
  0x77   : > { %1025 = vrot.lane.b32.xlu1 %v5157_v53, %s4882_s29  ;;  %1023 = vrot.lane.b32.xlu0 %v5126_v29, %s4882_s29  ;;  %v5216_v46 = vsel %vm5015_vm2, 0, %v555_v43  ;;  %v808_v52 = vsel %vm676_vm4, %v803_v40, %v807_v41 }
  0x78   : > { %v788_v50 = vshll.u32 %v5216_v46, 16  ;;  %v786_v55 = vshrl.u32 %v5216_v46, 16  ;;  %v961_v13 = vrot.slane %v5216_v46, 1 }
  0x7b   : > { %1069 = vrot.lane.b32.xlu1 %v760_v6, %s6619_s12  ;;  %1067 = vrot.lane.b32.xlu0 %v748_v48, %s6619_s12  ;;  %v958_v48 = vrot.slane %v5201_v32, 1 }
  0x7d   : > { %v960_v54 = vsel %vm933_vm3, %v958_v48, %v959_v49  ;;  %v964_v49 = vrot.slane %v5250_v15, 1 }
  0x7f   : > { %1105 = vrot.lane.b32.xlu1 %v954_v14, %s4884_s11  ;;  %1103 = vrot.lane.b32.xlu0 %v951_v56, %s4884_s11  ;;  %v790_v56 = vrot.slane %v788_v50, 1  ;;  %v965_v50 = vrot.slane %v669_v22, 1  ;;  %v574_v22 = vshll.u32 %v4763_v58, 16 }
  0x81   : > { %v791_v61 = vor.u32 %v790_v56, %v786_v55 }
  0x83   : > { %1137 = vrot.lane.b32.xlu1 %v5172_v5, %s6626_s30  ;;  %1135 = vrot.lane.b32.xlu0 %v5157_v53, %s6626_s30  ;;  %v5239_v4 = vsel %vm676_vm4, %v791_v61, %v795_v62  ;;  %v966_v61 = vsel %vm933_vm3, %v964_v49, %v965_v50 }
  0x87   : > { %1169 = vrot.lane.b32.xlu1 %v772_v24, %s6627_s18  ;;  %1167 = vrot.lane.b32.xlu0 %v760_v6, %s6627_s18 }
  0x8b   : > { %881 = vrot.lane.b32.xlu1 %v760_v6, %s4881_s28  ;;  %1199 = vrot.lane.b32.xlu0 %v954_v14, %s4887_s26 }
  0x8f   : > { %883 = vrot.lane.b32.xlu1 %v772_v24, %s4881_s28  ;;  %1201 = vrot.lane.b32.xlu0 %v957_v35, %s4887_s26 }
  0x93   : > { %996 = vrot.lane.b32.xlu1 %v957_v35, %s4880_s21  ;;  %994 = vrot.lane.b32.xlu0 %v954_v14, %s4880_s21  ;;  %v962_v14 = vrot.slane %v668_v51, 1 }
  0x95   : > { %v5256_v21 = vsel %vm933_vm3, %v961_v13, %v962_v14 }
  0x97   : > { %1029 = vrot.lane.b32.xlu1 %v5201_v32, %s4882_s29  ;;  %1027 = vrot.lane.b32.xlu0 %v5172_v5, %s4882_s29 }
  0x9b   : > { %1073 = vrot.lane.b32.xlu1 %v784_v47, %s6619_s12  ;;  %1071 = vrot.lane.b32.xlu0 %v772_v24, %s6619_s12  ;;  %v567_v24 = vshll.u32 %v4762_v8, 16  ;;  %v571_v8 = vshrl.u32 %v4763_v58, 16 }
  0x9d   : > { %v983_v59 = vpop.permute.xlu1 %982  ;;  %v569_v34 = vor.u32 %v567_v24, %v566_v23 }
  0x9f   : > { %1109 = vrot.lane.b32.xlu1 %v960_v54, %s4884_s11  ;;  %1107 = vrot.lane.b32.xlu0 %v957_v35, %s4884_s11  ;;  %v5276_v44 = vsel %vm5015_vm2, 0, %v569_v34 }
  0xa0   : > { %v810_v63 = vshrl.u32 %v5276_v44, 16 }
  0xa1   : > { %v870_v60 = vpop.permute.xlu0 %869 }
  0xa2   : > { %v1225_v35 = vsel %vm1223_vm7, %v5024_v3, %v870_v60 }
  0xa3   : > { %1141 = vrot.lane.b32.xlu1 %v5216_v46, %s6626_s30  ;;  %1139 = vrot.lane.b32.xlu0 %v5201_v32, %s6626_s30  ;;  %v1258_v42 = vsel %vm1256_vm8, %v1225_v35, %v983_v59 }
  0xa5   : > { %v1018_v6 = vpop.permute.xlu1 %1017  ;;  %v1016_v9 = vpop.permute.xlu0 %1015 }
  0xa7   : > { %1173 = vrot.lane.b32.xlu1 %v5239_v4, %s6627_s18  ;;  %1171 = vrot.lane.b32.xlu0 %v784_v47, %s6627_s18 }
  0xa9   : > { %v5245_v12 = vpop.permute.xlu1 %1129  ;;  %v1128_v18 = vpop.permute.xlu0 %1127 }
  0xab   : > { %885 = vrot.lane.b32.xlu1 %v784_v47, %s4881_s28  ;;  %1203 = vrot.lane.b32.xlu0 %v960_v54, %s4887_s26 }
  0xad   : > { %v985_v20 = vpop.permute.xlu1 %984  ;;  %v1096_v25 = vpop.permute.xlu0 %1095 }
  0xaf   : > { %887 = vrot.lane.b32.xlu1 %v5239_v4, %s4881_s28  ;;  %1205 = vrot.lane.b32.xlu0 %v5256_v21, %s4887_s26 }
  0xb1   : > { %v1098_v33 = vpop.permute.xlu1 %1097  ;;  %v872_v36 = vpop.permute.xlu0 %871 }
  0xb2   : > { %v1227_v38 = vsel %vm1223_vm7, %v5060_v31, %v872_v36  ;;  %v1291_v31 = vsel %vm1289_vm9, %v1258_v42, %v1016_v9 }
  0xb3   : > { %1000 = vrot.lane.b32.xlu1 %v5256_v21, %s4880_s21  ;;  %v1260_v39 = vsel %vm1256_vm8, %v1227_v38, %v985_v20  ;;  %998 = vrot.lane.b32.xlu0 %v960_v54, %s4880_s21  ;;  %v812_v54 = vshll.u32 %v5276_v44, 16  ;;  %v573_v20 = vrot.slane %v571_v8, 7 }
  0xb4   : > { %v1293_v45 = vsel %vm1289_vm9, %v1260_v39, %v1018_v6  ;;  %v817_v6 = vshll.u32 %v670_v57, 16 }
  0xb5   : > { %v1062_v43 = vpop.permute.xlu1 %1061  ;;  %v1060_v47 = vpop.permute.xlu0 %1059  ;;  %v814_v1 = vrot.slane %v812_v54, 1  ;;  %v576_v28 = vor.u32 %v574_v22, %v573_v20 }
  0xb6   : > { %v1324_v48 = vsel %vm1322_vm10, %v1291_v31, %v1060_v47  ;;  %v1326_v55 = vsel %vm1322_vm10, %v1293_v45, %v1062_v43  ;;  %v671_v43 = vsel %vm5015_vm2, %v573_v20, 0 }
  0xb7   : > { %1033 = vrot.lane.b32.xlu1 %v5250_v15, %s4882_s29  ;;  %v1357_v51 = vsel %vm1355_vm11, %v1324_v48, %v1096_v25  ;;  %1031 = vrot.lane.b32.xlu0 %v5216_v46, %s4882_s29  ;;  %v1359_v62 = vsel %vm1355_vm11, %v1326_v55, %v1098_v33  ;;  %v967_v25 = vrot.slane %v5276_v44, 1  ;;  %v4764_v33 = vld [vmem:[%s5040_s27 + $0x60] sm:$0xff]   ;;  %v5325_v38 = vsel %vm5015_vm2, 0, %v576_v28 }
  0xb8   : > { %v1390_v60 = vsel %vm1388_vm12, %v1357_v51, %v1128_v18  ;;  %v1392_v14 = vsel %vm1388_vm12, %v1359_v62, %v5245_v12  ;;  %v819_v18 = vrot.slane %v817_v6, 1  ;;  %v578_v39 = vshrl.u32 %v4764_v33, 16 }
  0xb9   : > { %v1162_v56 = vpop.permute.xlu1 %1161  ;;  %v1160_v59 = vpop.permute.xlu0 %1159  ;;  %v969_v35 = vsel %vm933_vm3, %v967_v25, %v968_v26  ;;  %v824_v41 = vshll.u32 %v5325_v38, 16  ;;  %v581_v45 = vshll.u32 %v4764_v33, 16  ;;  %v822_v48 = vshrl.u32 %v5325_v38, 16 }
  0xba   : > { %v1423_v9 = vsel %vm1421_vm13, %v1390_v60, %v1160_v59  ;;  %v1425_v23 = vsel %vm1421_vm13, %v1392_v14, %v1162_v56  ;;  %v580_v31 = vrot.slane %v578_v39, 7  ;;  %v829_v50 = vshll.u32 %v671_v43, 16 }
  0xbb   : > { %1077 = vrot.lane.b32.xlu1 %v808_v52, %s6619_s12  ;;  %1075 = vrot.lane.b32.xlu0 %v5239_v4, %s6619_s12  ;;  %v815_v4 = vor.u32 %v814_v1, %v810_v63  ;;  %v826_v49 = vrot.slane %v824_v41, 1  ;;  %v970_v60 = vrot.slane %v5325_v38, 1  ;;  %v971_v62 = vrot.slane %v671_v43, 1 }
  0xbc   : > { %v583_v54 = vor.u32 %v581_v45, %v580_v31  ;;  %v831_v57 = vrot.slane %v829_v50, 1 }
  0xbd   : > { %v874_v7 = vpop.permute.xlu1 %873  ;;  %v1192_v13 = vpop.permute.xlu0 %1191  ;;  %v827_v56 = vor.u32 %v826_v49, %v822_v48  ;;  %v4766_v49 = vld [vmem:[%s5040_s27 + $0x70] sm:$0xff]  }
  0xbe   : > { %v1456_v17 = vsel %vm1454_vm6, %v1423_v9, %v1192_v13  ;;  %v5339_v59 = vsel %vm5015_vm2, 0, %v583_v54  ;;  %v1229_v63 = vsel %vm1223_vm7, %v5054_v30, %v874_v7  ;;  %v672_v9 = vsel %vm5015_vm2, %v580_v31, 0  ;;  %v4765_v13 = vld [vmem:[%s5040_s27 + $0x68] sm:$0xff]  }
  0xbf   : > { %1113 = vrot.lane.b32.xlu1 %v966_v61, %s4884_s11  ;;  %1111 = vrot.lane.b32.xlu0 %v5256_v21, %s4884_s11  ;;  %v820_v21 = vsel %vm676_vm4, %v815_v4, %v819_v18  ;;  %v836_v1 = vshll.u32 %v5339_v59, 16  ;;  %v972_v30 = vsel %vm933_vm3, %v970_v60, %v971_v62  ;;  %v834_v7 = vshrl.u32 %v5339_v59, 16 }
  0xc0   : > { %4636 = vmatprep.mubr.msk.bf16.mxu0 %vm1507_vm14, %v1456_v17  ;;  %v585_v26 = vshrl.u32 %v4765_v13, 16  ;;  %v588_v43 = vshll.u32 %v4765_v13, 16  ;;  %v973_v54 = vrot.slane %v5339_v59, 1 }
  0xc1   : > { %v5308_v19 = vpop.permute.xlu1 %875  ;;  %v1194_v24 = vpop.permute.xlu0 %1193  ;;  %v838_v22 = vrot.slane %v836_v1, 1 }
  0xc2   : > { %v1458_v12 = vsel %vm1454_vm6, %v1425_v23, %v1194_v24  ;;  %v1231_v18 = vsel %vm1223_vm7, %v5070_v37, %v5308_v19  ;;  %v841_v23 = vshll.u32 %v672_v9, 16  ;;  %v587_v41 = vrot.slane %v585_v26, 7 }
  0xc3   : > { %1145 = vrot.lane.b32.xlu1 %v5276_v44, %s6626_s30  ;;  %1143 = vrot.lane.b32.xlu0 %v5250_v15, %s6626_s30 }
  0xc4   : > { %4637 = vmatmul.mubr.msk.bf16.vlgmr.msra.gmra.mxu0 %vm1507_vm14, %v1458_v12  ;;  %v843_v39 = vrot.slane %v841_v23, 1  ;;  %v590_v48 = vor.u32 %v588_v43, %v587_v41 }
  0xc5   : > { %v989_v27 = vpop.permute.xlu1 %988  ;;  %v987_v34 = vpop.permute.xlu0 %986 }
  0xc6   : > { %v1262_v6 = vsel %vm1256_vm8, %v1229_v63, %v987_v34  ;;  %v1264_v24 = vsel %vm1256_vm8, %v1231_v18, %v989_v27  ;;  %v839_v27 = vor.u32 %v838_v22, %v834_v7  ;;  %v673_v63 = vsel %vm5015_vm2, %v587_v41, 0 }
  0xc7   : > { %1177 = vrot.lane.b32.xlu1 %v820_v21, %s6627_s18  ;;  %1175 = vrot.lane.b32.xlu0 %v808_v52, %s6627_s18  ;;  %v853_v13 = vshll.u32 %v673_v63, 16 }
  0xc9   : > { %v1022_v36 = vpop.permute.xlu1 %1021  ;;  %v1020_v40 = vpop.permute.xlu0 %1019  ;;  %v855_v18 = vrot.slane %v853_v13, 1 }
  0xca   : > { %v1295_v14 = vsel %vm1289_vm9, %v1262_v6, %v1020_v40  ;;  %v1297_v28 = vsel %vm1289_vm9, %v1264_v24, %v1022_v36  ;;  %v595_v6 = vshll.u32 %v4766_v49, 16 }
  0xcb   : > { %1209 = vrot.lane.b32.xlu1 %v969_v35, %s4887_s26  ;;  %1207 = vrot.lane.b32.xlu0 %v966_v61, %s4887_s26 }
  0xcd   : > { %v1066_v42 = vpop.permute.xlu1 %1065  ;;  %v1064_v47 = vpop.permute.xlu0 %1063 }
  0xce   : > { %v1328_v4 = vsel %vm1322_vm10, %v1295_v14, %v1064_v47  ;;  %v1330_v37 = vsel %vm1322_vm10, %v1297_v28, %v1066_v42 }
  0xcf   : > { %891 = vrot.lane.b32.xlu1 %v820_v21, %s4881_s28  ;;  %889 = vrot.lane.b32.xlu0 %v808_v52, %s4881_s28 }
  0xd1   : > { %v1102_v51 = vpop.permute.xlu1 %1101  ;;  %v1100_v55 = vpop.permute.xlu0 %1099 }
  0xd2   : > { %v1361_v20 = vsel %vm1355_vm11, %v1328_v4, %v1100_v55  ;;  %v974_v55 = vrot.slane %v672_v9, 1 }
  0xd3   : > { %1004 = vrot.lane.b32.xlu1 %v969_v35, %s4880_s21  ;;  %1002 = vrot.lane.b32.xlu0 %v966_v61, %s4880_s21  ;;  %v832_v61 = vsel %vm676_vm4, %v827_v56, %v831_v57  ;;  %v5393_v56 = vsel %vm5015_vm2, 0, %v590_v48  ;;  %v592_v57 = vshrl.u32 %v4766_v49, 16 }
  0xd4   : > { %v975_v62 = vsel %vm933_vm3, %v973_v54, %v974_v55  ;;  %v846_v9 = vshrl.u32 %v5393_v56, 16  ;;  %v976_v24 = vrot.slane %v5393_v56, 1 }
  0xd5   : > { %v1134_v58 = vpop.permute.xlu1 %1133  ;;  %v1132_v52 = vpop.permute.xlu0 %1131  ;;  %v594_v1 = vrot.slane %v592_v57, 7 }
  0xd6   : > { %v1394_v12 = vsel %vm1388_vm12, %v1361_v20, %v1132_v52  ;;  %v848_v52 = vshll.u32 %v5393_v56, 16 }
  0xd7   : > { %1037 = vrot.lane.b32.xlu1 %v5325_v38, %s4882_s29  ;;  %1035 = vrot.lane.b32.xlu0 %v5276_v44, %s4882_s29 }
  0xd9   : > { %v1166_v8 = vpop.permute.xlu1 %1165  ;;  %v1164_v17 = vpop.permute.xlu0 %1163 }
  0xda   : > { %v1427_v33 = vsel %vm1421_vm13, %v1394_v12, %v1164_v17  ;;  %v597_v17 = vor.u32 %v595_v6, %v594_v1  ;;  %v977_v12 = vrot.slane %v673_v63, 1 }
  0xdb   : > { %1081 = vrot.lane.b32.xlu1 %v832_v61, %s6619_s12  ;;  %1079 = vrot.lane.b32.xlu0 %v820_v21, %s6619_s12  ;;  %v1363_v21 = vsel %vm1355_vm11, %v1330_v37, %v1102_v51  ;;  %v674_v37 = vsel %vm5015_vm2, %v594_v1, 0 }
  0xdc   : > { %v1396_v36 = vsel %vm1388_vm12, %v1363_v21, %v1134_v58  ;;  %v5408_v22 = vsel %vm5015_vm2, 0, %v597_v17  ;;  %v980_v17 = vrot.slane %v674_v37, 1 }
  0xdd   : > { %v5366_v25 = vpop.permute.xlu1 %877  ;;  %v1196_v34 = vpop.permute.xlu0 %1195  ;;  %v1429_v42 = vsel %vm1421_vm13, %v1396_v36, %v1166_v8  ;;  %v860_v28 = vshll.u32 %v5408_v22, 16 }
  0xde   : > { %v1460_v19 = vsel %vm1454_vm6, %v1427_v33, %v1196_v34  ;;  %v1233_v26 = vsel %vm1223_vm7, %v5102_v11, %v5366_v25  ;;  %v978_v11 = vsel %vm933_vm3, %v976_v24, %v977_v12  ;;  %v858_v25 = vshrl.u32 %v5408_v22, 16 }
  0xdf   : > { %1117 = vrot.lane.b32.xlu1 %v972_v30, %s4884_s11  ;;  %1115 = vrot.lane.b32.xlu0 %v969_v35, %s4884_s11  ;;  %v844_v35 = vsel %vm676_vm4, %v839_v27, %v843_v39  ;;  %v862_v43 = vrot.slane %v860_v28, 1 }
  0xe0   : > { %4640 = vmatprep.mubr.msk.bf16.mxu0 %vm1507_vm14, %v1460_v19  ;;  %v4767_v19 = vld [vmem:[%s5040_s27 + $0x78] sm:$0xff]   ;;  %s365_s27 = sand.u32 1, %s4866_s14  }
  0xe1   : > { %v5377_v40 = vpop.permute.xlu1 %879  ;;  %v1198_v31 = vpop.permute.xlu0 %1197  ;;  %v599_v49 = vshrl.u32 %v4767_v19, 16  ;;  %v602_v63 = vshll.u32 %v4767_v19, 16 }
  0xe2   : > { %v1462_v45 = vsel %vm1454_vm6, %v1429_v42, %v1198_v31  ;;  %v1235_v36 = vsel %vm1223_vm7, %v5126_v29, %v5377_v40  ;;  %v865_v42 = vshll.u32 %v674_v37, 16 }
  0xe3   : > { %1149 = vrot.lane.b32.xlu1 %v5339_v59, %s6626_s30  ;;  %1147 = vrot.lane.b32.xlu0 %v5325_v38, %s6626_s30 }
  0xe4   : > { %4641 = vmatmul.mubr.msk.bf16.gmra.mxu0 %vm1507_vm14, %v1462_v45 }
  0xe5   : > { %v993_v47 = vpop.permute.xlu1 %992  ;;  %v991_v50 = vpop.permute.xlu0 %990 }
  0xe6   : > { %v1266_v33 = vsel %vm1256_vm8, %v1233_v26, %v991_v50  ;;  %v1268_v31 = vsel %vm1256_vm8, %v1235_v36, %v993_v47  ;;  %v867_v47 = vrot.slane %v865_v42, 1 }
  0xe7   : > { %1181 = vrot.lane.b32.xlu1 %v844_v35, %s6627_s18  ;;  %1179 = vrot.lane.b32.xlu0 %v832_v61, %s6627_s18 }
  0xe9   : > { %v1026_v51 = vpop.permute.xlu1 %1025  ;;  %v1024_v58 = vpop.permute.xlu0 %1023 }
  0xea   : > { %v1299_v21 = vsel %vm1289_vm9, %v1266_v33, %v1024_v58  ;;  %v1301_v50 = vsel %vm1289_vm9, %v1268_v31, %v1026_v51 }
  0xeb   : > { %893 = vrot.lane.b32.xlu1 %v832_v61, %s4881_s28  ;;  %1211 = vrot.lane.b32.xlu0 %v972_v30, %s4887_s26  ;;  %v850_v61 = vrot.slane %v848_v52, 1  ;;  %v601_v52 = vrot.slane %v599_v49, 7 }
  0xed   : > { %v1070_v60 = vpop.permute.xlu1 %1069  ;;  %v1068_v8 = vpop.permute.xlu0 %1067  ;;  %v851_v7 = vor.u32 %v850_v61, %v846_v9  ;;  %v604_v9 = vor.u32 %v602_v63, %v601_v52  ;;  %v675_v24 = vsel %vm5015_vm2, %v601_v52, 0 }
  0xee   : > { %v1332_v39 = vsel %vm1322_vm10, %v1299_v21, %v1068_v8  ;;  %v1334_v57 = vsel %vm1322_vm10, %v1301_v50, %v1070_v60  ;;  %v1055_v33 = vshll.u32 %v675_v24, 16 }
  0xef   : > { %895 = vrot.lane.b32.xlu1 %v844_v35, %s4881_s28  ;;  %1213 = vrot.lane.b32.xlu0 %v975_v62, %s4887_s26 }
  0xf0   : > { %v1057_v19 = vrot.slane %v1055_v33, 1 }
  0xf1   : > { %v1106_v14 = vpop.permute.xlu1 %1105  ;;  %v1104_v4 = vpop.permute.xlu0 %1103 }
  0xf2   : > { %v1365_v41 = vsel %vm1355_vm11, %v1332_v39, %v1104_v4  ;;  %v1367_v40 = vsel %vm1355_vm11, %v1334_v57, %v1106_v14  ;;  %v979_v14 = vrot.slane %v5408_v22, 1  ;;  %v658_v4 = vsel %vm5015_vm2, 0, %v604_v9 }
  0xf3   : > { %1008 = vrot.lane.b32.xlu1 %v975_v62, %s4880_s21  ;;  %1006 = vrot.lane.b32.xlu0 %v972_v30, %s4880_s21  ;;  %v856_v30 = vsel %vm676_vm4, %v851_v7, %v855_v18  ;;  %v1050_v18 = vshll.u32 %v658_v4, 16  ;;  %v1048_v26 = vshrl.u32 %v658_v4, 16  ;;  %v1092_v36 = vrot.slane %v658_v4, 1 }
  0xf5   : > { %v1138_v20 = vpop.permute.xlu1 %1137  ;;  %v1136_v23 = vpop.permute.xlu0 %1135  ;;  %v1052_v28 = vrot.slane %v1050_v18, 1 }
  0xf6   : > { %v1398_v45 = vsel %vm1388_vm12, %v1365_v41, %v1136_v23  ;;  %v1400_v58 = vsel %vm1388_vm12, %v1367_v40, %v1138_v20  ;;  %v981_v23 = vsel %vm933_vm3, %v979_v14, %v980_v17  ;;  %v1093_v41 = vrot.slane %v675_v24, 1 }
  0xf7   : > { %1041 = vrot.lane.b32.xlu1 %v5393_v56, %s4882_s29  ;;  %1039 = vrot.lane.b32.xlu0 %v5339_v59, %s4882_s29 }
  0xf8   : > { %v1094_v49 = vsel %vm933_vm3, %v1092_v36, %v1093_v41 }
  0xf9   : > { %v1170_v34 = vpop.permute.xlu1 %1169  ;;  %v1168_v27 = vpop.permute.xlu0 %1167 }
  0xfa   : > { %v1431_v54 = vsel %vm1421_vm13, %v1398_v45, %v1168_v27  ;;  %v1433_v1 = vsel %vm1421_vm13, %v1400_v58, %v1170_v34 }
  0xfb   : > { %1085 = vrot.lane.b32.xlu1 %v856_v30, %s6619_s12  ;;  %1083 = vrot.lane.b32.xlu0 %v844_v35, %s6619_s12  ;;  %v863_v35 = vor.u32 %v862_v43, %v858_v25 }
  0xfd   : > { %v882_v48 = vpop.permute.xlu1 %881  ;;  %v1200_v55 = vpop.permute.xlu0 %1199 }
  0xfe   : > { %v1464_v29 = vsel %vm1454_vm6, %v1431_v54, %v1200_v55  ;;  %v1237_v39 = vsel %vm1223_vm7, %v5157_v53, %v882_v48 }
  0xff   : > { %1121 = vrot.lane.b32.xlu1 %v978_v11, %s4884_s11  ;;  %1119 = vrot.lane.b32.xlu0 %v975_v62, %s4884_s11  ;;  %v868_v62 = vsel %vm676_vm4, %v863_v35, %v867_v47 }
 0x100   : > { %4644 = vmatprep.mubr.msk.bf16.mxu0 %vm1507_vm14, %v1464_v29 }
 0x101   : > { %v884_v51 = vpop.permute.xlu1 %883  ;;  %v1202_v60 = vpop.permute.xlu0 %1201 }
 0x102   : > { %v1466_v6 = vsel %vm1454_vm6, %v1433_v1, %v1202_v60  ;;  %v1239_v53 = vsel %vm1223_vm7, %v5172_v5, %v884_v51 }
 0x103   : > { %1153 = vrot.lane.b32.xlu1 %v5408_v22, %s6626_s30  ;;  %1151 = vrot.lane.b32.xlu0 %v5393_v56, %s6626_s30 }
 0x104   : > { %4645 = vmatmul.mubr.msk.bf16.gmra.mxu0 %vm1507_vm14, %v1466_v6 }
 0x105   : > { %v997_v8 = vpop.permute.xlu1 %996  ;;  %v995_v61 = vpop.permute.xlu0 %994 }
 0x106   : > { %v1270_v43 = vsel %vm1256_vm8, %v1237_v39, %v995_v61  ;;  %v1272_v50 = vsel %vm1256_vm8, %v1239_v53, %v997_v8 }
 0x107   : > { %1185 = vrot.lane.b32.xlu1 %v868_v62, %s6627_s18  ;;  %1183 = vrot.lane.b32.xlu0 %v856_v30, %s6627_s18 }
 0x109   : > { %v1030_v13 = vpop.permute.xlu1 %1029  ;;  %v1028_v7 = vpop.permute.xlu0 %1027 }
 0x10a   : > { %v1305_v57 = vsel %vm1289_vm9, %v1272_v50, %v1030_v13 }
 0x10b   : > { %897 = vrot.lane.b32.xlu1 %v856_v30, %s4881_s28  ;;  %1215 = vrot.lane.b32.xlu0 %v978_v11, %s4887_s26  ;;  %v1053_v30 = vor.u32 %v1052_v28, %v1048_v26 }
 0x10d   : > { %v1074_v20 = vpop.permute.xlu1 %1073  ;;  %v1072_v12 = vpop.permute.xlu0 %1071  ;;  %v1058_v25 = vsel %vm676_vm4, %v1053_v30, %v1057_v19 }
 0x10e   : > { %v1338_v35 = vsel %vm1322_vm10, %v1305_v57, %v1074_v20 }
 0x10f   : > { %899 = vrot.lane.b32.xlu1 %v868_v62, %s4881_s28  ;;  %1217 = vrot.lane.b32.xlu0 %v981_v23, %s4887_s26  ;;  %s4518_s28 = sshll.u32 %s365_s27, 5 }
 0x111   : > { %v1110_v34 = vpop.permute.xlu1 %1109  ;;  %v1108_v37 = vpop.permute.xlu0 %1107 }
 0x112   : > { %v1371_v47 = vsel %vm1355_vm11, %v1338_v35, %v1110_v34 }
 0x113   : > { %1012 = vrot.lane.b32.xlu1 %v981_v23, %s4880_s21  ;;  %1010 = vrot.lane.b32.xlu0 %v978_v11, %s4880_s21  ;;  %v1303_v11 = vsel %vm1289_vm9, %v1270_v43, %v1028_v7  ;;  %s4891_s21 = smov [#allocation5]  }
 0x114   : > { %v1336_v45 = vsel %vm1322_vm10, %v1303_v11, %v1072_v12 }
 0x115   : > { %v1142_v21 = vpop.permute.xlu1 %1141  ;;  %v1140_v27 = vpop.permute.xlu0 %1139  ;;  %v1369_v48 = vsel %vm1355_vm11, %v1336_v45, %v1108_v37 }
 0x116   : > { %v1402_v54 = vsel %vm1388_vm12, %v1369_v48, %v1140_v27  ;;  %v1404_v58 = vsel %vm1388_vm12, %v1371_v47, %v1142_v21 }
 0x117   : > { %1045 = vrot.lane.b32.xlu1 %v658_v4, %s4882_s29  ;;  %1043 = vrot.lane.b32.xlu0 %v5408_v22, %s4882_s29 }
 0x119   : > { %v1174_v42 = vpop.permute.xlu1 %1173  ;;  %v1172_v31 = vpop.permute.xlu0 %1171 }
 0x11a   : > { %v1435_v29 = vsel %vm1421_vm13, %v1402_v54, %v1172_v31  ;;  %v1437_v52 = vsel %vm1421_vm13, %v1404_v58, %v1174_v42 }
 0x11b   : > { %1089 = vrot.lane.b32.xlu1 %v1058_v25, %s6619_s12  ;;  %1087 = vrot.lane.b32.xlu0 %v868_v62, %s6619_s12 }
 0x11d   : > { %v886_v55 = vpop.permute.xlu1 %885  ;;  %v1204_v40 = vpop.permute.xlu0 %1203 }
 0x11e   : > { %v1468_v5 = vsel %vm1454_vm6, %v1435_v29, %v1204_v40  ;;  %v1241_v18 = vsel %vm1223_vm7, %v5201_v32, %v886_v55 }
 0x11f   : > { %1125 = vrot.lane.b32.xlu1 %v1094_v49, %s4884_s11  ;;  %1123 = vrot.lane.b32.xlu0 %v981_v23, %s4884_s11  ;;  %s4888_s11 = smov 64  }
 0x120   : > { %4648 = vmatprep.mubr.msk.bf16.mxu0 %vm1507_vm14, %v1468_v5 }
 0x121   : > { %v888_v51 = vpop.permute.xlu1 %887  ;;  %v1206_v63 = vpop.permute.xlu0 %1205 }
 0x122   : > { %v1470_v1 = vsel %vm1454_vm6, %v1437_v52, %v1206_v63  ;;  %v1243_v7 = vsel %vm1223_vm7, %v5216_v46, %v888_v51 }
 0x123   : > { %1157 = vrot.lane.b32.xlu1 %v5024_v3, %s6626_s30  ;;  %1155 = vrot.lane.b32.xlu0 %v658_v4, %s6626_s30 }
 0x124   : > { %4649 = vmatmul.mubr.msk.bf16.gmra.mxu0 %vm1507_vm14, %v1470_v1 }
 0x125   : > { %v1001_v60 = vpop.permute.xlu1 %1000  ;;  %v999_v6 = vpop.permute.xlu0 %998 }
 0x126   : > { %v1276_v20 = vsel %vm1256_vm8, %v1243_v7, %v1001_v60  ;;  %v1274_v23 = vsel %vm1256_vm8, %v1241_v18, %v999_v6 }
 0x127   : > { %1189 = vrot.lane.b32.xlu1 %v5045_v16, %s6627_s18  ;;  %1187 = vrot.lane.b32.xlu0 %v1058_v25, %s6627_s18  ;;  %s6546_s18 = scalar_lea.sflag [#allocation4], %s365_s27 }
 0x129   : > { %v1034_v62 = vpop.permute.xlu1 %1033  ;;  %v1032_v8 = vpop.permute.xlu0 %1031 }
 0x12a   : > { %v1309_v24 = vsel %vm1289_vm9, %v1276_v20, %v1034_v62  ;;  %v1307_v26 = vsel %vm1289_vm9, %v1274_v23, %v1032_v8 }
 0x12b   : > { %1221 = vrot.lane.b32.xlu1 %v5033_v10, %s4887_s26  ;;  %1219 = vrot.lane.b32.xlu0 %v1094_v49, %s4887_s26 }
 0x12d   : > { %v1078_v9 = vpop.permute.xlu1 %1077  ;;  %v1076_v61 = vpop.permute.xlu0 %1075 }
 0x12e   : > { %v1342_v28 = vsel %vm1322_vm10, %v1309_v24, %v1078_v9  ;;  %v1340_v34 = vsel %vm1322_vm10, %v1307_v26, %v1076_v61 }
 0x131   : > { %v1114_v13 = vpop.permute.xlu1 %1113  ;;  %v1112_v14 = vpop.permute.xlu0 %1111 }
 0x132   : > { %v1375_v37 = vsel %vm1355_vm11, %v1342_v28, %v1114_v13  ;;  %v1373_v46 = vsel %vm1355_vm11, %v1340_v34, %v1112_v14 }
 0x135   : > { %v1146_v17 = vpop.permute.xlu1 %1145  ;;  %v1144_v4 = vpop.permute.xlu0 %1143 }
 0x136   : > { %v1408_v32 = vsel %vm1388_vm12, %v1375_v37, %v1146_v17  ;;  %v1406_v30 = vsel %vm1388_vm12, %v1373_v46, %v1144_v4 }
 0x139   : > { %v1178_v12 = vpop.permute.xlu1 %1177  ;;  %v1176_v33 = vpop.permute.xlu0 %1175 }
 0x13a   : > { %v1441_v19 = vsel %vm1421_vm13, %v1408_v32, %v1178_v12  ;;  %v1439_v27 = vsel %vm1421_vm13, %v1406_v30, %v1176_v33 }
 0x13d   : > { %v1210_v21 = vpop.permute.xlu1 %1209  ;;  %v1208_v25 = vpop.permute.xlu0 %1207 }
 0x13e   : > { %v1474_v39 = vsel %vm1454_vm6, %v1441_v19, %v1210_v21  ;;  %v1472_v36 = vsel %vm1454_vm6, %v1439_v27, %v1208_v25 }
 0x13f   : > { %4652 = vmatprep.mubr.msk.bf16.mxu0 %vm1507_vm14, %v1472_v36 }
 0x140   : > { %4653 = vmatmul.mubr.msk.bf16.gmra.mxu0 %vm1507_vm14, %v1474_v39 }
 0x141   : > { %v892_v41 = vpop.permute.xlu1 %891  ;;  %v890_v43 = vpop.permute.xlu0 %889 }
 0x142   : > { %v1245_v57 = vsel %vm1223_vm7, %v5250_v15, %v890_v43  ;;  %v1247_v58 = vsel %vm1223_vm7, %v5276_v44, %v892_v41 }
 0x145   : > { %v1005_v42 = vpop.permute.xlu1 %1004  ;;  %v1003_v11 = vpop.permute.xlu0 %1002 }
 0x146   : > { %v1278_v29 = vsel %vm1256_vm8, %v1245_v57, %v1003_v11  ;;  %v1280_v52 = vsel %vm1256_vm8, %v1247_v58, %v1005_v42 }
 0x149   : > { %v1038_v31 = vpop.permute.xlu1 %1037  ;;  %v1036_v45 = vpop.permute.xlu0 %1035 }
 0x14a   : > { %v1311_v35 = vsel %vm1289_vm9, %v1278_v29, %v1036_v45  ;;  %v1313_v15 = vsel %vm1289_vm9, %v1280_v52, %v1038_v31  ;;  %v5574_v29 = vld [vmem:[%s6590_s3] ss:$0 sm:$0xff] }
 0x14d   : > { %v1082_v53 = vpop.permute.xlu1 %1081  ;;  %v1080_v48 = vpop.permute.xlu0 %1079 }
 0x14e   : > { %v1344_v47 = vsel %vm1322_vm10, %v1311_v35, %v1080_v48  ;;  %v1346_v62 = vsel %vm1322_vm10, %v1313_v15, %v1082_v53 }
 0x151   : > { %v1118_v49 = vpop.permute.xlu1 %1117  ;;  %v1116_v50 = vpop.permute.xlu0 %1115 }
 0x152   : > { %v1377_v51 = vsel %vm1355_vm11, %v1344_v47, %v1116_v50  ;;  %v1379_v9 = vsel %vm1355_vm11, %v1346_v62, %v1118_v49  ;;  %v5566_v49 = vld [vmem:[%s6589_s2] ss:$0 sm:$0xff] }
 0x155   : > { %v1150_v54 = vpop.permute.xlu1 %1149  ;;  %v1148_v55 = vpop.permute.xlu0 %1147 }
 0x156   : > { %v1410_v63 = vsel %vm1388_vm12, %v1377_v51, %v1148_v55  ;;  %v1412_v44 = vsel %vm1388_vm12, %v1379_v9, %v1150_v54 }
 0x159   : > { %v1182_v40 = vpop.permute.xlu1 %1181  ;;  %v1180_v5 = vpop.permute.xlu0 %1179 }
 0x15a   : > { %v1443_v60 = vsel %vm1421_vm13, %v1410_v63, %v1180_v5  ;;  %v1445_v13 = vsel %vm1421_vm13, %v1412_v44, %v1182_v40 }
 0x15d   : > { %v894_v1 = vpop.permute.xlu1 %893  ;;  %v1212_v6 = vpop.permute.xlu0 %1211 }
 0x15e   : > { %v1476_v8 = vsel %vm1454_vm6, %v1443_v60, %v1212_v6  ;;  %v1249_v34 = vsel %vm1223_vm7, %v5325_v38, %v894_v1 }
 0x15f   : > { %4656 = vmatprep.mubr.msk.bf16.mxu0 %vm1507_vm14, %v1476_v8 }
 0x161   : > { %v896_v61 = vpop.permute.xlu1 %895  ;;  %v1214_v14 = vpop.permute.xlu0 %1213 }
 0x162   : > { %v1478_v17 = vsel %vm1454_vm6, %v1445_v13, %v1214_v14  ;;  %v1251_v21 = vsel %vm1223_vm7, %v5339_v59, %v896_v61 }
 0x163   : > { %4657 = vmatmul.mubr.msk.bf16.gmra.mxu0 %vm1507_vm14, %v1478_v17 }
 0x165   : > { %v1009_v4 = vpop.permute.xlu1 %1008  ;;  %v1007_v7 = vpop.permute.xlu0 %1006 }
 0x166   : > { %v1282_v37 = vsel %vm1256_vm8, %v1249_v34, %v1007_v7  ;;  %v1284_v39 = vsel %vm1256_vm8, %v1251_v21, %v1009_v4 }
 0x169   : > { %v1042_v18 = vpop.permute.xlu1 %1041  ;;  %v1040_v20 = vpop.permute.xlu0 %1039 }
 0x16a   : > { %v1315_v32 = vsel %vm1289_vm9, %v1282_v37, %v1040_v20  ;;  %v1317_v38 = vsel %vm1289_vm9, %v1284_v39, %v1042_v18 }
 0x16d   : > { %v1086_v23 = vpop.permute.xlu1 %1085  ;;  %v1084_v24 = vpop.permute.xlu0 %1083 }
 0x16e   : > { %v1348_v19 = vsel %vm1322_vm10, %v1315_v32, %v1084_v24  ;;  %v1350_v42 = vsel %vm1322_vm10, %v1317_v38, %v1086_v23 }
 0x171   : > { %v1122_v12 = vpop.permute.xlu1 %1121  ;;  %v1120_v26 = vpop.permute.xlu0 %1119 }
 0x172   : > { %v1381_v27 = vsel %vm1355_vm11, %v1348_v19, %v1120_v26  ;;  %v1383_v31 = vsel %vm1355_vm11, %v1350_v42, %v1122_v12 }
 0x175   : > { %v1154_v28 = vpop.permute.xlu1 %1153  ;;  %v1152_v33 = vpop.permute.xlu0 %1151 }
 0x176   : > { %v1414_v25 = vsel %vm1388_vm12, %v1381_v27, %v1152_v33  ;;  %v1416_v59 = vsel %vm1388_vm12, %v1383_v31, %v1154_v28 }
 0x179   : > { %v1186_v46 = vpop.permute.xlu1 %1185  ;;  %v1184_v30 = vpop.permute.xlu0 %1183 }
 0x17a   : > { %v1447_v41 = vsel %vm1421_vm13, %v1414_v25, %v1184_v30  ;;  %v1449_v53 = vsel %vm1421_vm13, %v1416_v59, %v1186_v46 }
 0x17d   : > { %v898_v36 = vpop.permute.xlu1 %897  ;;  %v1216_v43 = vpop.permute.xlu0 %1215 }
 0x17e   : > { %v1480_v11 = vsel %vm1454_vm6, %v1447_v41, %v1216_v43  ;;  %v1253_v46 = vsel %vm1223_vm7, %v5393_v56, %v898_v36 }
 0x17f   : > { %4660 = vmatprep.mubr.msk.bf16.mxu0 %vm1507_vm14, %v1480_v11 }
 0x181   : > { %v900_v45 = vpop.permute.xlu1 %899  ;;  %v1218_v48 = vpop.permute.xlu0 %1217 }
 0x182   : > { %v1482_v50 = vsel %vm1454_vm6, %v1449_v53, %v1218_v48  ;;  %v1255_v34 = vsel %vm1223_vm7, %v5408_v22, %v900_v45 }
 0x183   : > { %4661 = vmatmul.mubr.msk.bf16.gmra.mxu0 %vm1507_vm14, %v1482_v50 }
 0x184   : > { %v4638_v54 = vpop.f32.mrf.mxu0 }
 0x185   : > { %v1714_v55 = vmul.f32 %v4638_v54, %v5566_v49  ;;  %v1013_v57 = vpop.permute.xlu1 %1012  ;;  %v1011_v35 = vpop.permute.xlu0 %1010 }
 0x186   : > { %v1578_v40 = vpop.f32.mrf.mxu0  ;;  %v1288_v32 = vsel %vm1256_vm8, %v1255_v34, %v1013_v57  ;;  %v1286_v21 = vsel %vm1256_vm8, %v1253_v46, %v1011_v35 }
 0x187   : > { %v1712_v5 = vmul.f32 %v5566_v49, %v1578_v40  ;;  %v1753_v58 = vadd.f32 %v5574_v29, %v1714_v55 }
 0x188   : > { %v4639_v47 = vpop.f32.mrf.mxu0 }
 0x189   : > { %v1715_v51 = vmul.f32 %v4639_v47, %v5566_v49  ;;  %v1046_v52 = vpop.permute.xlu1 %1045  ;;  %v1044_v1 = vpop.permute.xlu0 %1043  ;;  %v1751_v15 = vadd.f32 %v5574_v29, %v1712_v5  ;;  %v1785_v62 = vmax.f32 %v1753_v58, 0.0 }
 0x18a   : > { %v1581_v63 = vpop.f32.mrf.mxu0  ;;  %v1321_v27 = vsel %vm1289_vm9, %v1288_v32, %v1046_v52  ;;  %v1319_v22 = vsel %vm1289_vm9, %v1286_v21, %v1044_v1 }
 0x18b   : > { %v1754_v60 = vadd.f32 %v5574_v29, %v1715_v51  ;;  %v1713_v6 = vmul.f32 %v5566_v49, %v1581_v63  ;;  %v1783_v13 = vmax.f32 %v1751_v15, 0.0 }
 0x18d   : > { %v1786_v8 = vmax.f32 %v1754_v60, 0.0  ;;  %v1752_v9 = vadd.f32 %v5574_v29, %v1713_v6  ;;  %v1090_v44 = vpop.permute.xlu1 %1089  ;;  %v1088_v61 = vpop.permute.xlu0 %1087 }
 0x18e   : > { %v1354_v25 = vsel %vm1322_vm10, %v1321_v27, %v1090_v44  ;;  %v1352_v56 = vsel %vm1322_vm10, %v1319_v22, %v1088_v61 }
 0x18f   : > { %v1816_v14 = vpack.c.bf16 %v1786_v8, %v1785_v62  ;;  %v1784_v17 = vmax.f32 %v1752_v9, 0.0 }
 0x191   : > { %v1839_v4 = vshrl.u32 %v1816_v14, 16  ;;  %v5583_v7 = vpack.c.bf16 %v1784_v17, %v1783_v13  ;;  %v1126_v18 = vpop.permute.xlu1 %1125  ;;  %v1124_v20 = vpop.permute.xlu0 %1123  ;;  %v1842_v24 = vshll.u32 %v1816_v14, 16 }
 0x192   : > { %v1387_v36 = vsel %vm1355_vm11, %v1354_v25, %v1126_v18  ;;  %v1385_v42 = vsel %vm1355_vm11, %v1352_v56, %v1124_v20 }
 0x193   : > { %v1841_v23 = vrot.slane %v1839_v4, 7 }
 0x195   : > { %v1844_v12 = vor.u32 %v1842_v24, %v1841_v23  ;;  %v1158_v26 = vpop.permute.xlu1 %1157  ;;  %v5587_v28 = vsel %vm5015_vm2, %v1841_v23, 0  ;;  %v1156_v33 = vpop.permute.xlu0 %1155 }
 0x196   : > { %v2027_v19 = vshll.u32 %v5587_v28, 16  ;;  %v1420_v11 = vsel %vm1388_vm12, %v1387_v36, %v1158_v26  ;;  %v1418_v45 = vsel %vm1388_vm12, %v1385_v42, %v1156_v33 }
 0x197   : > { %v5593_v37 = vsel %vm5015_vm2, 0, %v1844_v12 }
 0x198   : > { %6628 = vst [vmem:[#allocation9_spill] sm:$0xff] %v5593_v37  ;;  %v2022_v30 = vshll.u32 %v5593_v37, 16  ;;  %v2020_v41 = vshrl.u32 %v5593_v37, 16  ;;  %v2029_v59 = vrot.slane %v2027_v19, 1 }
 0x199   : > { %v1190_v39 = vpop.permute.xlu1 %1189  ;;  %v1188_v38 = vpop.permute.xlu0 %1187 }
 0x19a   : > { %v2024_v43 = vrot.slane %v2022_v30, 1  ;;  %v1453_v53 = vsel %vm1421_vm13, %v1420_v11, %v1190_v39  ;;  %v1451_v50 = vsel %vm1421_vm13, %v1418_v45, %v1188_v38 }
 0x19c   : > { %v2025_v31 = vor.u32 %v2024_v43, %v2020_v41 }
 0x19d   : > { %v1222_v48 = vpop.permute.xlu1 %1221  ;;  %v1220_v55 = vpop.permute.xlu0 %1219 }
 0x19e   : > { %v1486_v54 = vsel %vm1454_vm6, %v1453_v53, %v1222_v48  ;;  %v5614_v57 = vsel %vm676_vm4, %v2025_v31, %v2029_v59  ;;  %v1484_v40 = vsel %vm1454_vm6, %v1451_v50, %v1220_v55 }
 0x19f   : > { %6629 = vst [vmem:[#allocation10_spill] sm:$0xff] %v5614_v57  ;;  %2191 = vrot.lane.b32.xlu1 %v5614_v57, %s4887_s26  ;;  %4664 = vmatprep.mubr.msk.bf16.mxu0 %vm1507_vm14, %v1484_v40 }
 0x1a0   : > { %4665 = vmatmul.mubr.msk.bf16.gmra.mxu0 %vm1507_vm14, %v1486_v54 }
 0x1a4   : > { %v4642_v35 = vpop.f32.mrf.mxu0 }
 0x1a5   : > { %v1718_v5 = vmul.f32 %v4642_v35, %v5566_v49 }
 0x1a6   : > { %v1594_v47 = vpop.f32.mrf.mxu0 }
 0x1a7   : > { %v1716_v58 = vmul.f32 %v5566_v49, %v1594_v47  ;;  %v1757_v52 = vadd.f32 %v5574_v29, %v1718_v5 }
 0x1a8   : > { %v4643_v51 = vpop.f32.mrf.mxu0 }
 0x1a9   : > { %v1719_v63 = vmul.f32 %v4643_v51, %v5566_v49  ;;  %v1755_v15 = vadd.f32 %v5574_v29, %v1716_v58  ;;  %v1789_v62 = vmax.f32 %v1757_v52, 0.0 }
 0x1aa   : > { %v1597_v1 = vpop.f32.mrf.mxu0 }
 0x1ab   : > { %v1758_v60 = vadd.f32 %v5574_v29, %v1719_v63  ;;  %v1717_v6 = vmul.f32 %v5566_v49, %v1597_v1  ;;  %v1787_v44 = vmax.f32 %v1755_v15, 0.0 }
 0x1ad   : > { %v1790_v8 = vmax.f32 %v1758_v60, 0.0  ;;  %v1756_v9 = vadd.f32 %v5574_v29, %v1717_v6 }
 0x1af   : > { %v1818_v61 = vpack.c.bf16 %v1790_v8, %v1789_v62  ;;  %v1788_v13 = vmax.f32 %v1756_v9, 0.0 }
 0x1b1   : > { %v1853_v14 = vshrl.u32 %v1818_v61, 16  ;;  %v1817_v17 = vpack.c.bf16 %v1788_v13, %v1787_v44  ;;  %v1856_v18 = vshll.u32 %v1818_v61, 16 }
 0x1b3   : > { %v1855_v4 = vrot.slane %v1853_v14, 7  ;;  %v1846_v20 = vshrl.u32 %v1817_v17, 16  ;;  %v1849_v12 = vshll.u32 %v1817_v17, 16 }
 0x1b5   : > { %v1858_v23 = vor.u32 %v1856_v18, %v1855_v4  ;;  %v1848_v24 = vrot.slane %v1846_v20, 7  ;;  %v1994_v26 = vsel %vm5015_vm2, %v1855_v4, 0 }
 0x1b6   : > { %v2259_v32 = vrot.slane %v1994_v26, 1  ;;  %v2051_v41 = vshll.u32 %v1994_v26, 16 }
 0x1b7   : > { %v1851_v33 = vor.u32 %v1849_v12, %v1848_v24  ;;  %v5633_v34 = vsel %vm5015_vm2, 0, %v1858_v23  ;;  %v1993_v27 = vsel %vm5015_vm2, %v1848_v24, 0 }
 0x1b8   : > { %2411 = vrot.lane.b32.xlu0 %v5633_v34, %s4888_s11  ;;  %2333 = vrot.lane.b32.xlu1 %v5633_v34, %s4889_s20  ;;  %v2258_v46 = vrot.slane %v5633_v34, 1  ;;  %v2046_v30 = vshll.u32 %v5633_v34, 16  ;;  %v2256_v25 = vrot.slane %v1993_v27, 1  ;;  %v2044_v38 = vshrl.u32 %v5633_v34, 16 }
 0x1b9   : > { %v5643_v19 = vsel %vm5015_vm2, 0, %v1851_v33  ;;  %v2053_v36 = vrot.slane %v2051_v41, 1  ;;  %v2039_v44 = vshll.u32 %v1993_v27, 16 }
 0x1ba   : > { %6630 = vst [vmem:[#allocation11_spill] sm:$0xff] %v5643_v19  ;;  %v5646_v21 = vsel %vm933_vm3, %v2258_v46, %v2259_v32  ;;  %v2255_v39 = vrot.slane %v5643_v19, 1  ;;  %v2048_v22 = vrot.slane %v2046_v30, 1  ;;  %v2034_v1 = vshll.u32 %v5643_v19, 16 }
 0x1bb   : > { %v2032_v17 = vshrl.u32 %v5643_v19, 16  ;;  %v2041_v23 = vrot.slane %v2039_v44, 1 }
 0x1bc   : > { %2381 = vrot.lane.b32.xlu0 %v5646_v21, %s4887_s26  ;;  %2302 = vrot.lane.b32.xlu1 %v5646_v21, %s4888_s11  ;;  %v5657_v43 = vsel %vm933_vm3, %v2255_v39, %v2256_v25  ;;  %v2049_v56 = vor.u32 %v2048_v22, %v2044_v38  ;;  %v2036_v9 = vrot.slane %v2034_v1, 1 }
 0x1be   : > { %v5664_v42 = vsel %vm676_vm4, %v2049_v56, %v2053_v36  ;;  %v2037_v20 = vor.u32 %v2036_v9, %v2032_v17 }
 0x1c0   : > { %2300 = vrot.lane.b32.xlu1 %v5657_v43, %s4888_s11  ;;  %2379 = vrot.lane.b32.xlu0 %v5657_v43, %s4887_s26  ;;  %v5689_v12 = vsel %vm676_vm4, %v2037_v20, %v2041_v23 }
 0x1c1   : > { %6631 = vst [vmem:[#allocation12_spill] sm:$0xff] %v5689_v12 }
 0x1c4   : > { %2195 = vrot.lane.b32.xlu1 %v5664_v42, %s4887_s26  ;;  %v4646_v11 = vpop.f32.mrf.mxu0 }
 0x1c5   : > { %v1722_v31 = vmul.f32 %v4646_v11, %v5566_v49 }
 0x1c6   : > { %v1610_v59 = vpop.f32.mrf.mxu0 }
 0x1c7   : > { %v1720_v45 = vmul.f32 %v5566_v49, %v1610_v59  ;;  %v1761_v48 = vadd.f32 %v5574_v29, %v1722_v31 }
 0x1c8   : > { %v4647_v53 = vpop.f32.mrf.mxu0 }
 0x1c9   : > { %v1723_v50 = vmul.f32 %v4647_v53, %v5566_v49  ;;  %v1759_v55 = vadd.f32 %v5574_v29, %v1720_v45  ;;  %v1793_v5 = vmax.f32 %v1761_v48, 0.0 }
 0x1ca   : > { %v1613_v54 = vpop.f32.mrf.mxu0 }
 0x1cb   : > { %v1762_v40 = vadd.f32 %v5574_v29, %v1723_v50  ;;  %v1721_v35 = vmul.f32 %v5566_v49, %v1613_v54  ;;  %v1791_v51 = vmax.f32 %v1759_v55, 0.0 }
 0x1cd   : > { %v1794_v47 = vmax.f32 %v1762_v40, 0.0  ;;  %v1760_v58 = vadd.f32 %v5574_v29, %v1721_v35 }
 0x1cf   : > { %v1820_v52 = vpack.c.bf16 %v1794_v47, %v1793_v5  ;;  %v1792_v63 = vmax.f32 %v1760_v58, 0.0 }
 0x1d1   : > { %v1867_v15 = vshrl.u32 %v1820_v52, 16  ;;  %v1819_v60 = vpack.c.bf16 %v1792_v63, %v1791_v51  ;;  %v1870_v62 = vshll.u32 %v1820_v52, 16 }
 0x1d3   : > { %v1869_v6 = vrot.slane %v1867_v15, 7  ;;  %v1860_v8 = vshrl.u32 %v1819_v60, 16  ;;  %v1863_v14 = vshll.u32 %v1819_v60, 16 }
 0x1d5   : > { %v1872_v61 = vor.u32 %v1870_v62, %v1869_v6  ;;  %v1862_v13 = vrot.slane %v1860_v8, 7  ;;  %v1996_v24 = vsel %vm5015_vm2, %v1869_v6, 0 }
 0x1d6   : > { %v2265_v32 = vrot.slane %v1996_v24, 1  ;;  %v2075_v41 = vshll.u32 %v1996_v24, 16 }
 0x1d7   : > { %v1865_v4 = vor.u32 %v1863_v14, %v1862_v13  ;;  %v5680_v18 = vsel %vm5015_vm2, 0, %v1872_v61  ;;  %v1995_v30 = vsel %vm5015_vm2, %v1862_v13, 0 }
 0x1d8   : > { %2415 = vrot.lane.b32.xlu0 %v5680_v18, %s4888_s11  ;;  %2337 = vrot.lane.b32.xlu1 %v5680_v18, %s4889_s20  ;;  %v2264_v33 = vrot.slane %v5680_v18, 1  ;;  %v2070_v46 = vshll.u32 %v5680_v18, 16  ;;  %v2262_v25 = vrot.slane %v1995_v30, 1  ;;  %v2068_v38 = vshrl.u32 %v5680_v18, 16 }
 0x1d9   : > { %v5693_v26 = vsel %vm5015_vm2, 0, %v1865_v4  ;;  %v2077_v59 = vrot.slane %v2075_v41, 1  ;;  %v2063_v13 = vshll.u32 %v1995_v30, 16 }
 0x1da   : > { %v5704_v27 = vsel %vm933_vm3, %v2264_v33, %v2265_v32  ;;  %v2261_v39 = vrot.slane %v5693_v26, 1  ;;  %v2072_v22 = vrot.slane %v2070_v46, 1  ;;  %v2058_v60 = vshll.u32 %v5693_v26, 16 }
 0x1db   : > { %v2056_v20 = vshrl.u32 %v5693_v26, 16  ;;  %v1832_v46 = vshrl.u32 %v5583_v7, 16  ;;  %v2065_v32 = vrot.slane %v2063_v13, 1 }
 0x1dc   : > { %2193 = vrot.lane.b32.xlu1 %v5689_v12, %s4887_s26  ;;  %2413 = vrot.lane.b32.xlu0 %v5693_v26, %s4888_s11  ;;  %v5713_v56 = vsel %vm933_vm3, %v2261_v39, %v2262_v25  ;;  %v2073_v36 = vor.u32 %v2072_v22, %v2068_v38  ;;  %v2060_v61 = vrot.slane %v2058_v60, 1  ;;  %v1835_v38 = vshll.u32 %v5583_v7, 16 }
 0x1dd   : > { %v1834_v25 = vrot.slane %v1832_v46, 7  ;;  %v2253_v46 = vrot.slane %v5587_v28, 1 }
 0x1de   : > { %v5722_v48 = vsel %vm676_vm4, %v2073_v36, %v2077_v59  ;;  %v2061_v33 = vor.u32 %v2060_v61, %v2056_v20 }
 0x1e0   : > { %2385 = vrot.lane.b32.xlu0 %v5704_v27, %s4887_s26  ;;  %2335 = vrot.lane.b32.xlu1 %v5693_v26, %s4889_s20  ;;  %v5752_v39 = vsel %vm676_vm4, %v2061_v33, %v2065_v32 }
 0x1e4   : > { %2306 = vrot.lane.b32.xlu1 %v5704_v27, %s4888_s11  ;;  %2383 = vrot.lane.b32.xlu0 %v5713_v56, %s4887_s26  ;;  %v4650_v11 = vpop.f32.mrf.mxu0 }
 0x1e5   : > { %v1726_v31 = vmul.f32 %v4650_v11, %v5566_v49 }
 0x1e6   : > { %v1626_v45 = vpop.f32.mrf.mxu0 }
 0x1e7   : > { %v1724_v53 = vmul.f32 %v5566_v49, %v1626_v45  ;;  %v1765_v54 = vadd.f32 %v5574_v29, %v1726_v31 }
 0x1e8   : > { %2447 = vrot.lane.b32.xlu0 %v5722_v48, %s4889_s20  ;;  %2304 = vrot.lane.b32.xlu1 %v5713_v56, %s4888_s11  ;;  %v4651_v50 = vpop.f32.mrf.mxu0 }
 0x1e9   : > { %v1727_v55 = vmul.f32 %v4651_v50, %v5566_v49  ;;  %v1763_v35 = vadd.f32 %v5574_v29, %v1724_v53  ;;  %v1797_v58 = vmax.f32 %v1765_v54, 0.0  ;;  %v1837_v53 = vor.u32 %v1835_v38, %v1834_v25 }
 0x1ea   : > { %v1629_v40 = vpop.f32.mrf.mxu0 }
 0x1eb   : > { %v1766_v5 = vadd.f32 %v5574_v29, %v1727_v55  ;;  %v1725_v47 = vmul.f32 %v5566_v49, %v1629_v40  ;;  %v1795_v63 = vmax.f32 %v1763_v35, 0.0 }
 0x1ec   : > { %2199 = vrot.lane.b32.xlu1 %v5722_v48, %s4887_s26 }
 0x1ed   : > { %v1798_v51 = vmax.f32 %v1766_v5, 0.0  ;;  %v1764_v52 = vadd.f32 %v5574_v29, %v1725_v47 }
 0x1ef   : > { %v1822_v1 = vpack.c.bf16 %v1798_v51, %v1797_v58  ;;  %v1796_v15 = vmax.f32 %v1764_v52, 0.0 }
 0x1f1   : > { %v1881_v6 = vshrl.u32 %v1822_v1, 16  ;;  %v1821_v62 = vpack.c.bf16 %v1796_v15, %v1795_v63  ;;  %v1884_v9 = vshll.u32 %v1822_v1, 16  ;;  %v5781_v63 = vsel %vm5015_vm2, 0, %v1837_v53 }
 0x1f2   : > { %6634 = vst [vmem:[#allocation15_spill] sm:$0xff] %v5781_v63  ;;  %v2008_v28 = vshrl.u32 %v5781_v63, 16 }
 0x1f3   : > { %v1883_v8 = vrot.slane %v1881_v6, 7  ;;  %v1874_v44 = vshrl.u32 %v1821_v62, 16  ;;  %v1877_v4 = vshll.u32 %v1821_v62, 16 }
 0x1f5   : > { %v1886_v14 = vor.u32 %v1884_v9, %v1883_v8  ;;  %v1876_v17 = vrot.slane %v1874_v44, 7  ;;  %v1998_v41 = vsel %vm5015_vm2, %v1883_v8, 0 }
 0x1f6   : > { %v2271_v50 = vrot.slane %v1998_v41, 1  ;;  %v2099_v62 = vshll.u32 %v1998_v41, 16  ;;  %v1991_v41 = vsel %vm5015_vm2, %v1834_v25, 0 }
 0x1f7   : > { %v1879_v23 = vor.u32 %v1877_v4, %v1876_v17  ;;  %v5740_v24 = vsel %vm5015_vm2, 0, %v1886_v14  ;;  %v1997_v36 = vsel %vm5015_vm2, %v1876_v17, 0  ;;  %v2252_v14 = vrot.slane %v5593_v37, 1 }
 0x1f8   : > { %6632 = vst [vmem:[#allocation13_spill] sm:$0xff] %v5740_v24  ;;  %2419 = vrot.lane.b32.xlu0 %v5740_v24, %s4888_s11  ;;  %2341 = vrot.lane.b32.xlu1 %v5740_v24, %s4889_s20  ;;  %v2270_v11 = vrot.slane %v5740_v24, 1  ;;  %v2094_v45 = vshll.u32 %v5740_v24, 16  ;;  %v2268_v54 = vrot.slane %v1997_v36, 1  ;;  %v2087_v40 = vshll.u32 %v1997_v36, 16 }
 0x1f9   : > { %v5749_v30 = vsel %vm5015_vm2, 0, %v1879_v23  ;;  %v2092_v6 = vshrl.u32 %v5740_v24, 16  ;;  %v2010_v17 = vshll.u32 %v5781_v63, 16  ;;  %v2101_v33 = vrot.slane %v2099_v62, 1 }
 0x1fa   : > { %v2082_v22 = vshll.u32 %v5749_v30, 16  ;;  %v2267_v31 = vrot.slane %v5749_v30, 1  ;;  %v2080_v55 = vshrl.u32 %v5749_v30, 16  ;;  %v5774_v47 = vsel %vm933_vm3, %v2270_v11, %v2271_v50 }
 0x1fb   : > { %6633 = vst [vmem:[#allocation14_spill] sm:$0xff] %v5774_v47  ;;  %v2096_v52 = vrot.slane %v2094_v45, 1  ;;  %v2089_v60 = vrot.slane %v2087_v40, 1  ;;  %v5811_v11 = vsel %vm933_vm3, %v2252_v14, %v2253_v46  ;;  %v2015_v25 = vshll.u32 %v1991_v41, 16 }
 0x1fc   : > { %2445 = vrot.lane.b32.xlu0 %v5752_v39, %s4889_s20  ;;  %2197 = vrot.lane.b32.xlu1 %v5752_v39, %s4887_s26  ;;  %v2084_v59 = vrot.slane %v2082_v22, 1  ;;  %v5777_v58 = vsel %vm933_vm3, %v2267_v31, %v2268_v54  ;;  %v2012_v31 = vrot.slane %v2010_v17, 1  ;;  %v4742_v46 = vpack.i.bf16 %v5024_v3, %v5033_v10 }
 0x1fd   : > { %v2097_v13 = vor.u32 %v2096_v52, %v2092_v6 }
 0x1fe   : > { %v2085_v51 = vor.u32 %v2084_v59, %v2080_v55  ;;  %v2013_v50 = vor.u32 %v2012_v31, %v2008_v28  ;;  %v2017_v55 = vrot.slane %v2015_v25, 1 }
 0x1ff   : > { %v5808_v36 = vsel %vm676_vm4, %v2097_v13, %v2101_v33 }
 0x200   : > { %2417 = vrot.lane.b32.xlu0 %v5749_v30, %s4888_s11  ;;  %2339 = vrot.lane.b32.xlu1 %v5749_v30, %s4889_s20  ;;  %v4654_v7 = vpop.f32.mrf.mxu0  ;;  %v5792_v61 = vsel %vm676_vm4, %v2085_v51, %v2089_v60  ;;  %v5826_v51 = vsel %vm676_vm4, %v2013_v50, %v2017_v55 }
 0x201   : > { %v1730_v35 = vmul.f32 %v4654_v7, %v5566_v49  ;;  %6635 = vst [vmem:[#allocation16_spill] sm:$0xff] %v5826_v51 }
 0x202   : > { %v1642_v5 = vpop.f32.mrf.mxu0 }
 0x203   : > { %v1728_v1 = vmul.f32 %v5566_v49, %v1642_v5  ;;  %v1769_v8 = vadd.f32 %v5574_v29, %v1730_v35  ;;  %v2249_v5 = vrot.slane %v5781_v63, 1 }
 0x204   : > { %2389 = vrot.lane.b32.xlu0 %v5774_v47, %s4887_s26  ;;  %2308 = vrot.lane.b32.xlu1 %v5777_v58, %s4888_s11  ;;  %v4655_v15 = vpop.f32.mrf.mxu0 }
 0x205   : > { %v1731_v9 = vmul.f32 %v4655_v15, %v5566_v49  ;;  %v1767_v4 = vadd.f32 %v5574_v29, %v1728_v1  ;;  %v1801_v32 = vmax.f32 %v1769_v8, 0.0  ;;  %v2250_v15 = vrot.slane %v1991_v41, 1 }
 0x206   : > { %v1645_v44 = vpop.f32.mrf.mxu0 }
 0x207   : > { %v1770_v20 = vadd.f32 %v5574_v29, %v1731_v9  ;;  %v1729_v23 = vmul.f32 %v5566_v49, %v1645_v44  ;;  %v1799_v59 = vmax.f32 %v1767_v4, 0.0  ;;  %v2251_v6 = vsel %vm933_vm3, %v2249_v5, %v2250_v15 }
 0x208   : > { %2387 = vrot.lane.b32.xlu0 %v5777_v58, %s4887_s26  ;;  %2201 = vrot.lane.b32.xlu1 %v5792_v61, %s4887_s26 }
 0x209   : > { %v1802_v22 = vmax.f32 %v1770_v20, 0.0  ;;  %v1768_v38 = vadd.f32 %v5574_v29, %v1729_v23 }
 0x20b   : > { %v5813_v45 = vpack.c.bf16 %v1802_v22, %v1801_v32  ;;  %v1800_v53 = vmax.f32 %v1768_v38, 0.0 }
 0x20c   : > { %2451 = vrot.lane.b32.xlu0 %v5808_v36, %s4889_s20  ;;  %2298 = vrot.lane.b32.xlu1 %v5811_v11, %s4888_s11 }
 0x20d   : > { %v1823_v7 = vpack.c.bf16 %v1800_v53, %v1799_v59 }
 0x20f   : > { %v1888_v54 = vshrl.u32 %v1823_v7, 16  ;;  %v1891_v35 = vshll.u32 %v1823_v7, 16 }
 0x210   : > { %2449 = vrot.lane.b32.xlu0 %v5792_v61, %s4889_s20  ;;  %2331 = vrot.lane.b32.xlu1 %v5643_v19, %s4889_s20 }
 0x211   : > { %v1890_v40 = vrot.slane %v1888_v54, 7  ;;  %v5873_v10 = vpop.permute.xlu1 %2191 }
 0x212   : > { %6639 = vst [vmem:[#allocation20_spill] sm:$0xff] %v5873_v10 }
 0x213   : > { %v1893_v52 = vor.u32 %v1891_v35, %v1890_v40  ;;  %v1999_v1 = vsel %vm5015_vm2, %v1890_v40, 0 }
 0x214   : > { %2189 = vrot.lane.b32.xlu1 %v5826_v51, %s4887_s26  ;;  %v2274_v8 = vrot.slane %v1999_v1, 1  ;;  %v2111_v44 = vshll.u32 %v1999_v1, 16 }
 0x215   : > { %v5834_v60 = vsel %vm5015_vm2, 0, %v1893_v52 }
 0x216   : > { %6636 = vst [vmem:[#allocation17_spill] sm:$0xff] %v5834_v60  ;;  %2421 = vrot.lane.b32.xlu0 %v5834_v60, %s4888_s11  ;;  %v2273_v62 = vrot.slane %v5834_v60, 1  ;;  %v2106_v9 = vshll.u32 %v5834_v60, 16  ;;  %v2104_v14 = vshrl.u32 %v5834_v60, 16  ;;  %v2113_v23 = vrot.slane %v2111_v44, 1 }
 0x218   : > { %2296 = vrot.lane.b32.xlu1 %v2251_v6, %s4888_s11  ;;  %v5843_v13 = vsel %vm933_vm3, %v2273_v62, %v2274_v8  ;;  %v2108_v17 = vrot.slane %v2106_v9, 1 }
 0x219   : > { %6637 = vst [vmem:[#allocation18_spill] sm:$0xff] %v5843_v13  ;;  %v2823_v4 = vsel %vm1454_vm6, %v5843_v13, 0 }
 0x21a   : > { %4607 = vmatpush3.bf16.xpose.msra.mxu0 %v2823_v4  ;;  %v2109_v20 = vor.u32 %v2108_v17, %v2104_v14 }
 0x21c   : > { %2329 = vrot.lane.b32.xlu1 %v5593_v37, %s4889_s20  ;;  %v5851_v33 = vsel %vm676_vm4, %v2109_v20, %v2113_v23 }
 0x21d   : > { %6638 = vst [vmem:[#allocation19_spill] sm:$0xff] %v5851_v33  ;;  %2453 = vrot.lane.b32.xlu0 %v5851_v33, %s4889_s20 }
 0x220   : > { %2187 = vrot.lane.b32.xlu1 %v5045_v16, %s4887_s26 }
 0x221   : > { %2443 = vrot.lane.b32.xlu0 %v5664_v42, %s4889_s20 }
 0x223   : > { %v5875_v32 = vpop.f32.mrf.mxu0 }
 0x224   : > { %4743 = vrot.lane.b32.xlu1 %v4742_v46, %s4888_s11 }
 0x225   : > { %2377 = vrot.lane.b32.xlu0 %v5811_v11, %s4887_s26  ;;  %v5881_v38 = vpop.f32.mrf.mxu0 }
 0x228   : > { %2327 = vrot.lane.b32.xlu1 %v5781_v63, %s4889_s20 }
 0x229   : > { %2409 = vrot.lane.b32.xlu0 %v5643_v19, %s4888_s11 }
 0x22a   : > { %v5879_v22 = vpop.permute.xlu1 %2333  ;;  %v5885_v41 = vpop.permute.xlu0 %2411 }
 0x22b   : > { %6640 = vst [vmem:[#allocation21_spill] sm:$0xff] %v5879_v22  ;;  %6641 = vst [vmem:[#allocation22_spill] sm:$0xff] %v5885_v41 }
 0x22c   : > { %2469 = vrot.lane.b32.xlu1 %v5045_v16, %s4889_s20  ;;  %v4659_v16 = vpop.f32.mrf.mxu0 }
 0x22d   : > { %2441 = vrot.lane.b32.xlu0 %v5689_v12, %s4889_s20 }
 0x22e   : > { %v5887_v31 = vpop.permute.xlu1 %2302  ;;  %v5889_v59 = vpop.f32.mrf.mxu0 }
 0x22f   : > { %v5891_v53 = vpop.permute.xlu0 %2381 }
 0x231   : > { %2375 = vrot.lane.b32.xlu0 %v2251_v6, %s4887_s26 }
 0x232   : > { %v5893_v25 = vpop.permute.xlu1 %2300 }
 0x233   : > { %6642 = vst [vmem:[#allocation23_spill] sm:$0xff] %v5893_v25  ;;  %v5899_v5 = vpop.permute.xlu0 %2379 }
 0x234   : > { %6643 = vst [vmem:[#allocation24_spill] sm:$0xff] %v5899_v5 }
 0x235   : > { %2407 = vrot.lane.b32.xlu0 %v5593_v37, %s4888_s11  ;;  %v1732_v37 = vmul.f32 %v5566_v49, %v5881_v38 }
 0x236   : > { %v5901_v1 = vpop.permute.xlu1 %2195 }
 0x239   : > { %2439 = vrot.lane.b32.xlu0 %v5614_v57, %s4889_s20 }
 0x243   : > { %v4662_v28 = vpop.f32.mrf.mxu0 }
 0x244   : > { %v1738_v7 = vmul.f32 %v4662_v28, %v5566_v49 }
 0x245   : > { %v1674_v50 = vpop.f32.mrf.mxu0 }
 0x246   : > { %v1736_v54 = vmul.f32 %v5566_v49, %v1674_v50  ;;  %v1777_v40 = vadd.f32 %v5574_v29, %v1738_v7 }
 0x247   : > { %v4663_v55 = vpop.f32.mrf.mxu0 }
 0x248   : > { %v1739_v35 = vmul.f32 %v4663_v55, %v5566_v49  ;;  %v1775_v15 = vadd.f32 %v5574_v29, %v1736_v54  ;;  %v1809_v8 = vmax.f32 %v1777_v40, 0.0 }
 0x249   : > { %v1677_v52 = vpop.f32.mrf.mxu0 }
 0x24a   : > { %v1778_v6 = vadd.f32 %v5574_v29, %v1739_v35  ;;  %v1737_v62 = vmul.f32 %v5566_v49, %v1677_v52  ;;  %v5907_v14 = vpop.permute.xlu0 %2415  ;;  %v1807_v17 = vmax.f32 %v1775_v15, 0.0  ;;  %v5909_v20 = vpop.permute.xlu1 %2337 }
 0x24c   : > { %v1810_v9 = vmax.f32 %v1778_v6, 0.0  ;;  %v1776_v44 = vadd.f32 %v5574_v29, %v1737_v62 }
 0x24e   : > { %v1828_v4 = vpack.c.bf16 %v1810_v9, %v1809_v8  ;;  %v1808_v23 = vmax.f32 %v1776_v44, 0.0  ;;  %v5911_v55 = vpop.permute.xlu0 %2413  ;;  %v5913_v6 = vpop.permute.xlu1 %2193 }
 0x24f   : > { %6644 = vst [vmem:[#allocation25_spill] sm:$0xff] %v5911_v55  ;;  %6645 = vst [vmem:[#allocation26_spill] sm:$0xff] %v5913_v6 }
 0x250   : > { %v1923_v46 = vshrl.u32 %v1828_v4, 16  ;;  %v1827_v28 = vpack.c.bf16 %v1808_v23, %v1807_v17  ;;  %v1926_v50 = vshll.u32 %v1828_v4, 16 }
 0x252   : > { %v1925_v7 = vrot.slane %v1923_v46, 7  ;;  %v1916_v54 = vshrl.u32 %v1827_v28, 16  ;;  %v1919_v40 = vshll.u32 %v1827_v28, 16  ;;  %v5933_v46 = vpop.permute.xlu0 %2385 }
 0x254   : > { %v1928_v35 = vor.u32 %v1926_v50, %v1925_v7  ;;  %v1918_v52 = vrot.slane %v1916_v54, 7  ;;  %v2004_v62 = vsel %vm5015_vm2, %v1925_v7, 0  ;;  %v5939_v50 = vpop.permute.xlu1 %2335 }
 0x255   : > { %v2289_v44 = vrot.slane %v2004_v62, 1  ;;  %6646 = vst [vmem:[#allocation27_spill] sm:$0xff] %v5939_v50 }
 0x256   : > { %v1921_v15 = vor.u32 %v1919_v40, %v1918_v52  ;;  %v5919_v8 = vsel %vm5015_vm2, 0, %v1928_v35  ;;  %v5930_v4 = vsel %vm5015_vm2, %v1918_v52, 0  ;;  %v1735_v52 = vmul.f32 %v4659_v16, %v5566_v49  ;;  %v5955_v0 = vpop.permute.xlu0 %2383 }
 0x257   : > { %2353 = vrot.lane.b32.xlu0 %v5919_v8, %s4889_s20  ;;  %v2288_v9 = vrot.slane %v5919_v8, 1  ;;  %v2166_v23 = vshll.u32 %v5919_v8, 16  ;;  %v2286_v35 = vrot.slane %v5930_v4, 1  ;;  %v2164_v40 = vshrl.u32 %v5919_v8, 16 }
 0x258   : > { %v5926_v17 = vsel %vm5015_vm2, 0, %v1921_v15  ;;  %v2171_v15 = vshll.u32 %v2004_v62, 16  ;;  %v1774_v16 = vadd.f32 %v5574_v29, %v1735_v52  ;;  %v5960_v24 = vpop.permute.xlu1 %2306 }
 0x259   : > { %v5936_v28 = vsel %vm933_vm3, %v2288_v9, %v2289_v44  ;;  %v2285_v7 = vrot.slane %v5926_v17, 1  ;;  %v2168_v54 = vrot.slane %v2166_v23, 1  ;;  %v1734_v44 = vmul.f32 %v5875_v32, %v5566_v49 }
 0x25a   : > { %2401 = vrot.lane.b32.xlu1 %v5936_v28, %s4887_s26  ;;  %v2173_v3 = vrot.slane %v2171_v15, 1  ;;  %v5970_v52 = vpop.permute.xlu0 %2447 }
 0x25b   : > { %2322 = vrot.lane.b32.xlu0 %v5936_v28, %s4888_s11  ;;  %v5949_v9 = vsel %vm933_vm3, %v2285_v7, %v2286_v35  ;;  %v2169_v23 = vor.u32 %v2168_v54, %v2164_v40  ;;  %v1773_v35 = vadd.f32 %v5574_v29, %v1734_v44  ;;  %v1806_v40 = vmax.f32 %v1774_v16, 0.0 }
 0x25c   : > { %v1733_v44 = vmul.f32 %v5566_v49, %v5889_v59  ;;  %v5976_v57 = vpop.permute.xlu1 %2304 }
 0x25d   : > { %v5965_v60 = vsel %vm676_vm4, %v2169_v23, %v2173_v3 }
 0x25e   : > { %2399 = vrot.lane.b32.xlu1 %v5949_v9, %s4887_s26  ;;  %v1772_v59 = vadd.f32 %v5574_v29, %v1733_v44 }
 0x25f   : > { %2320 = vrot.lane.b32.xlu0 %v5949_v9, %s4888_s11 }
 0x260   : > { %v4666_v62 = vpop.f32.mrf.mxu0  ;;  %v5989_v12 = vpop.permute.xlu1 %2199 }
 0x261   : > { %v1742_v7 = vmul.f32 %v4666_v62, %v5566_v49  ;;  %v1805_v62 = vmax.f32 %v1773_v35, 0.0 }
 0x262   : > { %v1690_v32 = vpop.f32.mrf.mxu0 }
 0x263   : > { %v1740_v54 = vmul.f32 %v5566_v49, %v1690_v32  ;;  %2215 = vrot.lane.b32.xlu0 %v5965_v60, %s4887_s26  ;;  %v1781_v63 = vadd.f32 %v5574_v29, %v1742_v7  ;;  %v1826_v10 = vpack.c.bf16 %v1806_v40, %v1805_v62  ;;  %v1804_v40 = vmax.f32 %v1772_v59, 0.0 }
 0x264   : > { %v4667_v51 = vpop.f32.mrf.mxu0 }
 0x265   : > { %v1743_v15 = vmul.f32 %v4667_v51, %v5566_v49  ;;  %v1779_v23 = vadd.f32 %v5574_v29, %v1740_v54  ;;  %v1813_v7 = vmax.f32 %v1781_v63, 0.0  ;;  %v2154_v54 = vshll.u32 %v5926_v17, 16 }
 0x266   : > { %v1693_v3 = vpop.f32.mrf.mxu0  ;;  %v1912_v59 = vshll.u32 %v1826_v10, 16 }
 0x267   : > { %v1782_v32 = vadd.f32 %v5574_v29, %v1743_v15  ;;  %v1741_v16 = vmul.f32 %v5566_v49, %v1693_v3  ;;  %v1811_v22 = vmax.f32 %v1779_v23, 0.0  ;;  %v1771_v15 = vadd.f32 %v5574_v29, %v1732_v37 }
 0x268   : > { %v1909_v3 = vshrl.u32 %v1826_v10, 16  ;;  %v2156_v5 = vrot.slane %v2154_v54, 1 }
 0x269   : > { %v1814_v41 = vmax.f32 %v1782_v32, 0.0  ;;  %v1780_v51 = vadd.f32 %v5574_v29, %v1741_v16  ;;  %v1803_v44 = vmax.f32 %v1771_v15, 0.0  ;;  %v2159_v29 = vshll.u32 %v5930_v4, 16 }
 0x26a   : > { %v5984_v35 = vpop.permute.xlu0 %2419  ;;  %v1911_v23 = vrot.slane %v1909_v3, 7 }
 0x26b   : > { %v1830_v13 = vpack.c.bf16 %v1814_v41, %v1813_v7  ;;  %v1812_v25 = vmax.f32 %v1780_v51, 0.0  ;;  %v5993_v41 = vpop.permute.xlu1 %2341  ;;  %v2152_v7 = vshrl.u32 %v5926_v17, 16  ;;  %v2161_v10 = vrot.slane %v2159_v29, 1 }
 0x26c   : > { %v1914_v19 = vor.u32 %v1912_v59, %v1911_v23  ;;  %v2820_v29 = vsel %vm1454_vm6, %v5774_v47, 0 }
 0x26d   : > { %v1937_v49 = vshrl.u32 %v1830_v13, 16  ;;  %v1829_v38 = vpack.c.bf16 %v1812_v25, %v1811_v22  ;;  %v1940_v32 = vshll.u32 %v1830_v13, 16  ;;  %v1825_v13 = vpack.c.bf16 %v1804_v40, %v1803_v44 }
 0x26e   : > { %v5991_v63 = vpop.permute.xlu0 %2445  ;;  %v2157_v15 = vor.u32 %v2156_v5, %v2152_v7 }
 0x26f   : > { %6647 = vst [vmem:[#allocation28_spill] sm:$0xff] %v5991_v63  ;;  %v1939_v62 = vrot.slane %v1937_v49, 7  ;;  %v1930_v16 = vshrl.u32 %v1829_v38, 16  ;;  %v1933_v51 = vshll.u32 %v1829_v38, 16 }
 0x271   : > { %v1932_v37 = vrot.slane %v1930_v16, 7  ;;  %v1942_v22 = vor.u32 %v1940_v32, %v1939_v62  ;;  %v2006_v25 = vsel %vm5015_vm2, %v1939_v62, 0  ;;  %v6013_v62 = vpop.permute.xlu1 %2197 }
 0x272   : > { %v5997_v33 = vpop.permute.xlu0 %2417  ;;  %v2373_v38 = vrot.slane %v2006_v25, 1 }
 0x273   : > { %v1935_v49 = vor.u32 %v1933_v51, %v1932_v37  ;;  %v1990_v54 = vsel %vm5015_vm2, 0, %v1942_v22  ;;  %v2005_v3 = vsel %vm5015_vm2, %v1932_v37, 0  ;;  %v1902_v37 = vshrl.u32 %v1825_v13, 16 }
 0x274   : > { %2435 = vrot.lane.b32.xlu1 %v1990_v54, %s4888_s11  ;;  %2357 = vrot.lane.b32.xlu0 %v1990_v54, %s4889_s20  ;;  %v2372_v4 = vrot.slane %v1990_v54, 1  ;;  %v2362_v32 = vshll.u32 %v1990_v54, 16  ;;  %v2292_v7 = vrot.slane %v2005_v3, 1  ;;  %v6019_v51 = vsel %vm676_vm4, %v2157_v15, %v2161_v10 }
 0x275   : > { %v6011_v40 = vsel %vm5015_vm2, 0, %v1935_v49  ;;  %v6025_v22 = vsel %vm5015_vm2, 0, %v1914_v19  ;;  %v2360_v15 = vshrl.u32 %v1990_v54, 16  ;;  %v1904_v47 = vrot.slane %v1902_v37, 7  ;;  %v6035_v6 = vpop.permute.xlu1 %2339 }
 0x276   : > { %v6007_v16 = vpop.permute.xlu0 %2389  ;;  %v2374_v5 = vsel %vm933_vm3, %v2372_v4, %v2373_v38  ;;  %v2291_v44 = vrot.slane %v6011_v40, 1  ;;  %v2364_v49 = vrot.slane %v2362_v32, 1  ;;  %v2178_v4 = vshll.u32 %v6011_v40, 16 }
 0x277   : > { %4670 = vmatprep.subr.msk.bf16.mxu0 %vm1454_vm6, %v2374_v5  ;;  %v2367_v38 = vshll.u32 %v2006_v25, 16  ;;  %v2142_v19 = vshll.u32 %v6025_v22, 16  ;;  %v2176_v63 = vshrl.u32 %v6011_v40, 16  ;;  %v2183_v50 = vshll.u32 %v2005_v3, 16 }
 0x278   : > { %2213 = vrot.lane.b32.xlu0 %v6019_v51, %s4887_s26  ;;  %4609 = vmatpush3.bf16.xpose.msra.mxu0 %v2820_v29  ;;  %v2293_v59 = vsel %vm933_vm3, %v2291_v44, %v2292_v7  ;;  %v2365_v44 = vor.u32 %v2364_v49, %v2360_v15  ;;  %v2180_v32 = vrot.slane %v2178_v4, 1  ;;  %v1905_v7 = vshll.u32 %v1825_v13, 16 }
 0x279   : > { %2433 = vrot.lane.b32.xlu1 %v6011_v40, %s4888_s11  ;;  %4671 = vmatprep.subr.msk.bf16.mxu0 %vm1454_vm6, %v2293_v59  ;;  %v2369_v29 = vrot.slane %v2367_v38, 1  ;;  %v2002_v25 = vsel %vm5015_vm2, %v1911_v23, 0  ;;  %v2817_v54 = vsel %vm1454_vm6, %v5777_v58, 0  ;;  %v2144_v37 = vrot.slane %v2142_v19, 1  ;;  %v2309_v58 = vpop.permute.xlu1 %2308 }
 0x27a   : > { %v2388_v10 = vpop.permute.xlu0 %2387  ;;  %v1907_v55 = vor.u32 %v1905_v7, %v1904_v47  ;;  %v2181_v13 = vor.u32 %v2180_v32, %v2176_v63  ;;  %v2140_v23 = vshrl.u32 %v6025_v22, 16  ;;  %v2147_v3 = vshll.u32 %v2002_v25, 16 }
 0x27b   : > { %v6047_v49 = vsel %vm676_vm4, %v2365_v44, %v2369_v29  ;;  %v2185_v15 = vrot.slane %v2183_v50, 1  ;;  %v2814_v32 = vsel %vm1454_vm6, %v5704_v27, 0  ;;  %v2001_v27 = vsel %vm5015_vm2, %v1904_v47, 0 }
 0x27c   : > { %2355 = vrot.lane.b32.xlu0 %v6011_v40, %s4889_s20  ;;  %v2145_v38 = vor.u32 %v2144_v37, %v2140_v23  ;;  %v6057_v19 = vsel %vm5015_vm2, 0, %v1907_v55  ;;  %v2282_v55 = vrot.slane %v6025_v22, 1  ;;  %v1898_v37 = vshll.u32 %v5813_v45, 16 }
 0x27d   : > { %2403 = vrot.lane.b32.xlu1 %v2293_v59, %s4887_s26  ;;  %v6061_v63 = vsel %vm676_vm4, %v2181_v13, %v2185_v15  ;;  %v2130_v7 = vshll.u32 %v6057_v19, 16  ;;  %v2202_v29 = vpop.permute.xlu1 %2201  ;;  %v2608_v47 = vsel %vm1454_vm6, %v5808_v36, %v6007_v16 }
 0x27e   : > { %v2452_v4 = vpop.permute.xlu0 %2451  ;;  %v2486_v13 = vsel %vm1454_vm6, %v5749_v30, %v2202_v29  ;;  %v2605_v30 = vsel %vm1454_vm6, %v5792_v61, %v2388_v10 }
 0x27f   : > { %v2132_v15 = vrot.slane %v2130_v7, 1 }
 0x280   : > { %2405 = vrot.lane.b32.xlu0 %v2374_v5, %s4887_s26  ;;  %4611 = vmatpush3.bf16.xpose.msra.mxu0 %v2817_v54  ;;  %v1895_v5 = vshrl.u32 %v5813_v45, 16  ;;  %v2283_v54 = vrot.slane %v2002_v25, 1  ;;  %v2135_v45 = vshll.u32 %v2001_v27, 16  ;;  %v2519_v25 = vsel %vm2503_vm15, %v2486_v13, %v2309_v58 }
 0x281   : > { %2467 = vrot.lane.b32.xlu1 %v6047_v49, %s4889_s20  ;;  %4672 = vmatprep.subr.msk.bf16.mxu0 %vm1454_vm6, %v5936_v28  ;;  %v2149_v28 = vrot.slane %v2147_v3, 1  ;;  %v2559_v16 = vsel %vm2536_vm0, %v2519_v25, %v5993_v41  ;;  %v2280_v41 = vrot.slane %v2001_v27, 1 }
 0x282   : > { %v6065_v44 = vpop.permute.xlu0 %2449  ;;  %v2284_v3 = vsel %vm933_vm3, %v2282_v55, %v2283_v54  ;;  %v2137_v10 = vrot.slane %v2135_v45, 1  ;;  %v2279_v54 = vrot.slane %v6057_v19, 1  ;;  %v2805_v45 = vsel %vm1454_vm6, %v5657_v43, 0 }
 0x283   : > { %v6068_v50 = vsel %vm676_vm4, %v2145_v38, %v2149_v28 }
 0x284   : > { %2324 = vrot.lane.b32.xlu0 %v2293_v59, %s4888_s11  ;;  %v1897_v59 = vrot.slane %v1895_v5, 7  ;;  %v2281_v13 = vsel %vm933_vm3, %v2279_v54, %v2280_v41  ;;  %v6655_v54 = vld [vmem:[#allocation12_spill] sm:$0xff] }
 0x285   : > { %2217 = vrot.lane.b32.xlu1 %v6061_v63, %s4887_s26 }
 0x286   : > { %v1900_v38 = vor.u32 %v1898_v37, %v1897_v59 }
 0x288   : > { %2211 = vrot.lane.b32.xlu0 %v6068_v50, %s4887_s26  ;;  %4613 = vmatpush3.bf16.xpose.msra.mxu0 %v2814_v32  ;;  %v2422_v23 = vpop.permute.xlu0 %2421  ;;  %v2811_v32 = vsel %vm1454_vm6, %v5713_v56, 0  ;;  %v6101_v7 = vsel %vm5015_vm2, 0, %v1900_v38  ;;  %v2646_v56 = vsel %vm2503_vm15, %v2605_v30, %v5984_v35  ;;  %v2484_v35 = vsel %vm1454_vm6, %v5680_v18, %v5989_v12 }
 0x289   : > { %2431 = vrot.lane.b32.xlu1 %v5919_v8, %s4888_s11  ;;  %4673 = vmatprep.subr.msk.bf16.mxu0 %vm1454_vm6, %v5949_v9  ;;  %v2128_v9 = vshrl.u32 %v6057_v19, 16  ;;  %v2648_v5 = vsel %vm2503_vm15, %v2608_v47, %v2422_v23  ;;  %v2684_v58 = vsel %vm2536_vm0, %v2646_v56, %v2452_v4  ;;  %v2118_v37 = vshll.u32 %v6101_v7, 16 }
 0x28a   : > { %v2000_v4 = vsel %vm5015_vm2, %v1897_v59, 0  ;;  %v2808_v23 = vsel %vm1454_vm6, %v5646_v21, 0  ;;  %v2517_v18 = vsel %vm2503_vm15, %v2484_v35, %v5960_v24  ;;  %v2116_v12 = vshrl.u32 %v6101_v7, 16  ;;  %v6656_v35 = vld [vmem:[#allocation23_spill] sm:$0xff] }
 0x28b   : > { %v2133_v55 = vor.u32 %v2132_v15, %v2128_v9  ;;  %v2602_v15 = vsel %vm1454_vm6, %v5722_v48, %v5933_v46  ;;  %v2556_v21 = vsel %vm2536_vm0, %v2517_v18, %v6035_v6  ;;  %v2123_v48 = vshll.u32 %v2000_v4, 16 }
 0x28c   : > { %2318 = vrot.lane.b32.xlu0 %v2284_v3, %s4888_s11  ;;  %v2644_v2 = vsel %vm2503_vm15, %v2602_v15, %v5997_v33  ;;  %v2482_v24 = vsel %vm1454_vm6, %v5693_v26, %v6013_v62  ;;  %v6149_v33 = vpop.permute.xlu1 %2298  ;;  %v2276_v6 = vrot.slane %v6101_v7, 1  ;;  %v2277_v9 = vrot.slane %v2000_v4, 1  ;;  %v6657_v4 = vld [vmem:[#allocation18_spill] sm:$0xff] }
 0x28d   : > { %2463 = vrot.lane.b32.xlu1 %v5965_v60, %s4889_s20  ;;  %v6114_v29 = vsel %vm676_vm4, %v2133_v55, %v2137_v10  ;;  %v2681_v46 = vsel %vm2536_vm0, %v2644_v2, %v6065_v44  ;;  %v2125_v38 = vrot.slane %v2123_v48, 1  ;;  %v2599_v44 = vsel %vm1454_vm6, %v5752_v39, %v5955_v0  ;;  %v6650_v55 = vld [vmem:[#allocation28_spill] sm:$0xff] }
 0x28e   : > { %v2515_v26 = vsel %vm2503_vm15, %v2482_v24, %v5976_v57  ;;  %v2278_v47 = vsel %vm933_vm3, %v2276_v6, %v2277_v9  ;;  %v2642_v57 = vsel %vm2503_vm15, %v2599_v44, %v5907_v14  ;;  %v2480_v39 = vsel %vm1454_vm6, %v5633_v34, %v5901_v1  ;;  %v6648_v34 = vld [vmem:[#allocation25_spill] sm:$0xff]  ;;  %v4771_v48 = vld [vmem:[%s6591_s4 + $0x4] ss:$12 sps:$4 sm:$0xff]  }
 0x28f   : > { %v2454_v28 = vpop.permute.xlu0 %2453  ;;  %v2553_v0 = vsel %vm2536_vm0, %v2515_v26, %v5909_v20  ;;  %v2678_v43 = vsel %vm2536_vm0, %v2642_v57, %v5970_v52  ;;  %v2802_v20 = vsel %vm1454_vm6, %v5811_v11, 0  ;;  %v2596_v14 = vsel %vm1454_vm6, %v5664_v42, %v5891_v53  ;;  %v6651_v53 = vld [vmem:[#allocation26_spill] sm:$0xff]  ;;  %v6661_v24 = vld [vmem:[#allocation9_spill] sm:$0xff]  ;;  %2881 = vmatprep.mubr.bf16.mxu1 %v4771_v48  ;;  %v3002_v48 = vld [vmem:[%s6592_s5 + $0x38] sm:$0xff] }
 0x290   : > { %2351 = vrot.lane.b32.xlu0 %v5926_v17, %s4889_s20  ;;  %4615 = vmatpush3.bf16.xpose.msra.mxu0 %v2811_v32  ;;  %v2687_v61 = vsel %vm2536_vm0, %v2648_v5, %v2454_v28  ;;  %v2332_v30 = vpop.permute.xlu1 %2331  ;;  %v2513_v52 = vsel %vm2503_vm15, %v2480_v39, %v5887_v31  ;;  %v2640_v1 = vsel %vm2503_vm15, %v2596_v14, %v6648_v34  ;;  %v6649_v32 = vld [vmem:[#allocation27_spill] sm:$0xff]  ;;  %v6662_v6 = vld [vmem:[#allocation10_spill] sm:$0xff]  ;;  %v6665_v39 = vld [vmem:[#allocation16_spill] sm:$0xff] }
 0x291   : > { %2397 = vrot.lane.b32.xlu1 %v2284_v3, %s4887_s26  ;;  %2849 = vmatprep.subr.bf16.mxu1 %v2687_v61  ;;  %v2550_v11 = vsel %vm2536_vm0, %v2513_v52, %v6649_v32  ;;  %v2675_v42 = vsel %vm2536_vm0, %v2640_v1, %v6650_v55  ;;  %v6652_v61 = vld [vmem:[#allocation11_spill] sm:$0xff]  ;;  %v6667_v1 = vld [vmem:[#allocation8_spill] sm:$0xff] }
 0x292   : > { %4674 = vmatprep.subr.msk.bf16.mxu0 %vm1454_vm6, %v2284_v3  ;;  %2850 = vmatpush1.bf16.xpose.msra.mxu1 %v2559_v16  ;;  %v2120_v3 = vrot.slane %v2118_v37, 1  ;;  %v2478_v16 = vsel %vm1454_vm6, %v6652_v61, %v6651_v53  ;;  %v6653_v31 = vld [vmem:[#allocation19_spill] sm:$0xff] }
 0x293   : > { %2851 = vmatprep.subr.bf16.mxu1 %v2684_v58  ;;  %v2444_v59 = vpop.permute.xlu0 %2443  ;;  %v6654_v58 = vld [vmem:[#allocation24_spill] sm:$0xff]  ;;  %v2511_v41 = vsel %vm2503_vm15, %v2478_v16, %v6656_v35  ;;  %v4782_v61 = vld [vmem:[%s6591_s4 + $0x50] ss:$12 sps:$4 sm:$0xff]  }
 0x294   : > { %2209 = vrot.lane.b32.xlu0 %v6114_v29, %s4887_s26  ;;  %v2121_v27 = vor.u32 %v2120_v3, %v2116_v12  ;;  %v2190_v5 = vpop.permute.xlu1 %2189  ;;  %v2593_v37 = vsel %vm1454_vm6, %v6655_v54, %v6654_v58  ;;  %v6659_v3 = vld [vmem:[#allocation22_spill] sm:$0xff] }
 0x295   : > { %2429 = vrot.lane.b32.xlu1 %v5926_v17, %s4888_s11  ;;  %v2638_v15 = vsel %vm2503_vm15, %v2593_v37, %v6659_v3  ;;  %v4768_v12 = vld [vmem:[%s6591_s4 + $0x8] ss:$12 sps:$4 sm:$0xff]   ;;  %v2998_v37 = vld [vmem:[%s6592_s5 + $0x18] sm:$0xff]  ;;  %v3059_v3 = vld [vmem:[%s6593_s6] sm:$0xff] }
 0x296   : > { %v6162_v62 = vsel %vm676_vm4, %v2121_v27, %v2125_v38  ;;  %v2672_v18 = vsel %vm2536_vm0, %v2638_v15, %v2444_v59  ;;  %4622 = vmatprep.mubr.msk.bf16.mxu0 %vm1454_vm6, %v4768_v12  ;;  %v3061_v35 = vld [vmem:[%s6593_s6 + $0x10] sm:$0xff]  ;;  %v2996_v15 = vld [vmem:[%s6592_s5 + $0x8] sm:$0xff] }
 0x297   : > { %v2378_v25 = vpop.permute.xlu0 %2377 }
 0x298   : > { %2316 = vrot.lane.b32.xlu0 %v2281_v13, %s4888_s11  ;;  %4617 = vmatpush3.bf16.xpose.msra.mxu0 %v2808_v23  ;;  %v2297_v56 = vpop.permute.xlu1 %2296  ;;  %v2590_v38 = vsel %vm1454_vm6, %v6662_v6, %v2378_v25  ;;  %v6664_v25 = vld [vmem:[#allocation15_spill] sm:$0xff] }
 0x299   : > { %2465 = vrot.lane.b32.xlu1 %v6061_v63, %s4889_s20  ;;  %4675 = vmatprep.subr.msk.bf16.mxu0 %vm1454_vm6, %v2281_v13 }
 0x29a   : > { %2852 = vmatpush1.bf16.xpose.msra.mxu1 %v2556_v21 }
 0x29b   : > { %2853 = vmatprep.subr.bf16.mxu1 %v2681_v46  ;;  %v2410_v28 = vpop.permute.xlu0 %2409  ;;  %v6660_v46 = vld [vmem:[#allocation20_spill] sm:$0xff] }
 0x29c   : > { %2349 = vrot.lane.b32.xlu0 %v6025_v22, %s4889_s20  ;;  %v2330_v2 = vpop.permute.xlu1 %2329  ;;  %v2476_v59 = vsel %vm1454_vm6, %v6661_v24, %v6660_v46  ;;  %v2636_v9 = vsel %vm2503_vm15, %v2590_v38, %v2410_v28 }
 0x29d   : > { %2461 = vrot.lane.b32.xlu1 %v6019_v51, %s4889_s20  ;;  %v2509_v27 = vsel %vm2503_vm15, %v2476_v59, %v6149_v33  ;;  %v3001_v59 = vld [vmem:[%s6592_s5 + $0x30] sm:$0xff] }
 0x29f   : > { %v2442_v10 = vpop.permute.xlu0 %2441 }
 0x2a0   : > { %2207 = vrot.lane.b32.xlu0 %v6162_v62, %s4887_s26  ;;  %4619 = vmatpush3.bf16.xpose.msra.mxu0 %v2805_v45  ;;  %v2188_v44 = vpop.permute.xlu1 %2187  ;;  %v2544_v45 = vsel %vm2536_vm0, %v2509_v27, %v2332_v30  ;;  %v2669_v33 = vsel %vm2536_vm0, %v2636_v9, %v2442_v10  ;;  %v2474_v30 = vsel %vm1454_vm6, %v6664_v25, %v2190_v5  ;;  %v2997_v10 = vld [vmem:[%s6592_s5 + $0x10] sm:$0xff]  ;;  %v3066_v27 = vld [vmem:[%s6593_s6 + $0x38] sm:$0xff]  ;;  %v3000_v9 = vld [vmem:[%s6592_s5 + $0x28] sm:$0xff] }
 0x2a1   : > { %2395 = vrot.lane.b32.xlu1 %v2281_v13, %s4887_s26  ;;  %4676 = vmatprep.subr.msk.bf16.mxu0 %vm1454_vm6, %v2278_v47  ;;  %v6658_v13 = vld [vmem:[#allocation21_spill] sm:$0xff]  ;;  %v2472_v32 = vsel %vm1454_vm6, %v6667_v1, %v2188_v44  ;;  %v3065_v44 = vld [vmem:[%s6593_s6 + $0x30] sm:$0xff] }
 0x2a2   : > { %2854 = vmatpush1.bf16.xpose.msra.mxu1 %v2553_v0  ;;  %v2547_v23 = vsel %vm2536_vm0, %v2511_v41, %v6658_v13  ;;  %v2995_v41 = vld [vmem:[%s6592_s5] sm:$0xff] }
 0x2a3   : > { %2855 = vmatprep.subr.bf16.mxu1 %v2678_v43  ;;  %v2376_v21 = vpop.permute.xlu0 %2375  ;;  %v2507_v43 = vsel %vm2503_vm15, %v2474_v30, %v2297_v56  ;;  %v6668_v56 = vmov 0  }
 0x2a4   : > { %2314 = vrot.lane.b32.xlu0 %v2278_v47, %s4888_s11  ;;  %v6255_v0 = vpop.permute.xlu1 %4743  ;;  %v2587_v28 = vsel %vm1454_vm6, %v6665_v39, %v2376_v21  ;;  %v2541_v5 = vsel %vm2536_vm0, %v2507_v43, %v2330_v2  ;;  %v3063_v43 = vld [vmem:[%s6593_s6 + $0x20] sm:$0xff] }
 0x2a5   : > { %2427 = vrot.lane.b32.xlu1 %v6025_v22, %s4888_s11  ;;  %v4745_v52 = vunpack.i.l.bf16 %v6255_v0 }
 0x2a7   : > { %v2408_v26 = vpop.permute.xlu0 %2407  ;;  %v2505_v55 = vsel %vm2503_vm15, %v2472_v32, %v4745_v52 }
 0x2a8   : > { %2347 = vrot.lane.b32.xlu0 %v6057_v19, %s4889_s20  ;;  %4621 = vmatpush3.bf16.xpose.msra.mxu0 %v2802_v20  ;;  %v6666_v20 = vld [vmem:[#allocation17_spill] sm:$0xff]  ;;  %v2634_v14 = vsel %vm2503_vm15, %v2587_v28, %v2408_v26 }
 0x2a9   : > { %2459 = vrot.lane.b32.xlu1 %v6068_v50, %s4889_s20 }
 0x2aa   : > { %2856 = vmatpush1.bf16.xpose.msra.mxu1 %v2550_v11  ;;  %v2328_v11 = vpop.permute.xlu1 %2327 }
 0x2ab   : > { %2857 = vmatprep.subr.bf16.mxu1 %v2675_v42  ;;  %v2440_v57 = vpop.permute.xlu0 %2439  ;;  %v4778_v42 = vld [vmem:[%s6591_s4 + $0x38] ss:$12 sps:$4 sm:$0xff]   ;;  %v2538_v53 = vsel %vm2536_vm0, %v2505_v55, %v2328_v11 }
 0x2ac   : > { %2205 = vrot.lane.b32.xlu0 %v6653_v31, %s4887_s26  ;;  %v2666_v34 = vsel %vm2536_vm0, %v2634_v14, %v2440_v57 }
 0x2ad   : > { %2393 = vrot.lane.b32.xlu1 %v2278_v47, %s4887_s26  ;;  %v4772_v47 = vld [vmem:[%s6591_s4 + $0x20] ss:$12 sps:$4 sm:$0xff]  }
 0x2ae   : > { %v2470_v58 = vpop.permute.xlu1 %2469 }
 0x2af   : > { %4623 = vmatmul.mubr.msk.bf16.vlgmr.msra.gmra.mxu0 %vm1454_vm6, %v4768_v12  ;;  %v3060_v12 = vld [vmem:[%s6593_s6 + $0x8] sm:$0xff] }
 0x2b0   : > { %2312 = vrot.lane.b32.xlu0 %v6657_v4, %s4888_s11  ;;  %4624 = vmatprep.mubr.msk.bf16.mxu0 %vm1454_vm6, %v4772_v47 }
 0x2b1   : > { %2425 = vrot.lane.b32.xlu1 %v6057_v19, %s4888_s11 }
 0x2b2   : > { %2858 = vmatpush1.bf16.xpose.msra.mxu1 %v2547_v23 }
 0x2b3   : > { %2859 = vmatprep.subr.bf16.mxu1 %v2672_v18  ;;  %v3148_v18 = vld [vmem:[%s6595_s8] sm:$0x3] }
 0x2b4   : > { %2345 = vrot.lane.b32.xlu0 %v6101_v7, %s4889_s20 }
 0x2b5   : > { %2457 = vrot.lane.b32.xlu1 %v6114_v29, %s4889_s20 }
 0x2b7   : > { %4625 = vmatmul.mubr.msk.bf16.gmra.mxu0 %vm1454_vm6, %v4772_v47  ;;  %v4746_v47 = vunpack.i.h.bf16 %v6255_v0 }
 0x2b8   : > { %2203 = vrot.lane.b32.xlu0 %v5808_v36, %s4887_s26  ;;  %v6663_v36 = vld [vmem:[#allocation14_spill] sm:$0xff]  ;;  %4626 = vmatprep.mubr.msk.bf16.mxu0 %vm1454_vm6, %v4778_v42 }
 0x2b9   : > { %2391 = vrot.lane.b32.xlu1 %v6657_v4, %s4887_s26  ;;  %v3062_v4 = vld [vmem:[%s6593_s6 + $0x18] sm:$0xff]  ;;  %s6517_s26 = scalar_lea.vmem [#allocation5], %s4518_s28  ;;  %s4814_s28 = sshll.u32 %s4891_s21, 4  ;;  %s4815_s28 = int_to_ptr.vmem [resolvable:$false] %s4814_s28 }
 0x2ba   : > { %2860 = vmatpush1.bf16.xpose.msra.mxu1 %v2544_v45  ;;  %s4438_s29 = sshll.u32 %s6517_s26, 4  ;;  %s4816_s12 = scalar_lea.vmem %s4815_s28, 1024  ;;  %s6536_s29 = int_to_ptr.vmem [resolvable:$true] %s4438_s29 }
 0x2bb   : > { %2861 = vmatprep.subr.bf16.mxu1 %v2669_v33  ;;  %v2999_v33 = vld [vmem:[%s6592_s5 + $0x20] sm:$0xff]  ;;  %p4817_p11 = scmp.lt.s32.totalorder %s6536_s29, %s4815_s28 }
 0x2bc   : > { %2310 = vrot.lane.b32.xlu0 %v6663_v36, %s4888_s11  ;;  %v3064_v36 = vld [vmem:[%s6593_s6 + $0x28] sm:$0xff] }
 0x2bd   : > { %2423 = vrot.lane.b32.xlu1 %v6101_v7, %s4888_s11  ;;  %s4586_s11 = sshll.u32 %s4969_s17, 9  ;;  %s4810_s17 = scalar_lea.vmem %s6536_s29, 512 }
 0x2be   : > { %s6541_s30 = scalar_lea.hbm %s6597_s10, %s4586_s11  ;;  %p4811_p8 = scmp.ne.s32.totalorder %s6536_s29, %s4810_s17 }
 0x2bf   : > { %4627 = vmatmul.mubr.msk.bf16.gmra.mxu0 %vm1454_vm6, %v4778_v42  ;;  %p4818_p12 = scmp.lt.s32.totalorder %s4816_s12, %s4810_s17 }
 0x2c0   : > { %2343 = vrot.lane.b32.xlu0 %v6666_v20, %s4889_s20  ;;  %4628 = vmatprep.mubr.msk.bf16.mxu0 %vm1454_vm6, %v4782_v61  ;;  %p4812_p9 = pnand %p4811_p8, %p4986_p5 }
 0x2c1   : > { %2455 = vrot.lane.b32.xlu1 %v6162_v62, %s4889_s20  ;;  %p4819_p13 = por %p4818_p12, %p4817_p11 }
 0x2c2   : > { %2862 = vmatpush1.bf16.xpose.msra.mxu1 %v2541_v5  ;;  %p4813_p10 = pneg %p4812_p9 }
 0x2c3   : > { %2863 = vmatprep.subr.bf16.mxu1 %v2666_v34 }
 0x2c4   : > { %3020 = vperm.xlu0 %4748, %v2998_v37   ;;  %p4820_p0 = pnand %p4819_p13, %p4813_p10 }
 0x2c5   : > { %3015 = vperm.xlu1 %4747, %v2997_v10  }
 0x2c7   : > { %4629 = vmatmul.mubr.msk.bf16.gmra.mxu0 %vm1454_vm6, %v4782_v61 }
 0x2c8   : > { %3189 = vmatprep.mubr.bf16.mxu0 %v6668_v56  ;;  %3005 = vperm.xlu0 %4748, %v2995_v41  }
 0x2c9   : > { %v6282_v16 = vpop.permute.xlu0 %2353  ;;  %3079 = vperm.xlu1 %4747, %v3061_v35  }
 0x2ca   : > { %2864 = vmatpush1.bf16.xpose.msra.mxu1 %v2538_v53 }
 0x2cc   : > { %v6304_v13 = vpop.permute.xlu1 %2401  ;;  %3069 = vperm.xlu0 %4748, %v3059_v3  }
 0x2cd   : > { %v6290_v54 = vpop.permute.xlu0 %2322  ;;  %3084 = vperm.xlu1 %4747, %v3062_v4   ;;  %v2626_v3 = vsel %vm1454_vm6, %v5965_v60, %v6304_v13 }
 0x2d0   : > { %v6317_v2 = vpop.permute.xlu1 %2399  ;;  %3151 = vperm.xlu0 %4748, %v3148_v18  }
 0x2d1   : > { %v6306_v23 = vpop.permute.xlu0 %2320  ;;  %3010 = vperm.xlu1 %4747, %v2996_v15  }
 0x2d4   : > { %3040 = vperm.xlu0 %4748, %v3002_v48  }
 0x2d5   : > { %v2216_v21 = vpop.permute.xlu0 %2215  ;;  %3074 = vperm.xlu1 %4747, %v3060_v12  }
 0x2d6   : > { %v2500_v42 = vsel %vm1454_vm6, %v5919_v8, %v2216_v21  ;;  %v2623_v21 = vsel %vm1454_vm6, %v6019_v51, %v6317_v2 }
 0x2d8   : > { %3104 = vperm.xlu0 %4748, %v3066_v27  }
 0x2d9   : > { %3035 = vperm.xlu1 %4747, %v3001_v59  }
 0x2dc   : > { %3030 = vperm.xlu0 %4748, %v3000_v9  }
 0x2dd   : > { %3099 = vperm.xlu1 %4747, %v3065_v44  }
 0x2e0   : > { %3094 = vperm.xlu0 %4748, %v3064_v36  }
 0x2e1   : > { %3025 = vperm.xlu1 %4747, %v2999_v33  }
 0x2e5   : > { %3089 = vperm.xlu1 %4747, %v3063_v43  }
 0x2e6   : > { %v2436_v46 = vpop.permute.xlu1 %2435  ;;  %v2358_v24 = vpop.permute.xlu0 %2357 }
 0x2ea   : > { %v2214_v6 = vpop.permute.xlu0 %2213 }
 0x2eb   : > { %v2434_v38 = vpop.permute.xlu1 %2433  ;;  %v2498_v41 = vsel %vm1454_vm6, %v5926_v17, %v2214_v6 }
 0x2ec   : > { %v2531_v15 = vsel %vm2503_vm15, %v2498_v41, %v6306_v23  ;;  %v4776_v41 = vld [vmem:[%s6591_s4 + $0x34] ss:$12 sps:$4 sm:$0xff]  }
 0x2ed   : > { %v2577_v48 = vsel %vm2536_vm0, %v2531_v15, %v6282_v16  ;;  %v3321_v15 = vld [vmem:[#allocation2 + $0x3d8] sm:$0xff] }
 0x2ee   : > { %v2356_v26 = vpop.permute.xlu0 %2355 }
 0x2ef   : > { %v2404_v45 = vpop.permute.xlu1 %2403 }
 0x2f0   : > { %v2629_v0 = vsel %vm1454_vm6, %v6061_v63, %v2404_v45 }
 0x2f1   : > { %v2662_v11 = vsel %vm2503_vm15, %v2629_v0, %v2436_v46 }
 0x2f2   : > { %v2406_v25 = vpop.permute.xlu0 %2405 }
 0x2f3   : > { %v2468_v30 = vpop.permute.xlu1 %2467  ;;  %v2632_v57 = vsel %vm1454_vm6, %v6047_v49, %v2406_v25  ;;  %v4576_v49 = vld [vmem:[%s6595_s8 + $0x2] sm:$0x3] }
 0x2f4   : > { %v2664_v39 = vsel %vm2503_vm15, %v2632_v57, %v4746_v47  ;;  %3790 = vperm.xlu1 %4747, %v4576_v49   ;;  %v2708_v63 = vsel %vm2536_vm0, %v2662_v11, %v2468_v30 }
 0x2f5   : > { %v2711_v28 = vsel %vm2536_vm0, %v2664_v39, %v2470_v58 }
 0x2f6   : > { %2865 = vmatprep.subr.bf16.mxu1 %v2711_v28  ;;  %v2325_v14 = vpop.permute.xlu0 %2324 }
 0x2f7   : > { %v2218_v5 = vpop.permute.xlu1 %2217 }
 0x2f8   : > { %v2502_v52 = vsel %vm1454_vm6, %v6011_v40, %v2218_v5  ;;  %v2533_v40 = vsel %vm2503_vm15, %v2500_v42, %v6290_v54  ;;  %v2660_v54 = vsel %vm2503_vm15, %v2626_v3, %v2434_v38  ;;  %v4780_v3 = vld [vmem:[%s6591_s4 + $0x4c] ss:$12 sps:$4 sm:$0xff]  }
 0x2f9   : > { %v2535_v34 = vsel %vm2503_vm15, %v2502_v52, %v2325_v14  ;;  %v2580_v10 = vsel %vm2536_vm0, %v2533_v40, %v2356_v26 }
 0x2fa   : > { %v2583_v1 = vsel %vm2536_vm0, %v2535_v34, %v2358_v24  ;;  %v2212_v32 = vpop.permute.xlu0 %2211 }
 0x2fb   : > { %v2432_v55 = vpop.permute.xlu1 %2431  ;;  %2866 = vmatpush2.bf16.xpose.msra.mxu1 %v2583_v1  ;;  %v2496_v24 = vsel %vm1454_vm6, %v6025_v22, %v2212_v32 }
 0x2fc   : > { %2867 = vmatprep.subr.bf16.mxu1 %v2708_v63  ;;  %v2658_v17 = vsel %vm2503_vm15, %v2623_v21, %v2432_v55  ;;  %v6669_v55 = vld [vmem:[#allocation13_spill] sm:$0xff]  ;;  %v3312_v21 = vld [vmem:[#allocation2 + $0x390] sm:$0xff] }
 0x2fe   : > { %v2319_v53 = vpop.permute.xlu0 %2318 }
 0x2ff   : > { %v2464_v61 = vpop.permute.xlu1 %2463  ;;  %v2529_v51 = vsel %vm2503_vm15, %v2496_v24, %v2319_v53  ;;  %v3280_v24 = vld [vmem:[#allocation2 + $0x290] sm:$0xff] }
 0x300   : > { %v2702_v60 = vsel %vm2536_vm0, %v2658_v17, %v2464_v61  ;;  %v3304_v17 = vld [vmem:[#allocation2 + $0x350] sm:$0xff] }
 0x302   : > { %v2352_v58 = vpop.permute.xlu0 %2351 }
 0x303   : > { %v2398_v37 = vpop.permute.xlu1 %2397  ;;  %2868 = vmatpush2.bf16.xpose.msra.mxu1 %v2580_v10  ;;  %v2574_v16 = vsel %vm2536_vm0, %v2529_v51, %v2352_v58  ;;  %v3272_v51 = vld [vmem:[#allocation2 + $0x250] sm:$0xff] }
 0x304   : > { %v2620_v2 = vsel %vm1454_vm6, %v6068_v50, %v2398_v37  ;;  %v4769_v37 = vld [vmem:[%s6591_s4] ss:$12 sps:$4 sm:$0xff]  }
 0x306   : > { %v2210_v35 = vpop.permute.xlu0 %2209 }
 0x307   : > { %v2430_v4 = vpop.permute.xlu1 %2429  ;;  %v2494_v22 = vsel %vm1454_vm6, %v6057_v19, %v2210_v35  ;;  %v4775_v35 = vld [vmem:[%s6591_s4 + $0x18] ss:$12 sps:$4 sm:$0xff]  }
 0x308   : > { %v2656_v27 = vsel %vm2503_vm15, %v2620_v2, %v2430_v4  ;;  %v4779_v4 = vld [vmem:[%s6591_s4 + $0x30] ss:$12 sps:$4 sm:$0xff]  }
 0x309   : > { %v3265_v2 = vld [vmem:[#allocation2 + $0x218] sm:$0xff] }
 0x30a   : > { %v2317_v8 = vpop.permute.xlu0 %2316 }
 0x30b   : > { %v2466_v18 = vpop.permute.xlu1 %2465  ;;  %v2527_v45 = vsel %vm2503_vm15, %v2494_v22, %v2317_v8  ;;  %v4783_v8 = vld [vmem:[%s6591_s4 + $0x48] ss:$12 sps:$4 sm:$0xff]  }
 0x30c   : > { %v2705_v12 = vsel %vm2536_vm0, %v2660_v54, %v2466_v18  ;;  %v3320_v54 = vld [vmem:[#allocation2 + $0x3d0] sm:$0xff]  ;;  %v3313_v18 = vld [vmem:[#allocation2 + $0x398] sm:$0xff] }
 0x30d   : > { %2869 = vmatprep.subr.bf16.mxu1 %v2705_v12  ;;  %v3305_v12 = vld [vmem:[#allocation2 + $0x358] sm:$0xff]  ;;  %v3240_v22 = vld [vmem:[#allocation2 + $0x150] sm:$0xff] }
 0x30e   : > { %2870 = vmatpush2.bf16.xpose.msra.mxu1 %v2577_v48  ;;  %v2350_v13 = vpop.permute.xlu0 %2349  ;;  %v3297_v48 = vld [vmem:[#allocation2 + $0x318] sm:$0xff] }
 0x30f   : > { %v2462_v23 = vpop.permute.xlu1 %2461  ;;  %2871 = vmatprep.subr.bf16.mxu1 %v2702_v60  ;;  %v2571_v36 = vsel %vm2536_vm0, %v2527_v45, %v2350_v13  ;;  %v3296_v60 = vld [vmem:[#allocation2 + $0x310] sm:$0xff]  ;;  %v3289_v13 = vld [vmem:[#allocation2 + $0x2d8] sm:$0xff] }
 0x310   : > { %v2699_v6 = vsel %vm2536_vm0, %v2656_v27, %v2462_v23  ;;  %v3288_v23 = vld [vmem:[#allocation2 + $0x2d0] sm:$0xff] }
 0x311   : > { %v3264_v27 = vld [vmem:[#allocation2 + $0x210] sm:$0xff] }
 0x312   : > { %v2208_v46 = vpop.permute.xlu0 %2207  ;;  %v3232_v45 = vld [vmem:[#allocation2 + $0x110] sm:$0xff] }
 0x313   : > { %v2396_v59 = vpop.permute.xlu1 %2395  ;;  %v2492_v19 = vsel %vm1454_vm6, %v6101_v7, %v2208_v46  ;;  %v3281_v46 = vld [vmem:[#allocation2 + $0x298] sm:$0xff] }
 0x314   : > { %v2617_v50 = vsel %vm1454_vm6, %v6114_v29, %v2396_v59  ;;  %v3273_v59 = vld [vmem:[#allocation2 + $0x258] sm:$0xff] }
 0x316   : > { %2872 = vmatpush2.bf16.xpose.msra.mxu1 %v2574_v16  ;;  %v2315_v38 = vpop.permute.xlu0 %2314  ;;  %v3257_v16 = vld [vmem:[#allocation2 + $0x1d8] sm:$0xff] }
 0x317   : > { %v2428_v44 = vpop.permute.xlu1 %2427  ;;  %2873 = vmatprep.subr.bf16.mxu1 %v2699_v6  ;;  %v2525_v39 = vsel %vm2503_vm15, %v2492_v19, %v2315_v38  ;;  %v3256_v6 = vld [vmem:[#allocation2 + $0x1d0] sm:$0xff]  ;;  %v3249_v38 = vld [vmem:[#allocation2 + $0x198] sm:$0xff] }
 0x318   : > { %v2654_v33 = vsel %vm2503_vm15, %v2617_v50, %v2428_v44  ;;  %v3248_v44 = vld [vmem:[#allocation2 + $0x190] sm:$0xff]  ;;  %v3225_v50 = vld [vmem:[#allocation2 + $0xd8] sm:$0xff] }
 0x319   : > { %v3200_v19 = vld [vmem:[#allocation2 + $0x10] sm:$0xff] }
 0x31a   : > { %v2348_v9 = vpop.permute.xlu0 %2347 }
 0x31b   : > { %v2460_v26 = vpop.permute.xlu1 %2459  ;;  %v2568_v28 = vsel %vm2536_vm0, %v2525_v39, %v2348_v9  ;;  %v3241_v9 = vld [vmem:[#allocation2 + $0x158] sm:$0xff]  ;;  %v3448_v39 = vld [vmem:[#allocation2 + $0x7d0] sm:$0xff] }
 0x31c   : > { %v2696_v47 = vsel %vm2536_vm0, %v2654_v33, %v2460_v26  ;;  %v3233_v26 = vld [vmem:[#allocation2 + $0x118] sm:$0xff]  ;;  %v3224_v33 = vld [vmem:[#allocation2 + $0xd0] sm:$0xff] }
 0x31e   : > { %2874 = vmatpush2.bf16.xpose.msra.mxu1 %v2571_v36  ;;  %v2206_v25 = vpop.permute.xlu0 %2205  ;;  %v3217_v36 = vld [vmem:[#allocation2 + $0x98] sm:$0xff] }
 0x31f   : > { %v2394_v30 = vpop.permute.xlu1 %2393  ;;  %2875 = vmatprep.subr.bf16.mxu1 %v2696_v47  ;;  %v2490_v7 = vsel %vm1454_vm6, %v6666_v20, %v2206_v25  ;;  %v3216_v47 = vld [vmem:[#allocation2 + $0x90] sm:$0xff]  ;;  %v3209_v25 = vld [vmem:[#allocation2 + $0x58] sm:$0xff] }
 0x320   : > { %v2614_v29 = vsel %vm1454_vm6, %v6162_v62, %v2394_v30  ;;  %v3208_v30 = vld [vmem:[#allocation2 + $0x50] sm:$0xff] }
 0x322   : > { %v2313_v57 = vpop.permute.xlu0 %2312 }
 0x323   : > { %v2426_v43 = vpop.permute.xlu1 %2425  ;;  %v2523_v1 = vsel %vm2503_vm15, %v2490_v7, %v2313_v57  ;;  %v3201_v57 = vld [vmem:[#allocation2 + $0x18] sm:$0xff]  ;;  %v3416_v7 = vld [vmem:[#allocation2 + $0x6d0] sm:$0xff] }
 0x324   : > { %v2652_v0 = vsel %vm2503_vm15, %v2614_v29, %v2426_v43  ;;  %v3449_v43 = vld [vmem:[#allocation2 + $0x7d8] sm:$0xff]  ;;  %v3440_v29 = vld [vmem:[#allocation2 + $0x790] sm:$0xff] }
 0x326   : > { %2876 = vmatpush2.bf16.xpose.msra.mxu1 %v2568_v28  ;;  %v2346_v14 = vpop.permute.xlu0 %2345  ;;  %v3441_v28 = vld [vmem:[#allocation2 + $0x798] sm:$0xff] }
 0x327   : > { %v2458_v5 = vpop.permute.xlu1 %2457  ;;  %v2565_v32 = vsel %vm2536_vm0, %v2523_v1, %v2346_v14  ;;  %v3433_v14 = vld [vmem:[#allocation2 + $0x758] sm:$0xff]  ;;  %v3408_v1 = vld [vmem:[#allocation2 + $0x690] sm:$0xff] }
 0x328   : > { %v2693_v49 = vsel %vm2536_vm0, %v2652_v0, %v2458_v5  ;;  %v3432_v0 = vld [vmem:[#allocation2 + $0x750] sm:$0xff]  ;;  %v3425_v5 = vld [vmem:[#allocation2 + $0x718] sm:$0xff] }
 0x329   : > { %2877 = vmatprep.subr.bf16.mxu1 %v2693_v49  ;;  %v3424_v49 = vld [vmem:[#allocation2 + $0x710] sm:$0xff] }
 0x32a   : > { %v2204_v52 = vpop.permute.xlu0 %2203 }
 0x32b   : > { %v2392_v34 = vpop.permute.xlu1 %2391  ;;  %v2488_v63 = vsel %vm1454_vm6, %v6669_v55, %v2204_v52  ;;  %v3417_v52 = vld [vmem:[#allocation2 + $0x6d8] sm:$0xff]  ;;  %v3392_v55 = vld [vmem:[#allocation2 + $0x610] sm:$0xff] }
 0x32c   : > { %v2611_v42 = vsel %vm1454_vm6, %v6653_v31, %v2392_v34  ;;  %v4773_v31 = vld [vmem:[%s6591_s4 + $0x1c] ss:$12 sps:$4 sm:$0xff]  }
 0x32d   : > { %v3409_v34 = vld [vmem:[#allocation2 + $0x698] sm:$0xff] }
 0x32e   : > { %2878 = vmatpush2.bf16.xpose.msra.mxu1 %v2565_v32  ;;  %v2311_v11 = vpop.permute.xlu0 %2310  ;;  %v3401_v32 = vld [vmem:[#allocation2 + $0x658] sm:$0xff] }
 0x32f   : > { %v2424_v62 = vpop.permute.xlu1 %2423  ;;  %v2521_v53 = vsel %vm2503_vm15, %v2488_v63, %v2311_v11  ;;  %v3400_v11 = vld [vmem:[#allocation2 + $0x650] sm:$0xff]  ;;  %v3385_v63 = vld [vmem:[#allocation2 + $0x5d8] sm:$0xff] }
 0x330   : > { %v2650_v40 = vsel %vm2503_vm15, %v2611_v42, %v2424_v62  ;;  %v3393_v62 = vld [vmem:[#allocation2 + $0x618] sm:$0xff]  ;;  %v3384_v42 = vld [vmem:[#allocation2 + $0x5d0] sm:$0xff] }
 0x332   : > { %v2344_v61 = vpop.permute.xlu0 %2343 }
 0x333   : > { %v2456_v20 = vpop.permute.xlu1 %2455  ;;  %v2562_v10 = vsel %vm2536_vm0, %v2521_v53, %v2344_v61  ;;  %v3377_v53 = vld [vmem:[#allocation2 + $0x598] sm:$0xff]  ;;  %v3376_v61 = vld [vmem:[#allocation2 + $0x590] sm:$0xff] }
 0x334   : > { %v2690_v58 = vsel %vm2536_vm0, %v2650_v40, %v2456_v20  ;;  %v3369_v40 = vld [vmem:[#allocation2 + $0x558] sm:$0xff]  ;;  %v3368_v20 = vld [vmem:[#allocation2 + $0x550] sm:$0xff] }
 0x335   : > { %2879 = vmatprep.subr.bf16.mxu1 %v2690_v58  ;;  %v3360_v58 = vld [vmem:[#allocation2 + $0x510] sm:$0xff] }
 0x336   : > { %2880 = vmatpush2.bf16.xpose.msra.mxu1 %v2562_v10  ;;  %v3361_v10 = vld [vmem:[#allocation2 + $0x518] sm:$0xff] }
 0x337   : > { %3525 = vmatprep.subr.mxu1 %v3321_v15 }
 0x33d   : > { %2882 = vmatmul.mubr.bf16.vlgmr.msra.gmra.mxu1 %v4769_v37  ;;  %v3353_v37 = vld [vmem:[#allocation2 + $0x4d8] sm:$0xff] }
 0x33e   : > { %2891 = vmatprep.mubr.bf16.mxu1 %v4773_v31  ;;  %3526 = vmatpush1.msra.mxu1 %v3320_v54  ;;  %v3352_v31 = vld [vmem:[#allocation2 + $0x4d0] sm:$0xff] }
 0x33f   : > { %3527 = vmatprep.subr.mxu1 %v3313_v18 }
 0x340   : > { %3528 = vmatpush1.msra.mxu1 %v3312_v21 }
 0x341   : > { %3529 = vmatprep.subr.mxu1 %v3305_v12 }
 0x342   : > { %3530 = vmatpush1.msra.mxu1 %v3304_v17 }
 0x343   : > { %3531 = vmatprep.subr.mxu1 %v3297_v48 }
 0x344   : > { %3532 = vmatpush1.msra.mxu1 %v3296_v60 }
 0x345   : > { %2892 = vmatmul.mubr.bf16.gmra.mxu1 %v4775_v35  ;;  %3533 = vmatprep.subr.mxu1 %v3289_v13  ;;  %v3345_v35 = vld [vmem:[#allocation2 + $0x498] sm:$0xff] }
 0x346   : > { %2901 = vmatprep.mubr.bf16.mxu1 %v4776_v41  ;;  %3534 = vmatpush1.msra.mxu1 %v3288_v23  ;;  %v3021_v23 = vpop.permute.xlu0 %3020 }
 0x347   : > { %3535 = vmatprep.subr.mxu1 %v3281_v46 }
 0x348   : > { %3536 = vmatpush1.msra.mxu1 %v3280_v24 }
 0x349   : > { %3537 = vmatprep.subr.mxu1 %v3273_v59 }
 0x34a   : > { %3538 = vmatpush1.msra.mxu1 %v3272_v51 }
 0x34b   : > { %3539 = vmatprep.subr.mxu1 %v3265_v2 }
 0x34c   : > { %3540 = vmatpush1.msra.mxu1 %v3264_v27 }
 0x34d   : > { %2902 = vmatmul.mubr.bf16.gmra.mxu1 %v4779_v4  ;;  %3541 = vmatprep.subr.mxu1 %v3257_v16 }
 0x34e   : > { %2911 = vmatprep.mubr.bf16.mxu1 %v4780_v3  ;;  %3542 = vmatpush1.msra.mxu1 %v3256_v6  ;;  %v3016_v3 = vpop.permute.xlu1 %3015 }
 0x34f   : > { %3543 = vmatprep.subr.mxu1 %v3249_v38 }
 0x350   : > { %3544 = vmatpush1.msra.mxu1 %v3248_v44  ;;  %v3006_v44 = vpop.permute.xlu0 %3005 }
 0x351   : > { %3545 = vmatprep.subr.mxu1 %v3241_v9 }
 0x352   : > { %3546 = vmatpush1.msra.mxu1 %v3240_v22  ;;  %v3080_v54 = vpop.permute.xlu1 %3079 }
 0x353   : > { %3547 = vmatprep.subr.mxu1 %v3233_v26 }
 0x354   : > { %3548 = vmatpush1.msra.mxu1 %v3232_v45 }
 0x355   : > { %2912 = vmatmul.mubr.bf16.gmra.mxu1 %v4783_v8  ;;  %3549 = vmatprep.subr.mxu1 %v3225_v50 }
 0x356   : > { %3550 = vmatpush1.msra.mxu1 %v3224_v33  ;;  %v3085_v48 = vpop.permute.xlu1 %3084 }
 0x357   : > { %3551 = vmatprep.subr.mxu1 %v3217_v36 }
 0x358   : > { %3552 = vmatpush1.msra.mxu1 %v3216_v47 }
 0x359   : > { %3553 = vmatprep.subr.mxu1 %v3209_v25 }
 0x35a   : > { %3554 = vmatpush1.msra.mxu1 %v3208_v30  ;;  %v3011_v2 = vpop.permute.xlu1 %3010 }
 0x35b   : > { %3555 = vmatprep.subr.mxu1 %v3201_v57 }
 0x35c   : > { %3556 = vmatpush1.msra.mxu1 %v3200_v19 }
 0x35d   : > { %3557 = vmatprep.subr.mxu1 %v3449_v43 }
 0x35e   : > { %3558 = vmatpush2.msra.mxu1 %v3448_v39  ;;  %v3075_v19 = vpop.permute.xlu1 %3074 }
 0x35f   : > { %3559 = vmatprep.subr.mxu1 %v3441_v28 }
 0x360   : > { %3560 = vmatpush2.msra.mxu1 %v3440_v29 }
 0x361   : > { %3561 = vmatprep.subr.mxu1 %v3433_v14 }
 0x362   : > { %3562 = vmatpush2.msra.mxu1 %v3432_v0  ;;  %v3070_v0 = vpop.permute.xlu0 %3069 }
 0x363   : > { %3563 = vmatprep.subr.mxu1 %v3425_v5 }
 0x364   : > { %3564 = vmatpush2.msra.mxu1 %v3424_v49 }
 0x365   : > { %3565 = vmatprep.subr.mxu1 %v3417_v52 }
 0x366   : > { %3566 = vmatpush2.msra.mxu1 %v3416_v7 }
 0x367   : > { %3567 = vmatprep.subr.mxu1 %v3409_v34 }
 0x368   : > { %3568 = vmatpush2.msra.mxu1 %v3408_v1 }
 0x369   : > { %3569 = vmatprep.subr.mxu1 %v3401_v32 }
 0x36a   : > { %3570 = vmatpush2.msra.mxu1 %v3400_v11 }
 0x36b   : > { %3571 = vmatprep.subr.mxu1 %v3393_v62 }
 0x36c   : > { %3572 = vmatpush2.msra.mxu1 %v3392_v55 }
 0x36d   : > { %3573 = vmatprep.subr.mxu1 %v3385_v63 }
 0x36e   : > { %3574 = vmatpush2.msra.mxu1 %v3384_v42 }
 0x36f   : > { %3575 = vmatprep.subr.mxu1 %v3377_v53  ;;  %v2956_v41 = vpop.f32.mrf.mxu0 }
 0x370   : > { %3576 = vmatpush2.msra.mxu1 %v3376_v61 }
 0x371   : > { %3577 = vmatprep.subr.mxu1 %v3369_v40  ;;  %v2958_v4 = vpop.f32.mrf.mxu0 }
 0x372   : > { %3578 = vmatpush2.msra.mxu1 %v3368_v20 }
 0x373   : > { %3579 = vmatprep.subr.mxu1 %v3361_v10  ;;  %v2960_v8 = vpop.f32.mrf.mxu0 }
 0x374   : > { %3580 = vmatpush2.msra.mxu1 %v3360_v58 }
 0x375   : > { %3581 = vmatprep.subr.mxu1 %v3353_v37  ;;  %v2962_v15 = vpop.f32.mrf.mxu0  ;;  %v3319_v37 = vld [vmem:[#allocation2 + $0x3c8] sm:$0xff] }
 0x376   : > { %3582 = vmatpush2.msra.mxu1 %v3352_v31  ;;  %v3147_v31 = vld [vmem:[%s6594_s7] sm:$0x1] }
 0x377   : > { %3583 = vmatprep.subr.mxu1 %v3345_v35  ;;  %v2966_v21 = vpop.f32.mrf.mxu0  ;;  %v3318_v35 = vld [vmem:[#allocation2 + $0x3c0] sm:$0xff] }
 0x379   : > { %v2968_v60 = vpop.f32.mrf.mxu0 }
 0x37b   : > { %v2970_v24 = vpop.f32.mrf.mxu0 }
 0x37d   : > { %v2972_v26 = vpop.f32.mrf.mxu0 }
 0x3fd   : > { %v2883_v18 = vpop.f32.mrf.mxu1 }
 0x3fe   : > { %v2957_v36 = vadd.f32 %v2956_v41, %v2883_v18  ;;  %v3311_v41 = vld [vmem:[#allocation2 + $0x388] sm:$0xff] }
 0x3ff   : > { %v2885_v12 = vpop.f32.mrf.mxu1  ;;  %v3287_v18 = vld [vmem:[#allocation2 + $0x2c8] sm:$0xff] }
 0x400   : > { %v2959_v6 = vadd.f32 %v2958_v4, %v2885_v12  ;;  %v3043_v5 = vmul.f32 %v3006_v44, %v2957_v36  ;;  %v3310_v4 = vld [vmem:[#allocation2 + $0x380] sm:$0xff]  ;;  %v3279_v12 = vld [vmem:[#allocation2 + $0x288] sm:$0xff] }
 0x401   : > { %v2887_v17 = vpop.f32.mrf.mxu1  ;;  %v3447_v36 = vld [vmem:[#allocation2 + $0x7c8] sm:$0xff] }
 0x402   : > { %v2961_v9 = vadd.f32 %v2960_v8, %v2887_v17  ;;  %v3044_v30 = vmul.f32 %v3006_v44, %v2959_v6  ;;  %v3107_v55 = vadd.f32 %v3070_v0, %v3043_v5  ;;  %v3302_v8 = vld [vmem:[#allocation2 + $0x340] sm:$0xff]  ;;  %v3399_v5 = vld [vmem:[#allocation2 + $0x648] sm:$0xff] }
 0x403   : > { %v2889_v13 = vpop.f32.mrf.mxu1  ;;  %v3278_v17 = vld [vmem:[#allocation2 + $0x280] sm:$0xff] }
 0x404   : > { %v2963_v59 = vadd.f32 %v2962_v15, %v2889_v13  ;;  %v3045_v43 = vmul.f32 %v3011_v2, %v2961_v9  ;;  %v3108_v7 = vadd.f32 %v3070_v0, %v3044_v30  ;;  %v3123_v10 = vmax.f32 %v3107_v55, 0.0  ;;  %v3295_v15 = vld [vmem:[#allocation2 + $0x308] sm:$0xff]  ;;  %v3230_v6 = vld [vmem:[#allocation2 + $0x100] sm:$0xff] }
 0x405   : > { %v2893_v46 = vpop.f32.mrf.mxu1  ;;  %v3263_v13 = vld [vmem:[#allocation2 + $0x208] sm:$0xff]  ;;  %v3222_v44 = vld [vmem:[#allocation2 + $0xc0] sm:$0xff] }
 0x406   : > { %v2967_v27 = vadd.f32 %v2966_v21, %v2893_v46  ;;  %v3046_v22 = vmul.f32 %v3011_v2, %v2963_v59  ;;  %v3109_v34 = vadd.f32 %v3075_v19, %v3045_v43  ;;  %v3124_v42 = vmax.f32 %v3108_v7, 0.0  ;;  %v3286_v21 = vld [vmem:[#allocation2 + $0x2c0] sm:$0xff]  ;;  %v3255_v46 = vld [vmem:[#allocation2 + $0x1c8] sm:$0xff] }
 0x407   : > { %v2895_v51 = vpop.f32.mrf.mxu1  ;;  %v3247_v59 = vld [vmem:[#allocation2 + $0x188] sm:$0xff]  ;;  %v3438_v30 = vld [vmem:[#allocation2 + $0x780] sm:$0xff] }
 0x408   : > { %v2969_v16 = vadd.f32 %v2968_v60, %v2895_v51  ;;  %v3047_v47 = vmul.f32 %v3016_v3, %v2967_v27  ;;  %v3110_v28 = vadd.f32 %v3075_v19, %v3046_v22  ;;  %v3125_v61 = vmax.f32 %v3109_v34, 0.0  ;;  %v3270_v60 = vld [vmem:[#allocation2 + $0x240] sm:$0xff]  ;;  %v3239_v2 = vld [vmem:[#allocation2 + $0x148] sm:$0xff] }
 0x409   : > { %v2897_v38 = vpop.f32.mrf.mxu1  ;;  %v3246_v51 = vld [vmem:[#allocation2 + $0x180] sm:$0xff]  ;;  %v3215_v9 = vld [vmem:[#allocation2 + $0x88] sm:$0xff] }
 0x40a   : > { %v3048_v45 = vmul.f32 %v3016_v3, %v2969_v16  ;;  %v2971_v50 = vadd.f32 %v2970_v24, %v2897_v38  ;;  %v3111_v49 = vadd.f32 %v3080_v54, %v3047_v47  ;;  %v3126_v11 = vmax.f32 %v3110_v28, 0.0  ;;  %v3303_v3 = vld [vmem:[#allocation2 + $0x348] sm:$0xff]  ;;  %v3254_v24 = vld [vmem:[#allocation2 + $0x1c0] sm:$0xff] }
 0x40b   : > { %v2899_v33 = vpop.f32.mrf.mxu1  ;;  %v3139_v58 = vpack.c.bf16 %v3125_v61, %v3123_v10  ;;  %v3238_v27 = vld [vmem:[#allocation2 + $0x140] sm:$0xff]  ;;  %v3231_v16 = vld [vmem:[#allocation2 + $0x108] sm:$0xff]  ;;  %v3344_v10 = vld [vmem:[#allocation2 + $0x490] sm:$0xff] }
 0x40c   : > { %v2973_v25 = vadd.f32 %v2972_v26, %v2899_v33  ;;  %v3049_v57 = vmul.f32 %v3021_v23, %v2971_v50  ;;  %v3112_v29 = vadd.f32 %v3080_v54, %v3048_v45  ;;  %v3127_v63 = vmax.f32 %v3111_v49, 0.0  ;;  %v3294_v54 = vld [vmem:[#allocation2 + $0x300] sm:$0xff]  ;;  %v3223_v38 = vld [vmem:[#allocation2 + $0xc8] sm:$0xff]  ;;  %3584 = vmatpush2.msra.mxu1 %v3344_v10 }
 0x40d   : > { %v3140_v20 = vpack.c.bf16 %v3126_v11, %v3124_v42  ;;  %v3214_v22 = vld [vmem:[#allocation2 + $0x80] sm:$0xff]  ;;  %v3207_v26 = vld [vmem:[#allocation2 + $0x48] sm:$0xff] }
 0x40e   : > { %v3050_v39 = vmul.f32 %v3021_v23, %v2973_v25  ;;  %v3113_v14 = vadd.f32 %v3085_v48, %v3049_v57  ;;  %v3128_v62 = vmax.f32 %v3112_v29, 0.0  ;;  %v3262_v23 = vld [vmem:[#allocation2 + $0x200] sm:$0xff]  ;;  %v3199_v50 = vld [vmem:[#allocation2 + $0x8] sm:$0xff] }
 0x40f   : > { %v3206_v45 = vld [vmem:[#allocation2 + $0x40] sm:$0xff]  ;;  %v3439_v25 = vld [vmem:[#allocation2 + $0x788] sm:$0xff] }
 0x410   : > { %v3114_v52 = vadd.f32 %v3085_v48, %v3050_v39  ;;  %v3129_v1 = vmax.f32 %v3113_v14, 0.0  ;;  %v3271_v48 = vld [vmem:[#allocation2 + $0x248] sm:$0xff]  ;;  %v3198_v33 = vld [vmem:[#allocation2] sm:$0xff] }
 0x411   : > { %v3446_v47 = vld [vmem:[#allocation2 + $0x7c0] sm:$0xff]  ;;  %v3431_v57 = vld [vmem:[#allocation2 + $0x748] sm:$0xff] }
 0x412   : > { %v3130_v32 = vmax.f32 %v3114_v52, 0.0  ;;  %v3141_v40 = vpack.c.bf16 %v3129_v1, %v3127_v63  ;;  %v3430_v19 = vld [vmem:[#allocation2 + $0x740] sm:$0xff]  ;;  %v3423_v43 = vld [vmem:[#allocation2 + $0x708] sm:$0xff] }
 0x413   : > { %v3422_v39 = vld [vmem:[#allocation2 + $0x700] sm:$0xff]  ;;  %v3415_v28 = vld [vmem:[#allocation2 + $0x6c8] sm:$0xff] }
 0x414   : > { %v3142_v53 = vpack.c.bf16 %v3130_v32, %v3128_v62  ;;  %v3414_v29 = vld [vmem:[#allocation2 + $0x6c0] sm:$0xff]  ;;  %v3407_v14 = vld [vmem:[#allocation2 + $0x688] sm:$0xff] }
 0x415   : > { %v3406_v0 = vld [vmem:[#allocation2 + $0x680] sm:$0xff]  ;;  %v3391_v52 = vld [vmem:[#allocation2 + $0x608] sm:$0xff] }
 0x416   : > { %3169 = vmatprep.subr.bf16.mxu0 %v3142_v53  ;;  %v3398_v49 = vld [vmem:[#allocation2 + $0x640] sm:$0xff]  ;;  %v3383_v34 = vld [vmem:[#allocation2 + $0x5c8] sm:$0xff] }
 0x417   : > { %3170 = vmatpush1.bf16.msra.mxu0 %v3141_v40  ;;  %v3390_v7 = vld [vmem:[#allocation2 + $0x600] sm:$0xff]  ;;  %v3375_v32 = vld [vmem:[#allocation2 + $0x588] sm:$0xff] }
 0x418   : > { %3171 = vmatprep.subr.bf16.mxu0 %v3140_v20  ;;  %v3382_v1 = vld [vmem:[#allocation2 + $0x5c0] sm:$0xff]  ;;  %v3367_v62 = vld [vmem:[#allocation2 + $0x548] sm:$0xff] }
 0x419   : > { %v3374_v11 = vld [vmem:[#allocation2 + $0x580] sm:$0xff]  ;;  %v3359_v63 = vld [vmem:[#allocation2 + $0x508] sm:$0xff] }
 0x41a   : > { %v3366_v55 = vld [vmem:[#allocation2 + $0x540] sm:$0xff]  ;;  %v3351_v53 = vld [vmem:[#allocation2 + $0x4c8] sm:$0xff] }
 0x41b   : > { %3172 = vmatpush1.bf16.msra.mxu0 %v3139_v58  ;;  %v3358_v42 = vld [vmem:[#allocation2 + $0x500] sm:$0xff]  ;;  %v3343_v40 = vld [vmem:[#allocation2 + $0x488] sm:$0xff] }
 0x41c   : > { %3454 = vmatprep.subr.mxu0 %v3319_v37  ;;  %v3350_v61 = vld [vmem:[#allocation2 + $0x4c0] sm:$0xff]  ;;  %v3335_v58 = vld [vmem:[#allocation2 + $0x448] sm:$0xff]  ;;  %v3337_v37 = vld [vmem:[#allocation2 + $0x458] sm:$0xff] }
 0x41d   : > { %v3342_v20 = vld [vmem:[#allocation2 + $0x480] sm:$0xff]  ;;  %3585 = vmatprep.subr.mxu1 %v3337_v37  ;;  %v3243_v37 = vld [vmem:[#allocation2 + $0x168] sm:$0xff] }
 0x41e   : > { %4574 = vmatmul.mubr.msk.bf16.vlgmr.msra.gmra.mxu0 %vm1454_vm6, %v3147_v31  ;;  %v3334_v31 = vld [vmem:[#allocation2 + $0x440] sm:$0xff] }
 0x41f   : > { %3455 = vmatpush1.msra.mxu0 %v3318_v35  ;;  %v3336_v35 = vld [vmem:[#allocation2 + $0x450] sm:$0xff]  ;;  %v3250_v10 = vld [vmem:[#allocation2 + $0x1a0] sm:$0xff] }
 0x420   : > { %3456 = vmatprep.subr.mxu0 %v3311_v41  ;;  %3586 = vmatpush2.msra.mxu1 %v3336_v35  ;;  %v3327_v41 = vld [vmem:[#allocation2 + $0x408] sm:$0xff]  ;;  %v3242_v35 = vld [vmem:[#allocation2 + $0x160] sm:$0xff] }
 0x421   : > { %3457 = vmatpush1.msra.mxu0 %v3310_v4  ;;  %v3329_v4 = vld [vmem:[#allocation2 + $0x418] sm:$0xff] }
 0x422   : > { %3458 = vmatprep.subr.mxu0 %v3303_v3  ;;  %v3326_v3 = vld [vmem:[#allocation2 + $0x400] sm:$0xff]  ;;  %3587 = vmatprep.subr.mxu1 %v3329_v4  ;;  %v3235_v4 = vld [vmem:[#allocation2 + $0x128] sm:$0xff] }
 0x423   : > { %3459 = vmatpush1.msra.mxu0 %v3302_v8  ;;  %v3328_v8 = vld [vmem:[#allocation2 + $0x410] sm:$0xff] }
 0x424   : > { %3460 = vmatprep.subr.mxu0 %v3295_v15  ;;  %3588 = vmatpush2.msra.mxu1 %v3328_v8  ;;  %v3323_v15 = vld [vmem:[#allocation2 + $0x3e8] sm:$0xff] }
 0x425   : > { %3461 = vmatpush1.msra.mxu0 %v3294_v54  ;;  %v3325_v54 = vld [vmem:[#allocation2 + $0x3f8] sm:$0xff] }
 0x426   : > { %3462 = vmatprep.subr.mxu0 %v3287_v18  ;;  %3667 = vmatprep.subr.mxu1 %v3325_v54  ;;  %v6444_v18 = vpop.f32.mrf.mxu0  ;;  %v3236_v54 = vld [vmem:[#allocation2 + $0x130] sm:$0xff] }
 0x427   : > { %3463 = vmatpush1.msra.mxu0 %v3286_v21 }
 0x428   : > { %3464 = vmatprep.subr.mxu0 %v3279_v12  ;;  %v6446_v21 = vpop.f32.mrf.mxu0 }
 0x429   : > { %3465 = vmatpush1.msra.mxu0 %v3278_v17 }
 0x42a   : > { %3466 = vmatprep.subr.mxu0 %v3271_v48  ;;  %v6448_v12 = vpop.f32.mrf.mxu0 }
 0x42b   : > { %3467 = vmatpush1.msra.mxu0 %v3270_v60 }
 0x42c   : > { %3468 = vmatprep.subr.mxu0 %v3263_v13  ;;  %v6450_v17 = vpop.f32.mrf.mxu0 }
 0x42d   : > { %3469 = vmatpush1.msra.mxu0 %v3262_v23 }
 0x42e   : > { %3470 = vmatprep.subr.mxu0 %v3255_v46  ;;  %v6452_v48 = vpop.f32.mrf.mxu0 }
 0x42f   : > { %3471 = vmatpush1.msra.mxu0 %v3254_v24  ;;  %v3152_v24 = vpop.permute.xlu0 %3151 }
 0x430   : > { %3472 = vmatprep.subr.mxu0 %v3247_v59  ;;  %v6454_v60 = vpop.f32.mrf.mxu0 }
 0x431   : > { %3473 = vmatpush1.msra.mxu0 %v3246_v51 }
 0x432   : > { %3474 = vmatprep.subr.mxu0 %v3239_v2  ;;  %v6456_v13 = vpop.f32.mrf.mxu0 }
 0x433   : > { %3475 = vmatpush1.msra.mxu0 %v3238_v27  ;;  %v3322_v27 = vld [vmem:[#allocation2 + $0x3e0] sm:$0xff] }
 0x434   : > { %3476 = vmatprep.subr.mxu0 %v3231_v16  ;;  %v6458_v23 = vpop.f32.mrf.mxu0  ;;  %v3324_v16 = vld [vmem:[#allocation2 + $0x3f0] sm:$0xff] }
 0x435   : > { %3477 = vmatpush1.msra.mxu0 %v3230_v6 }
 0x436   : > { %3478 = vmatprep.subr.mxu0 %v3223_v38  ;;  %v3315_v38 = vld [vmem:[#allocation2 + $0x3a8] sm:$0xff] }
 0x437   : > { %3479 = vmatpush1.msra.mxu0 %v3222_v44  ;;  %v3317_v44 = vld [vmem:[#allocation2 + $0x3b8] sm:$0xff] }
 0x438   : > { %3480 = vmatprep.subr.mxu0 %v3215_v9 }
 0x439   : > { %3481 = vmatpush1.msra.mxu0 %v3214_v22  ;;  %v3314_v22 = vld [vmem:[#allocation2 + $0x3a0] sm:$0xff] }
 0x43a   : > { %3482 = vmatprep.subr.mxu0 %v3207_v26  ;;  %v3316_v26 = vld [vmem:[#allocation2 + $0x3b0] sm:$0xff] }
 0x43b   : > { %3483 = vmatpush1.msra.mxu0 %v3206_v45  ;;  %v3307_v45 = vld [vmem:[#allocation2 + $0x368] sm:$0xff] }
 0x43c   : > { %3484 = vmatprep.subr.mxu0 %v3199_v50  ;;  %v3309_v50 = vld [vmem:[#allocation2 + $0x378] sm:$0xff] }
 0x43d   : > { %3485 = vmatpush1.msra.mxu0 %v3198_v33  ;;  %v3306_v33 = vld [vmem:[#allocation2 + $0x360] sm:$0xff] }
 0x43e   : > { %3486 = vmatprep.subr.mxu0 %v3447_v36  ;;  %v3308_v36 = vld [vmem:[#allocation2 + $0x370] sm:$0xff] }
 0x43f   : > { %3487 = vmatpush2.msra.mxu0 %v3446_v47  ;;  %v3299_v47 = vld [vmem:[#allocation2 + $0x328] sm:$0xff] }
 0x440   : > { %3488 = vmatprep.subr.mxu0 %v3439_v25  ;;  %v3301_v25 = vld [vmem:[#allocation2 + $0x338] sm:$0xff] }
 0x441   : > { %3489 = vmatpush2.msra.mxu0 %v3438_v30  ;;  %v3298_v30 = vld [vmem:[#allocation2 + $0x320] sm:$0xff] }
 0x442   : > { %3490 = vmatprep.subr.mxu0 %v3431_v57  ;;  %v3300_v57 = vld [vmem:[#allocation2 + $0x330] sm:$0xff] }
 0x443   : > { %3491 = vmatpush2.msra.mxu0 %v3430_v19  ;;  %v3291_v19 = vld [vmem:[#allocation2 + $0x2e8] sm:$0xff] }
 0x444   : > { %3492 = vmatprep.subr.mxu0 %v3423_v43  ;;  %v3293_v43 = vld [vmem:[#allocation2 + $0x2f8] sm:$0xff] }
 0x445   : > { %3493 = vmatpush2.msra.mxu0 %v3422_v39  ;;  %v3290_v39 = vld [vmem:[#allocation2 + $0x2e0] sm:$0xff] }
 0x446   : > { %3494 = vmatprep.subr.mxu0 %v3415_v28  ;;  %v3292_v28 = vld [vmem:[#allocation2 + $0x2f0] sm:$0xff] }
 0x447   : > { %3495 = vmatpush2.msra.mxu0 %v3414_v29  ;;  %v3283_v29 = vld [vmem:[#allocation2 + $0x2a8] sm:$0xff] }
 0x448   : > { %3496 = vmatprep.subr.mxu0 %v3407_v14  ;;  %v3285_v14 = vld [vmem:[#allocation2 + $0x2b8] sm:$0xff] }
 0x449   : > { %3497 = vmatpush2.msra.mxu0 %v3406_v0  ;;  %v3282_v0 = vld [vmem:[#allocation2 + $0x2a0] sm:$0xff] }
 0x44a   : > { %3498 = vmatprep.subr.mxu0 %v3399_v5  ;;  %v3284_v5 = vld [vmem:[#allocation2 + $0x2b0] sm:$0xff] }
 0x44b   : > { %3499 = vmatpush2.msra.mxu0 %v3398_v49  ;;  %v3275_v49 = vld [vmem:[#allocation2 + $0x268] sm:$0xff] }
 0x44c   : > { %3500 = vmatprep.subr.mxu0 %v3391_v52  ;;  %v3277_v52 = vld [vmem:[#allocation2 + $0x278] sm:$0xff] }
 0x44d   : > { %3501 = vmatpush2.msra.mxu0 %v3390_v7  ;;  %v3274_v7 = vld [vmem:[#allocation2 + $0x260] sm:$0xff] }
 0x44e   : > { %3502 = vmatprep.subr.mxu0 %v3383_v34  ;;  %v3276_v34 = vld [vmem:[#allocation2 + $0x270] sm:$0xff] }
 0x44f   : > { %3503 = vmatpush2.msra.mxu0 %v3382_v1  ;;  %v3267_v1 = vld [vmem:[#allocation2 + $0x228] sm:$0xff] }
 0x450   : > { %3504 = vmatprep.subr.mxu0 %v3375_v32  ;;  %v3269_v32 = vld [vmem:[#allocation2 + $0x238] sm:$0xff] }
 0x451   : > { %3505 = vmatpush2.msra.mxu0 %v3374_v11  ;;  %v3266_v11 = vld [vmem:[#allocation2 + $0x220] sm:$0xff] }
 0x452   : > { %3506 = vmatprep.subr.mxu0 %v3367_v62  ;;  %v3268_v62 = vld [vmem:[#allocation2 + $0x230] sm:$0xff] }
 0x453   : > { %3507 = vmatpush2.msra.mxu0 %v3366_v55  ;;  %v3259_v55 = vld [vmem:[#allocation2 + $0x1e8] sm:$0xff] }
 0x454   : > { %3508 = vmatprep.subr.mxu0 %v3359_v63  ;;  %v3261_v63 = vld [vmem:[#allocation2 + $0x1f8] sm:$0xff] }
 0x455   : > { %3509 = vmatpush2.msra.mxu0 %v3358_v42  ;;  %v3258_v42 = vld [vmem:[#allocation2 + $0x1e0] sm:$0xff] }
 0x456   : > { %3510 = vmatprep.subr.mxu0 %v3351_v53  ;;  %v3260_v53 = vld [vmem:[#allocation2 + $0x1f0] sm:$0xff] }
 0x457   : > { %3511 = vmatpush2.msra.mxu0 %v3350_v61  ;;  %v3251_v61 = vld [vmem:[#allocation2 + $0x1a8] sm:$0xff] }
 0x458   : > { %3512 = vmatprep.subr.mxu0 %v3343_v40  ;;  %v3253_v40 = vld [vmem:[#allocation2 + $0x1b8] sm:$0xff] }
 0x459   : > { %3513 = vmatpush2.msra.mxu0 %v3342_v20  ;;  %v6464_v20 = vpop.f32.mrf.mxu1 }
 0x45a   : > { %3514 = vmatprep.subr.mxu0 %v3335_v58  ;;  %v3252_v58 = vld [vmem:[#allocation2 + $0x1b0] sm:$0xff] }
 0x45b   : > { %3515 = vmatpush2.msra.mxu0 %v3334_v31  ;;  %v3245_v31 = vld [vmem:[#allocation2 + $0x178] sm:$0xff]  ;;  %v6466_v8 = vpop.f32.mrf.mxu1 }
 0x45c   : > { %3516 = vmatprep.subr.mxu0 %v3327_v41  ;;  %v3244_v41 = vld [vmem:[#allocation2 + $0x170] sm:$0xff] }
 0x45d   : > { %3517 = vmatpush2.msra.mxu0 %v3326_v3  ;;  %v3237_v3 = vld [vmem:[#allocation2 + $0x138] sm:$0xff] }
 0x45e   : > { %3596 = vmatprep.subr.mxu0 %v3323_v15  ;;  %v3234_v15 = vld [vmem:[#allocation2 + $0x120] sm:$0xff] }
 0x4de   : > { %v3191_v46 = vpop.f32.mrf.mxu0 }
 0x4df   : > { %v6460_v2 = vadd.f32 %v3191_v46, %v3152_v24  ;;  %v3227_v46 = vld [vmem:[#allocation2 + $0xe8] sm:$0xff] }
 0x4e0   : > { %v3193_v59 = vpop.f32.mrf.mxu0 }
 0x4e1   : > { %v3194_v51 = vadd.f32 %v3193_v59, %v3152_v24  ;;  %v3229_v24 = vld [vmem:[#allocation2 + $0xf8] sm:$0xff]  ;;  %v3226_v59 = vld [vmem:[#allocation2 + $0xe0] sm:$0xff] }
 0x4e2   : > { %v3195_v6 = vpop.f32.mrf.mxu0 }
 0x4e3   : > { %3518 = vmatprep.mubr.f32.mxu0 %v3194_v51  ;;  %3589 = vmatprep.mubr.f32.mxu1 %v3194_v51  ;;  %v6468_v6 = vpop.f32.mrf.mxu1 }
 0x4e4   : > { %3519 = vmatmul.mubr.f32.vlgmr.msra.gmra.mxu0 %v6460_v2  ;;  %3590 = vmatmul.mubr.f32.vlgmr.msra.gmra.mxu1 %v6460_v2  ;;  %v3196_v9 = vpop.f32.mrf.mxu0 }
 0x4e5   : > { %3597 = vmatpush1.msra.mxu0 %v3322_v27  ;;  %3668 = vmatpush1.msra.mxu1 %v3324_v16  ;;  %v3219_v27 = vld [vmem:[#allocation2 + $0xa8] sm:$0xff]  ;;  %v3221_v16 = vld [vmem:[#allocation2 + $0xb8] sm:$0xff] }
 0x4e6   : > { %3598 = vmatprep.subr.mxu0 %v3315_v38  ;;  %3660 = vmatprep.mubr.f32.mxu0 %v3194_v51  ;;  %v3218_v38 = vld [vmem:[#allocation2 + $0xa0] sm:$0xff]  ;;  %v3211_v9 = vld [vmem:[#allocation2 + $0x68] sm:$0xff] }
 0x4e7   : > { %3669 = vmatprep.subr.mxu1 %v3317_v44  ;;  %3731 = vmatprep.mubr.f32.mxu1 %v3194_v51  ;;  %v3228_v51 = vld [vmem:[#allocation2 + $0xf0] sm:$0xff] }
 0x4e8   : > { %3599 = vmatpush1.msra.mxu0 %v3314_v22  ;;  %3670 = vmatpush1.msra.mxu1 %v3316_v26  ;;  %v3220_v44 = vld [vmem:[#allocation2 + $0xb0] sm:$0xff]  ;;  %v3213_v22 = vld [vmem:[#allocation2 + $0x78] sm:$0xff]  ;;  %v3210_v26 = vld [vmem:[#allocation2 + $0x60] sm:$0xff] }
 0x4e9   : > { %3600 = vmatprep.subr.mxu0 %v3307_v45  ;;  %3671 = vmatprep.subr.mxu1 %v3309_v50  ;;  %v3212_v45 = vld [vmem:[#allocation2 + $0x70] sm:$0xff]  ;;  %v3203_v50 = vld [vmem:[#allocation2 + $0x28] sm:$0xff] }
 0x4ea   : > { %3601 = vmatpush1.msra.mxu0 %v3306_v33  ;;  %3672 = vmatpush1.msra.mxu1 %v3308_v36  ;;  %v3205_v33 = vld [vmem:[#allocation2 + $0x38] sm:$0xff]  ;;  %v6470_v36 = vpop.f32.mrf.mxu1 }
 0x4eb   : > { %3602 = vmatprep.subr.mxu0 %v3299_v47  ;;  %3673 = vmatprep.subr.mxu1 %v3301_v25  ;;  %v3202_v47 = vld [vmem:[#allocation2 + $0x20] sm:$0xff]  ;;  %v3204_v25 = vld [vmem:[#allocation2 + $0x30] sm:$0xff] }
 0x4ec   : > { %3603 = vmatpush1.msra.mxu0 %v3298_v30  ;;  %3674 = vmatpush1.msra.mxu1 %v3300_v57  ;;  %v3451_v30 = vld [vmem:[#allocation2 + $0x7e8] sm:$0xff]  ;;  %v3453_v57 = vld [vmem:[#allocation2 + $0x7f8] sm:$0xff] }
 0x4ed   : > { %3604 = vmatprep.subr.mxu0 %v3291_v19  ;;  %3675 = vmatprep.subr.mxu1 %v3293_v43  ;;  %v3450_v19 = vld [vmem:[#allocation2 + $0x7e0] sm:$0xff]  ;;  %v3452_v43 = vld [vmem:[#allocation2 + $0x7f0] sm:$0xff] }
 0x4ee   : > { %3605 = vmatpush1.msra.mxu0 %v3290_v39  ;;  %3676 = vmatpush1.msra.mxu1 %v3292_v28  ;;  %v3443_v39 = vld [vmem:[#allocation2 + $0x7a8] sm:$0xff]  ;;  %v3445_v28 = vld [vmem:[#allocation2 + $0x7b8] sm:$0xff] }
 0x4ef   : > { %3606 = vmatprep.subr.mxu0 %v3283_v29  ;;  %3677 = vmatprep.subr.mxu1 %v3285_v14  ;;  %v6472_v29 = vpop.f32.mrf.mxu1  ;;  %v3442_v14 = vld [vmem:[#allocation2 + $0x7a0] sm:$0xff] }
 0x4f0   : > { %3607 = vmatpush1.msra.mxu0 %v3282_v0  ;;  %3678 = vmatpush1.msra.mxu1 %v3284_v5  ;;  %v3444_v0 = vld [vmem:[#allocation2 + $0x7b0] sm:$0xff]  ;;  %v3435_v5 = vld [vmem:[#allocation2 + $0x768] sm:$0xff] }
 0x4f1   : > { %3608 = vmatprep.subr.mxu0 %v3275_v49  ;;  %3679 = vmatprep.subr.mxu1 %v3277_v52  ;;  %v3437_v49 = vld [vmem:[#allocation2 + $0x778] sm:$0xff]  ;;  %v3434_v52 = vld [vmem:[#allocation2 + $0x760] sm:$0xff] }
 0x4f2   : > { %3609 = vmatpush1.msra.mxu0 %v3274_v7  ;;  %3680 = vmatpush1.msra.mxu1 %v3276_v34  ;;  %v3436_v7 = vld [vmem:[#allocation2 + $0x770] sm:$0xff]  ;;  %v3427_v34 = vld [vmem:[#allocation2 + $0x728] sm:$0xff] }
 0x4f3   : > { %3610 = vmatprep.subr.mxu0 %v3267_v1  ;;  %3681 = vmatprep.subr.mxu1 %v3269_v32  ;;  %v3429_v1 = vld [vmem:[#allocation2 + $0x738] sm:$0xff]  ;;  %v2915_v32 = vpop.f32.mrf.mxu1 }
 0x4f4   : > { %3611 = vmatpush1.msra.mxu0 %v3266_v11  ;;  %3682 = vmatpush1.msra.mxu1 %v3268_v62  ;;  %v3426_v11 = vld [vmem:[#allocation2 + $0x720] sm:$0xff]  ;;  %v3428_v62 = vld [vmem:[#allocation2 + $0x730] sm:$0xff] }
 0x4f5   : > { %3612 = vmatprep.subr.mxu0 %v3259_v55  ;;  %3683 = vmatprep.subr.mxu1 %v3261_v63  ;;  %v3419_v55 = vld [vmem:[#allocation2 + $0x6e8] sm:$0xff]  ;;  %v3421_v63 = vld [vmem:[#allocation2 + $0x6f8] sm:$0xff] }
 0x4f6   : > { %3613 = vmatpush1.msra.mxu0 %v3258_v42  ;;  %3684 = vmatpush1.msra.mxu1 %v3260_v53  ;;  %v6474_v42 = vpop.permute.xlu0 %3040  ;;  %v3418_v53 = vld [vmem:[#allocation2 + $0x6e0] sm:$0xff] }
 0x4f7   : > { %3614 = vmatprep.subr.mxu0 %v3251_v61  ;;  %3685 = vmatprep.subr.mxu1 %v3253_v40  ;;  %v3420_v61 = vld [vmem:[#allocation2 + $0x6f0] sm:$0xff]  ;;  %v3411_v40 = vld [vmem:[#allocation2 + $0x6a8] sm:$0xff] }
 0x4f8   : > { %3615 = vmatpush1.msra.mxu0 %v3250_v10  ;;  %3686 = vmatpush1.msra.mxu1 %v3252_v58  ;;  %v3413_v10 = vld [vmem:[#allocation2 + $0x6b8] sm:$0xff]  ;;  %v6476_v58 = vpop.permute.xlu1 %3035 }
 0x4f9   : > { %3616 = vmatprep.subr.mxu0 %v3243_v37  ;;  %3687 = vmatprep.subr.mxu1 %v3245_v31  ;;  %v2917_v37 = vpop.f32.mrf.mxu1  ;;  %v3410_v31 = vld [vmem:[#allocation2 + $0x6a0] sm:$0xff] }
 0x4fa   : > { %3617 = vmatpush1.msra.mxu0 %v3242_v35  ;;  %3688 = vmatpush1.msra.mxu1 %v3244_v41  ;;  %v3412_v35 = vld [vmem:[#allocation2 + $0x6b0] sm:$0xff]  ;;  %v3403_v41 = vld [vmem:[#allocation2 + $0x668] sm:$0xff] }
 0x4fb   : > { %3618 = vmatprep.subr.mxu0 %v3235_v4  ;;  %3689 = vmatprep.subr.mxu1 %v3237_v3  ;;  %v3405_v4 = vld [vmem:[#allocation2 + $0x678] sm:$0xff]  ;;  %v3402_v3 = vld [vmem:[#allocation2 + $0x660] sm:$0xff] }
 0x4fc   : > { %3619 = vmatpush1.msra.mxu0 %v3234_v15  ;;  %3690 = vmatpush1.msra.mxu1 %v3236_v54  ;;  %v3404_v15 = vld [vmem:[#allocation2 + $0x670] sm:$0xff]  ;;  %v3395_v54 = vld [vmem:[#allocation2 + $0x628] sm:$0xff] }
 0x4fd   : > { %3620 = vmatprep.subr.mxu0 %v3227_v46  ;;  %3691 = vmatprep.subr.mxu1 %v3229_v24  ;;  %v3397_v46 = vld [vmem:[#allocation2 + $0x638] sm:$0xff]  ;;  %v6478_v24 = vpop.permute.xlu0 %3104 }
 0x4fe   : > { %3621 = vmatpush1.msra.mxu0 %v3226_v59  ;;  %3692 = vmatpush1.msra.mxu1 %v3228_v51  ;;  %v2919_v59 = vpop.f32.mrf.mxu1  ;;  %v3394_v51 = vld [vmem:[#allocation2 + $0x620] sm:$0xff] }
 0x4ff   : > { %3622 = vmatprep.subr.mxu0 %v3219_v27  ;;  %3693 = vmatprep.subr.mxu1 %v3221_v16  ;;  %v3396_v27 = vld [vmem:[#allocation2 + $0x630] sm:$0xff]  ;;  %v3387_v16 = vld [vmem:[#allocation2 + $0x5e8] sm:$0xff] }
 0x500   : > { %3623 = vmatpush1.msra.mxu0 %v3218_v38  ;;  %3694 = vmatpush1.msra.mxu1 %v3220_v44  ;;  %v3389_v38 = vld [vmem:[#allocation2 + $0x5f8] sm:$0xff]  ;;  %v6480_v44 = vpop.permute.xlu1 %3099 }
 0x501   : > { %3624 = vmatprep.subr.mxu0 %v3211_v9  ;;  %3695 = vmatprep.subr.mxu1 %v3213_v22  ;;  %v3386_v9 = vld [vmem:[#allocation2 + $0x5e0] sm:$0xff]  ;;  %v3388_v22 = vld [vmem:[#allocation2 + $0x5f0] sm:$0xff] }
 0x502   : > { %3625 = vmatpush1.msra.mxu0 %v3210_v26  ;;  %3696 = vmatpush1.msra.mxu1 %v3212_v45  ;;  %v2993_v26 = vadd.f32 %v6458_v23, %v2919_v59  ;;  %v3379_v45 = vld [vmem:[#allocation2 + $0x5a8] sm:$0xff]  ;;  %v3031_v23 = vpop.permute.xlu0 %3030 }
 0x503   : > { %3626 = vmatprep.subr.mxu0 %v3203_v50  ;;  %3697 = vmatprep.subr.mxu1 %v3205_v33  ;;  %v3381_v50 = vld [vmem:[#allocation2 + $0x5b8] sm:$0xff]  ;;  %v2991_v33 = vadd.f32 %v6456_v13, %v2917_v37  ;;  %v3370_v13 = vld [vmem:[#allocation2 + $0x560] sm:$0xff] }
 0x504   : > { %3627 = vmatpush1.msra.mxu0 %v3202_v47  ;;  %3698 = vmatpush1.msra.mxu1 %v3204_v25  ;;  %v3378_v47 = vld [vmem:[#allocation2 + $0x5a0] sm:$0xff]  ;;  %v3380_v25 = vld [vmem:[#allocation2 + $0x5b0] sm:$0xff] }
 0x505   : > { %3628 = vmatprep.subr.mxu0 %v3451_v30  ;;  %3699 = vmatprep.subr.mxu1 %v3453_v57  ;;  %v2983_v30 = vadd.f32 %v6450_v17, %v6470_v36  ;;  %v2989_v57 = vadd.f32 %v6454_v60, %v2915_v32  ;;  %v3363_v17 = vld [vmem:[#allocation2 + $0x528] sm:$0xff]  ;;  %v3365_v60 = vld [vmem:[#allocation2 + $0x538] sm:$0xff]  ;;  %v3026_v36 = vpop.permute.xlu1 %3025 }
 0x506   : > { %3629 = vmatpush2.msra.mxu0 %v3450_v19  ;;  %3700 = vmatpush2.msra.mxu1 %v3452_v43  ;;  %v3371_v19 = vld [vmem:[#allocation2 + $0x568] sm:$0xff]  ;;  %v3373_v43 = vld [vmem:[#allocation2 + $0x578] sm:$0xff] }
 0x507   : > { %3630 = vmatprep.subr.mxu0 %v3443_v39  ;;  %3701 = vmatprep.subr.mxu1 %v3445_v28  ;;  %v2987_v39 = vadd.f32 %v6452_v48, %v6472_v29  ;;  %v3372_v28 = vld [vmem:[#allocation2 + $0x570] sm:$0xff]  ;;  %v3362_v48 = vld [vmem:[#allocation2 + $0x520] sm:$0xff] }
 0x508   : > { %3631 = vmatpush2.msra.mxu0 %v3442_v14  ;;  %3702 = vmatpush2.msra.mxu1 %v3444_v0  ;;  %v2979_v14 = vadd.f32 %v6446_v21, %v6466_v8  ;;  %v3058_v0 = vmul.f32 %v6474_v42, %v2993_v26  ;;  %v3364_v29 = vld [vmem:[#allocation2 + $0x530] sm:$0xff]  ;;  %v3355_v21 = vld [vmem:[#allocation2 + $0x4e8] sm:$0xff]  ;;  %v3357_v8 = vld [vmem:[#allocation2 + $0x4f8] sm:$0xff] }
 0x509   : > { %3632 = vmatprep.subr.mxu0 %v3435_v5  ;;  %3703 = vmatprep.subr.mxu1 %v3437_v49  ;;  %v2981_v5 = vadd.f32 %v6448_v12, %v6468_v6  ;;  %v3057_v49 = vmul.f32 %v6474_v42, %v2991_v33  ;;  %v3354_v12 = vld [vmem:[#allocation2 + $0x4e0] sm:$0xff]  ;;  %v3356_v6 = vld [vmem:[#allocation2 + $0x4f0] sm:$0xff]  ;;  %v3090_v37 = vpop.permute.xlu1 %3089 }
 0x50a   : > { %3633 = vmatpush2.msra.mxu0 %v3434_v52  ;;  %3704 = vmatpush2.msra.mxu1 %v3436_v7  ;;  %v3054_v52 = vmul.f32 %v3031_v23, %v2983_v30  ;;  %v3056_v7 = vmul.f32 %v6476_v58, %v2989_v57  ;;  %v3052_v32 = vmul.f32 %v3026_v36, %v2979_v14  ;;  %v4575_v30 = vld [vmem:[%s6594_s7 + $0x1] sm:$0x1]  ;;  %v3958_v57 = vld [vmem:[#allocation2 + $0x3c8] sm:$0xff]  ;;  %v3944_v14 = vld [vmem:[#allocation2 + $0x358] sm:$0xff] }
 0x50b   : > { %3634 = vmatprep.subr.mxu0 %v3427_v34  ;;  %3705 = vmatprep.subr.mxu1 %v3429_v1  ;;  %v2977_v34 = vadd.f32 %v6444_v18, %v6464_v20  ;;  %v3055_v1 = vmul.f32 %v6476_v58, %v2987_v39  ;;  %v3053_v42 = vmul.f32 %v3031_v23, %v2981_v5  ;;  %v3346_v18 = vld [vmem:[#allocation2 + $0x4a0] sm:$0xff]  ;;  %v3348_v20 = vld [vmem:[#allocation2 + $0x4b0] sm:$0xff]  ;;  %v3341_v58 = vld [vmem:[#allocation2 + $0x478] sm:$0xff] }
 0x50c   : > { %3635 = vmatpush2.msra.mxu0 %v3426_v11  ;;  %3706 = vmatpush2.msra.mxu1 %v3428_v62  ;;  %v3122_v11 = vadd.f32 %v6478_v24, %v3058_v0  ;;  %v3347_v62 = vld [vmem:[#allocation2 + $0x4a8] sm:$0xff]  ;;  %v3952_v39 = vld [vmem:[#allocation2 + $0x398] sm:$0xff]  ;;  %v3941_v0 = vld [vmem:[#allocation2 + $0x340] sm:$0xff] }
 0x50d   : > { %3636 = vmatprep.subr.mxu0 %v3419_v55  ;;  %3707 = vmatprep.subr.mxu1 %v3421_v63  ;;  %v3349_v55 = vld [vmem:[#allocation2 + $0x4b8] sm:$0xff]  ;;  %v3095_v63 = vpop.permute.xlu0 %3094  ;;  %v3950_v23 = vld [vmem:[#allocation2 + $0x388] sm:$0xff]  ;;  %v3933_v5 = vld [vmem:[#allocation2 + $0x300] sm:$0xff] }
 0x50e   : > { %3637 = vmatpush2.msra.mxu0 %v3418_v53  ;;  %3708 = vmatpush2.msra.mxu1 %v3420_v61  ;;  %v3121_v53 = vadd.f32 %v6478_v24, %v3057_v49  ;;  %v3118_v61 = vadd.f32 %v3095_v63, %v3054_v52  ;;  %v3117_v24 = vadd.f32 %v3095_v63, %v3053_v42  ;;  %v3935_v49 = vld [vmem:[#allocation2 + $0x310] sm:$0xff]  ;;  %v3925_v52 = vld [vmem:[#allocation2 + $0x2c0] sm:$0xff] }
 0x50f   : > { %3638 = vmatprep.subr.mxu0 %v3411_v40  ;;  %3709 = vmatprep.subr.mxu1 %v3413_v10  ;;  %v3120_v40 = vadd.f32 %v6480_v44, %v3056_v7  ;;  %v3339_v10 = vld [vmem:[#allocation2 + $0x468] sm:$0xff]  ;;  %v3927_v7 = vld [vmem:[#allocation2 + $0x2d0] sm:$0xff]  ;;  %v3901_v63 = vld [vmem:[#allocation2 + $0x200] sm:$0xff] }
 0x510   : > { %3639 = vmatpush2.msra.mxu0 %v3410_v31  ;;  %3710 = vmatpush2.msra.mxu1 %v3412_v35  ;;  %v3051_v31 = vmul.f32 %v3026_v36, %v2977_v34  ;;  %v3119_v35 = vadd.f32 %v6480_v44, %v3055_v1  ;;  %v3137_v59 = vmax.f32 %v3121_v53, 0.0  ;;  %v3936_v36 = vld [vmem:[#allocation2 + $0x318] sm:$0xff]  ;;  %v3917_v34 = vld [vmem:[#allocation2 + $0x280] sm:$0xff]  ;;  %v3919_v1 = vld [vmem:[#allocation2 + $0x290] sm:$0xff] }
 0x511   : > { %3640 = vmatprep.subr.mxu0 %v3403_v41  ;;  %3711 = vmatprep.subr.mxu1 %v3405_v4  ;;  %v3338_v41 = vld [vmem:[#allocation2 + $0x460] sm:$0xff]  ;;  %v3340_v4 = vld [vmem:[#allocation2 + $0x470] sm:$0xff]  ;;  %v3894_v53 = vld [vmem:[#allocation2 + $0x1c8] sm:$0xff] }
 0x512   : > { %3641 = vmatpush2.msra.mxu0 %v3402_v3  ;;  %3712 = vmatpush2.msra.mxu1 %v3404_v15  ;;  %v3116_v3 = vadd.f32 %v3090_v37, %v3052_v32  ;;  %v3138_v15 = vmax.f32 %v3122_v11, 0.0  ;;  %v3115_v44 = vadd.f32 %v3090_v37, %v3051_v31  ;;  %v3909_v32 = vld [vmem:[#allocation2 + $0x240] sm:$0xff]  ;;  %v3911_v11 = vld [vmem:[#allocation2 + $0x250] sm:$0xff]  ;;  %v3878_v31 = vld [vmem:[#allocation2 + $0x148] sm:$0xff] }
 0x513   : > { %3642 = vmatprep.subr.mxu0 %v3395_v54  ;;  %3713 = vmatprep.subr.mxu1 %v3397_v46  ;;  %v3331_v54 = vld [vmem:[#allocation2 + $0x428] sm:$0xff]  ;;  %v3333_v46 = vld [vmem:[#allocation2 + $0x438] sm:$0xff]  ;;  %v3903_v42 = vld [vmem:[#allocation2 + $0x210] sm:$0xff] }
 0x514   : > { %3643 = vmatpush2.msra.mxu0 %v3394_v51  ;;  %3714 = vmatpush2.msra.mxu1 %v3396_v27  ;;  %v3330_v51 = vld [vmem:[#allocation2 + $0x420] sm:$0xff]  ;;  %v3332_v27 = vld [vmem:[#allocation2 + $0x430] sm:$0xff] }
 0x515   : > { %3644 = vmatprep.subr.mxu0 %v3387_v16  ;;  %3715 = vmatprep.subr.mxu1 %v3389_v38  ;;  %v3134_v16 = vmax.f32 %v3118_v61, 0.0  ;;  %v3136_v38 = vmax.f32 %v3120_v40, 0.0  ;;  %v3895_v61 = vld [vmem:[#allocation2 + $0x1d0] sm:$0xff]  ;;  %v3886_v40 = vld [vmem:[#allocation2 + $0x188] sm:$0xff] }
 0x516   : > { %3645 = vmatpush2.msra.mxu0 %v3386_v9  ;;  %3716 = vmatpush2.msra.mxu1 %v3388_v22  ;;  %v3135_v9 = vmax.f32 %v3119_v35, 0.0  ;;  %v3132_v22 = vmax.f32 %v3116_v3, 0.0  ;;  %v3887_v37 = vld [vmem:[#allocation2 + $0x190] sm:$0xff]  ;;  %v3880_v35 = vld [vmem:[#allocation2 + $0x158] sm:$0xff]  ;;  %v3870_v3 = vld [vmem:[#allocation2 + $0x108] sm:$0xff] }
 0x517   : > { %3646 = vmatprep.subr.mxu0 %v3379_v45  ;;  %3717 = vmatprep.subr.mxu1 %v3381_v50  ;;  %v3146_v26 = vpack.c.bf16 %v3138_v15, %v3136_v38  ;;  %v3133_v45 = vmax.f32 %v3117_v24, 0.0  ;;  %v3872_v15 = vld [vmem:[#allocation2 + $0x118] sm:$0xff]  ;;  %v3862_v24 = vld [vmem:[#allocation2 + $0xc8] sm:$0xff] }
 0x518   : > { %3647 = vmatpush2.msra.mxu0 %v3378_v47  ;;  %3718 = vmatpush2.msra.mxu1 %v3380_v25  ;;  %v3145_v50 = vpack.c.bf16 %v3137_v59, %v3135_v9  ;;  %v3144_v33 = vpack.c.bf16 %v3134_v16, %v3132_v22  ;;  %v3131_v47 = vmax.f32 %v3115_v44, 0.0  ;;  %v3864_v59 = vld [vmem:[#allocation2 + $0xd8] sm:$0xff]  ;;  %v3854_v16 = vld [vmem:[#allocation2 + $0x88] sm:$0xff]  ;;  %v3853_v44 = vld [vmem:[#allocation2 + $0x80] sm:$0xff] }
 0x519   : > { %3648 = vmatprep.subr.mxu0 %v3371_v19  ;;  %3719 = vmatprep.subr.mxu1 %v3373_v43  ;;  %v3960_v19 = vld [vmem:[#allocation2 + $0x3d8] sm:$0xff]  ;;  %v3957_v43 = vld [vmem:[#allocation2 + $0x3c0] sm:$0xff]  ;;  %v3855_v9 = vld [vmem:[#allocation2 + $0x90] sm:$0xff] }
 0x51a   : > { %3649 = vmatpush2.msra.mxu0 %v3370_v13  ;;  %3720 = vmatpush2.msra.mxu1 %v3372_v28  ;;  %v3143_v25 = vpack.c.bf16 %v3133_v45, %v3131_v47  ;;  %v3951_v13 = vld [vmem:[#allocation2 + $0x390] sm:$0xff]  ;;  %v3942_v28 = vld [vmem:[#allocation2 + $0x348] sm:$0xff]  ;;  %v3856_v38 = vld [vmem:[#allocation2 + $0x98] sm:$0xff] }
 0x51b   : > { %3650 = vmatprep.subr.mxu0 %v3363_v17  ;;  %3721 = vmatprep.subr.mxu1 %v3365_v60  ;;  %v3943_v17 = vld [vmem:[#allocation2 + $0x350] sm:$0xff]  ;;  %v3934_v60 = vld [vmem:[#allocation2 + $0x308] sm:$0xff]  ;;  %v3845_v45 = vld [vmem:[#allocation2 + $0x40] sm:$0xff] }
 0x51c   : > { %3651 = vmatpush2.msra.mxu0 %v3362_v48  ;;  %3722 = vmatpush2.msra.mxu1 %v3364_v29  ;;  %v3926_v48 = vld [vmem:[#allocation2 + $0x2c8] sm:$0xff]  ;;  %v3928_v29 = vld [vmem:[#allocation2 + $0x2d8] sm:$0xff] }
 0x51d   : > { %3652 = vmatprep.subr.mxu0 %v3355_v21  ;;  %3723 = vmatprep.subr.mxu1 %v3357_v8  ;;  %v3918_v21 = vld [vmem:[#allocation2 + $0x288] sm:$0xff]  ;;  %v3920_v8 = vld [vmem:[#allocation2 + $0x298] sm:$0xff] }
 0x51e   : > { %3653 = vmatpush2.msra.mxu0 %v3354_v12  ;;  %3724 = vmatpush2.msra.mxu1 %v3356_v6  ;;  %v3910_v12 = vld [vmem:[#allocation2 + $0x248] sm:$0xff]  ;;  %v3912_v6 = vld [vmem:[#allocation2 + $0x258] sm:$0xff] }
 0x51f   : > { %3654 = vmatprep.subr.mxu0 %v3347_v62  ;;  %3725 = vmatprep.subr.mxu1 %v3349_v55  ;;  %v3902_v62 = vld [vmem:[#allocation2 + $0x208] sm:$0xff]  ;;  %v3904_v55 = vld [vmem:[#allocation2 + $0x218] sm:$0xff] }
 0x520   : > { %3655 = vmatpush2.msra.mxu0 %v3346_v18  ;;  %3726 = vmatpush2.msra.mxu1 %v3348_v20  ;;  %v3896_v18 = vld [vmem:[#allocation2 + $0x1d8] sm:$0xff]  ;;  %v3893_v20 = vld [vmem:[#allocation2 + $0x1c0] sm:$0xff]  ;;  %v3846_v22 = vld [vmem:[#allocation2 + $0x48] sm:$0xff] }
 0x521   : > { %3656 = vmatprep.subr.mxu0 %v3339_v10  ;;  %3727 = vmatprep.subr.mxu1 %v3341_v58  ;;  %v3888_v10 = vld [vmem:[#allocation2 + $0x198] sm:$0xff]  ;;  %v3885_v58 = vld [vmem:[#allocation2 + $0x180] sm:$0xff] }
 0x522   : > { %3657 = vmatpush2.msra.mxu0 %v3338_v41  ;;  %3728 = vmatpush2.msra.mxu1 %v3340_v4  ;;  %v3877_v41 = vld [vmem:[#allocation2 + $0x140] sm:$0xff]  ;;  %v3879_v4 = vld [vmem:[#allocation2 + $0x150] sm:$0xff]  ;;  %v3840_v47 = vld [vmem:[#allocation2 + $0x18] sm:$0xff] }
 0x523   : > { %3658 = vmatprep.subr.mxu0 %v3331_v54  ;;  %3729 = vmatprep.subr.mxu1 %v3333_v46  ;;  %v3869_v54 = vld [vmem:[#allocation2 + $0x100] sm:$0xff]  ;;  %v3871_v46 = vld [vmem:[#allocation2 + $0x110] sm:$0xff] }
 0x524   : > { %3659 = vmatpush2.msra.mxu0 %v3330_v51  ;;  %3730 = vmatpush2.msra.mxu1 %v3332_v27  ;;  %v3861_v51 = vld [vmem:[#allocation2 + $0xc0] sm:$0xff]  ;;  %v3863_v27 = vld [vmem:[#allocation2 + $0xd0] sm:$0xff] }
 0x525   : > { %3661 = vmatmul.mubr.f32.vlgmr.msra.gmra.mxu0 %v6460_v2  ;;  %3732 = vmatmul.mubr.f32.vlgmr.msra.gmra.mxu1 %v6460_v2  ;;  %v3959_v2 = vld [vmem:[#allocation2 + $0x3d0] sm:$0xff] }
 0x526   : > { %3808 = vmatprep.subr.bf16.mxu0 %v3146_v26  ;;  %3828 = vmatprep.mubr.bf16.mxu0 %v6668_v56  ;;  %v3949_v56 = vld [vmem:[#allocation2 + $0x380] sm:$0xff]  ;;  %v3848_v26 = vld [vmem:[#allocation2 + $0x58] sm:$0xff] }
 0x527   : > { %3809 = vmatpush1.bf16.msra.mxu0 %v3145_v50  ;;  %4164 = vmatprep.subr.mxu1 %v3960_v19  ;;  %v3847_v50 = vld [vmem:[#allocation2 + $0x50] sm:$0xff]  ;;  %v4088_v19 = vld [vmem:[#allocation2 + $0x7d8] sm:$0xff] }
 0x528   : > { %3810 = vmatprep.subr.bf16.mxu0 %v3144_v33  ;;  %4165 = vmatpush1.msra.mxu1 %v3959_v2  ;;  %v3838_v33 = vld [vmem:[#allocation2 + $0x8] sm:$0xff]  ;;  %v4087_v2 = vld [vmem:[#allocation2 + $0x7d0] sm:$0xff] }
 0x529   : > { %4166 = vmatprep.subr.mxu1 %v3952_v39  ;;  %v4080_v39 = vld [vmem:[#allocation2 + $0x798] sm:$0xff] }
 0x52a   : > { %4167 = vmatpush1.msra.mxu1 %v3951_v13  ;;  %v4079_v13 = vld [vmem:[#allocation2 + $0x790] sm:$0xff] }
 0x52b   : > { %3811 = vmatpush1.bf16.msra.mxu0 %v3143_v25  ;;  %4168 = vmatprep.subr.mxu1 %v3944_v14  ;;  %v3837_v25 = vld [vmem:[#allocation2] sm:$0xff]  ;;  %v4072_v14 = vld [vmem:[#allocation2 + $0x758] sm:$0xff] }
 0x52c   : > { %4093 = vmatprep.subr.mxu0 %v3958_v57  ;;  %4169 = vmatpush1.msra.mxu1 %v3943_v17  ;;  %v4086_v57 = vld [vmem:[#allocation2 + $0x7c8] sm:$0xff]  ;;  %v4071_v17 = vld [vmem:[#allocation2 + $0x750] sm:$0xff] }
 0x52d   : > { %4170 = vmatprep.subr.mxu1 %v3936_v36  ;;  %v4064_v36 = vld [vmem:[#allocation2 + $0x718] sm:$0xff] }
 0x52e   : > { %4577 = vmatmul.mubr.msk.bf16.vlgmr.msra.gmra.mxu0 %vm1454_vm6, %v4575_v30  ;;  %4171 = vmatpush1.msra.mxu1 %v3935_v49  ;;  %v3839_v30 = vld [vmem:[#allocation2 + $0x10] sm:$0xff] }
 0x52f   : > { %4094 = vmatpush1.msra.mxu0 %v3957_v43  ;;  %4172 = vmatprep.subr.mxu1 %v3928_v29  ;;  %v4085_v43 = vld [vmem:[#allocation2 + $0x7c0] sm:$0xff]  ;;  %v4063_v49 = vld [vmem:[#allocation2 + $0x710] sm:$0xff]  ;;  %v4056_v29 = vld [vmem:[#allocation2 + $0x6d8] sm:$0xff] }
 0x530   : > { %4095 = vmatprep.subr.mxu0 %v3950_v23  ;;  %4173 = vmatpush1.msra.mxu1 %v3927_v7  ;;  %v4078_v23 = vld [vmem:[#allocation2 + $0x788] sm:$0xff]  ;;  %v4055_v7 = vld [vmem:[#allocation2 + $0x6d0] sm:$0xff] }
 0x531   : > { %4096 = vmatpush1.msra.mxu0 %v3949_v56  ;;  %4174 = vmatprep.subr.mxu1 %v3920_v8  ;;  %v4077_v56 = vld [vmem:[#allocation2 + $0x780] sm:$0xff]  ;;  %v4048_v8 = vld [vmem:[#allocation2 + $0x698] sm:$0xff] }
 0x532   : > { %4097 = vmatprep.subr.mxu0 %v3942_v28  ;;  %4175 = vmatpush1.msra.mxu1 %v3919_v1  ;;  %v4070_v28 = vld [vmem:[#allocation2 + $0x748] sm:$0xff]  ;;  %v4047_v1 = vld [vmem:[#allocation2 + $0x690] sm:$0xff] }
 0x533   : > { %4098 = vmatpush1.msra.mxu0 %v3941_v0  ;;  %4176 = vmatprep.subr.mxu1 %v3912_v6  ;;  %v4069_v0 = vld [vmem:[#allocation2 + $0x740] sm:$0xff]  ;;  %v4040_v6 = vld [vmem:[#allocation2 + $0x658] sm:$0xff] }
 0x534   : > { %4099 = vmatprep.subr.mxu0 %v3934_v60  ;;  %4177 = vmatpush1.msra.mxu1 %v3911_v11  ;;  %v4062_v60 = vld [vmem:[#allocation2 + $0x708] sm:$0xff]  ;;  %v4039_v11 = vld [vmem:[#allocation2 + $0x650] sm:$0xff] }
 0x535   : > { %4100 = vmatpush1.msra.mxu0 %v3933_v5  ;;  %4178 = vmatprep.subr.mxu1 %v3904_v55  ;;  %v4061_v5 = vld [vmem:[#allocation2 + $0x700] sm:$0xff]  ;;  %v4032_v55 = vld [vmem:[#allocation2 + $0x618] sm:$0xff] }
 0x536   : > { %4101 = vmatprep.subr.mxu0 %v3926_v48  ;;  %4179 = vmatpush1.msra.mxu1 %v3903_v42  ;;  %v4054_v48 = vld [vmem:[#allocation2 + $0x6c8] sm:$0xff]  ;;  %v4031_v42 = vld [vmem:[#allocation2 + $0x610] sm:$0xff] }
 0x537   : > { %4102 = vmatpush1.msra.mxu0 %v3925_v52  ;;  %4180 = vmatprep.subr.mxu1 %v3896_v18  ;;  %v4053_v52 = vld [vmem:[#allocation2 + $0x6c0] sm:$0xff]  ;;  %v4024_v18 = vld [vmem:[#allocation2 + $0x5d8] sm:$0xff] }
 0x538   : > { %4103 = vmatprep.subr.mxu0 %v3918_v21  ;;  %4181 = vmatpush1.msra.mxu1 %v3895_v61  ;;  %v4046_v21 = vld [vmem:[#allocation2 + $0x688] sm:$0xff]  ;;  %v4023_v61 = vld [vmem:[#allocation2 + $0x5d0] sm:$0xff] }
 0x539   : > { %4104 = vmatpush1.msra.mxu0 %v3917_v34  ;;  %4182 = vmatprep.subr.mxu1 %v3888_v10  ;;  %v4045_v34 = vld [vmem:[#allocation2 + $0x680] sm:$0xff]  ;;  %v4016_v10 = vld [vmem:[#allocation2 + $0x598] sm:$0xff] }
 0x53a   : > { %4105 = vmatprep.subr.mxu0 %v3910_v12  ;;  %4183 = vmatpush1.msra.mxu1 %v3887_v37  ;;  %v4038_v12 = vld [vmem:[#allocation2 + $0x648] sm:$0xff]  ;;  %v4015_v37 = vld [vmem:[#allocation2 + $0x590] sm:$0xff] }
 0x53b   : > { %4106 = vmatpush1.msra.mxu0 %v3909_v32  ;;  %4184 = vmatprep.subr.mxu1 %v3880_v35  ;;  %v4037_v32 = vld [vmem:[#allocation2 + $0x640] sm:$0xff]  ;;  %v4008_v35 = vld [vmem:[#allocation2 + $0x558] sm:$0xff] }
 0x53c   : > { %4107 = vmatprep.subr.mxu0 %v3902_v62  ;;  %4185 = vmatpush1.msra.mxu1 %v3879_v4  ;;  %v4030_v62 = vld [vmem:[#allocation2 + $0x608] sm:$0xff]  ;;  %v4007_v4 = vld [vmem:[#allocation2 + $0x550] sm:$0xff] }
 0x53d   : > { %4108 = vmatpush1.msra.mxu0 %v3901_v63  ;;  %4186 = vmatprep.subr.mxu1 %v3872_v15  ;;  %v4029_v63 = vld [vmem:[#allocation2 + $0x600] sm:$0xff]  ;;  %v4000_v15 = vld [vmem:[#allocation2 + $0x518] sm:$0xff] }
 0x53e   : > { %4109 = vmatprep.subr.mxu0 %v3894_v53  ;;  %4187 = vmatpush1.msra.mxu1 %v3871_v46  ;;  %v4022_v53 = vld [vmem:[#allocation2 + $0x5c8] sm:$0xff]  ;;  %v3999_v46 = vld [vmem:[#allocation2 + $0x510] sm:$0xff] }
 0x53f   : > { %4110 = vmatpush1.msra.mxu0 %v3893_v20  ;;  %4188 = vmatprep.subr.mxu1 %v3864_v59  ;;  %v4021_v20 = vld [vmem:[#allocation2 + $0x5c0] sm:$0xff]  ;;  %v3992_v59 = vld [vmem:[#allocation2 + $0x4d8] sm:$0xff] }
 0x540   : > { %4111 = vmatprep.subr.mxu0 %v3886_v40  ;;  %4189 = vmatpush1.msra.mxu1 %v3863_v27  ;;  %v4014_v40 = vld [vmem:[#allocation2 + $0x588] sm:$0xff]  ;;  %v3991_v27 = vld [vmem:[#allocation2 + $0x4d0] sm:$0xff] }
 0x541   : > { %4112 = vmatpush1.msra.mxu0 %v3885_v58  ;;  %4190 = vmatprep.subr.mxu1 %v3856_v38  ;;  %v4013_v58 = vld [vmem:[#allocation2 + $0x580] sm:$0xff]  ;;  %v3984_v38 = vld [vmem:[#allocation2 + $0x498] sm:$0xff] }
 0x542   : > { %4113 = vmatprep.subr.mxu0 %v3878_v31  ;;  %4191 = vmatpush1.msra.mxu1 %v3855_v9  ;;  %v4006_v31 = vld [vmem:[#allocation2 + $0x548] sm:$0xff]  ;;  %v3983_v9 = vld [vmem:[#allocation2 + $0x490] sm:$0xff] }
 0x543   : > { %4114 = vmatpush1.msra.mxu0 %v3877_v41  ;;  %4192 = vmatprep.subr.mxu1 %v3848_v26  ;;  %v4005_v41 = vld [vmem:[#allocation2 + $0x540] sm:$0xff]  ;;  %v3976_v26 = vld [vmem:[#allocation2 + $0x458] sm:$0xff] }
 0x544   : > { %4115 = vmatprep.subr.mxu0 %v3870_v3  ;;  %4193 = vmatpush1.msra.mxu1 %v3847_v50  ;;  %v3998_v3 = vld [vmem:[#allocation2 + $0x508] sm:$0xff]  ;;  %v3975_v50 = vld [vmem:[#allocation2 + $0x450] sm:$0xff] }
 0x545   : > { %4116 = vmatpush1.msra.mxu0 %v3869_v54  ;;  %4194 = vmatprep.subr.mxu1 %v3840_v47  ;;  %v3997_v54 = vld [vmem:[#allocation2 + $0x500] sm:$0xff]  ;;  %v3968_v47 = vld [vmem:[#allocation2 + $0x418] sm:$0xff] }
 0x546   : > { %4117 = vmatprep.subr.mxu0 %v3862_v24  ;;  %4195 = vmatpush1.msra.mxu1 %v3839_v30  ;;  %v3990_v24 = vld [vmem:[#allocation2 + $0x4c8] sm:$0xff]  ;;  %v3967_v30 = vld [vmem:[#allocation2 + $0x410] sm:$0xff] }
 0x547   : > { %4118 = vmatpush1.msra.mxu0 %v3861_v51  ;;  %4196 = vmatprep.subr.mxu1 %v4088_v19  ;;  %v3989_v51 = vld [vmem:[#allocation2 + $0x4c0] sm:$0xff]  ;;  %v3964_v19 = vld [vmem:[#allocation2 + $0x3f8] sm:$0xff] }
 0x548   : > { %4119 = vmatprep.subr.mxu0 %v3854_v16  ;;  %4197 = vmatpush2.msra.mxu1 %v4087_v2  ;;  %v3982_v16 = vld [vmem:[#allocation2 + $0x488] sm:$0xff] }
 0x549   : > { %4120 = vmatpush1.msra.mxu0 %v3853_v44  ;;  %4198 = vmatprep.subr.mxu1 %v4080_v39  ;;  %v3981_v44 = vld [vmem:[#allocation2 + $0x480] sm:$0xff] }
 0x54a   : > { %4121 = vmatprep.subr.mxu0 %v3846_v22  ;;  %4199 = vmatpush2.msra.mxu1 %v4079_v13  ;;  %v3974_v22 = vld [vmem:[#allocation2 + $0x448] sm:$0xff] }
 0x54b   : > { %4122 = vmatpush1.msra.mxu0 %v3845_v45  ;;  %4200 = vmatprep.subr.mxu1 %v4072_v14  ;;  %v3973_v45 = vld [vmem:[#allocation2 + $0x440] sm:$0xff] }
 0x54c   : > { %4123 = vmatprep.subr.mxu0 %v3838_v33  ;;  %4201 = vmatpush2.msra.mxu1 %v4071_v17  ;;  %v3966_v33 = vld [vmem:[#allocation2 + $0x408] sm:$0xff] }
 0x54d   : > { %4124 = vmatpush1.msra.mxu0 %v3837_v25  ;;  %4202 = vmatprep.subr.mxu1 %v4064_v36  ;;  %v3965_v25 = vld [vmem:[#allocation2 + $0x400] sm:$0xff] }
 0x54e   : > { %4125 = vmatprep.subr.mxu0 %v4086_v57  ;;  %4203 = vmatpush2.msra.mxu1 %v4063_v49  ;;  %v3962_v57 = vld [vmem:[#allocation2 + $0x3e8] sm:$0xff] }
 0x54f   : > { %4126 = vmatpush2.msra.mxu0 %v4085_v43  ;;  %4204 = vmatprep.subr.mxu1 %v4056_v29  ;;  %v4890_v43 = vmov 1983009808  }
 0x550   : > { %4127 = vmatprep.subr.mxu0 %v4078_v23  ;;  %4205 = vmatpush2.msra.mxu1 %v4055_v7  ;;  %v3749_v2 = vunpack.c.l.s4 %v4890_v43  ;;  %v3751_v23 = vlaneseq  ;;  %v3899_v43 = vld [vmem:[#allocation2 + $0x1f0] sm:$0xff] }
 0x551   : > { %4128 = vmatpush2.msra.mxu0 %v4077_v56  ;;  %4206 = vmatprep.subr.mxu1 %v4048_v8 }
 0x552   : > { %4129 = vmatprep.subr.mxu0 %v4070_v28  ;;  %4207 = vmatpush2.msra.mxu1 %v4047_v1  ;;  %v3750_v39 = vunpack.c.0.s8 %v3749_v2  ;;  %v3752_v56 = vshrl.u32 %v3751_v23, 7  ;;  %v3890_v2 = vld [vmem:[#allocation2 + $0x1a8] sm:$0xff]  ;;  %v3892_v23 = vld [vmem:[#allocation2 + $0x1b8] sm:$0xff] }
 0x553   : > { %4130 = vmatpush2.msra.mxu0 %v4069_v0  ;;  %4208 = vmatprep.subr.mxu1 %v4040_v6 }
 0x554   : > { %4131 = vmatprep.subr.mxu0 %v4062_v60  ;;  %4209 = vmatpush2.msra.mxu1 %v4039_v11  ;;  %v6511_v14 = vsub.s32 %v3750_v39, %v3752_v56  ;;  %v3791_v11 = vpop.permute.xlu1 %3790  ;;  %v3889_v39 = vld [vmem:[#allocation2 + $0x1a0] sm:$0xff]  ;;  %v3891_v56 = vld [vmem:[#allocation2 + $0x1b0] sm:$0xff] }
 0x555   : > { %4132 = vmatpush2.msra.mxu0 %v4061_v5  ;;  %4210 = vmatprep.subr.mxu1 %v4032_v55 }
 0x556   : > { %4133 = vmatprep.subr.mxu0 %v4054_v48  ;;  %4211 = vmatpush2.msra.mxu1 %v4031_v42  ;;  %v3961_v42 = vld [vmem:[#allocation2 + $0x3e0] sm:$0xff] }
 0x557   : > { %4134 = vmatpush2.msra.mxu0 %v4053_v52  ;;  %4212 = vmatprep.subr.mxu1 %v4024_v18 }
 0x558   : > { %4135 = vmatprep.subr.mxu0 %v4046_v21  ;;  %4213 = vmatpush2.msra.mxu1 %v4023_v61  ;;  %v3956_v61 = vld [vmem:[#allocation2 + $0x3b8] sm:$0xff] }
 0x559   : > { %4136 = vmatpush2.msra.mxu0 %v4045_v34  ;;  %4214 = vmatprep.subr.mxu1 %v4016_v10  ;;  %v3953_v10 = vld [vmem:[#allocation2 + $0x3a0] sm:$0xff] }
 0x55a   : > { %4137 = vmatprep.subr.mxu0 %v4038_v12  ;;  %4215 = vmatpush2.msra.mxu1 %v4015_v37  ;;  %v3946_v37 = vld [vmem:[#allocation2 + $0x368] sm:$0xff] }
 0x55b   : > { %4138 = vmatpush2.msra.mxu0 %v4037_v32  ;;  %4216 = vmatprep.subr.mxu1 %v4008_v35  ;;  %v3945_v35 = vld [vmem:[#allocation2 + $0x360] sm:$0xff] }
 0x55c   : > { %4139 = vmatprep.subr.mxu0 %v4030_v62  ;;  %4217 = vmatpush2.msra.mxu1 %v4007_v4  ;;  %v3938_v4 = vld [vmem:[#allocation2 + $0x328] sm:$0xff] }
 0x55d   : > { %4140 = vmatpush2.msra.mxu0 %v4029_v63  ;;  %4218 = vmatprep.subr.mxu1 %v4000_v15  ;;  %v3937_v15 = vld [vmem:[#allocation2 + $0x320] sm:$0xff] }
 0x55e   : > { %4141 = vmatprep.subr.mxu0 %v4022_v53  ;;  %4219 = vmatpush2.msra.mxu1 %v3999_v46  ;;  %v3963_v53 = vld [vmem:[#allocation2 + $0x3f0] sm:$0xff]  ;;  %v3930_v46 = vld [vmem:[#allocation2 + $0x2e8] sm:$0xff] }
 0x55f   : > { %4142 = vmatpush2.msra.mxu0 %v4021_v20  ;;  %4220 = vmatprep.subr.mxu1 %v3992_v59  ;;  %v3954_v20 = vld [vmem:[#allocation2 + $0x3a8] sm:$0xff]  ;;  %v3929_v59 = vld [vmem:[#allocation2 + $0x2e0] sm:$0xff] }
 0x560   : > { %4143 = vmatprep.subr.mxu0 %v4014_v40  ;;  %4221 = vmatpush2.msra.mxu1 %v3991_v27  ;;  %v3922_v27 = vld [vmem:[#allocation2 + $0x2a8] sm:$0xff] }
 0x561   : > { %4144 = vmatpush2.msra.mxu0 %v4013_v58  ;;  %4222 = vmatprep.subr.mxu1 %v3984_v38  ;;  %v3955_v58 = vld [vmem:[#allocation2 + $0x3b0] sm:$0xff]  ;;  %v3921_v38 = vld [vmem:[#allocation2 + $0x2a0] sm:$0xff] }
 0x562   : > { %4145 = vmatprep.subr.mxu0 %v4006_v31  ;;  %4223 = vmatpush2.msra.mxu1 %v3983_v9  ;;  %v3948_v31 = vld [vmem:[#allocation2 + $0x378] sm:$0xff]  ;;  %v3914_v9 = vld [vmem:[#allocation2 + $0x268] sm:$0xff] }
 0x563   : > { %4146 = vmatpush2.msra.mxu0 %v4005_v41  ;;  %4224 = vmatprep.subr.mxu1 %v3976_v26  ;;  %v3947_v41 = vld [vmem:[#allocation2 + $0x370] sm:$0xff]  ;;  %v3913_v26 = vld [vmem:[#allocation2 + $0x260] sm:$0xff] }
 0x564   : > { %4147 = vmatprep.subr.mxu0 %v3998_v3  ;;  %4225 = vmatpush2.msra.mxu1 %v3975_v50  ;;  %v3940_v3 = vld [vmem:[#allocation2 + $0x338] sm:$0xff]  ;;  %v3906_v50 = vld [vmem:[#allocation2 + $0x228] sm:$0xff] }
 0x565   : > { %4148 = vmatpush2.msra.mxu0 %v3997_v54  ;;  %4226 = vmatprep.subr.mxu1 %v3968_v47  ;;  %v3939_v54 = vld [vmem:[#allocation2 + $0x330] sm:$0xff]  ;;  %v3905_v47 = vld [vmem:[#allocation2 + $0x220] sm:$0xff] }
 0x566   : > { %4149 = vmatprep.subr.mxu0 %v3990_v24  ;;  %4227 = vmatpush2.msra.mxu1 %v3967_v30  ;;  %v3932_v24 = vld [vmem:[#allocation2 + $0x2f8] sm:$0xff]  ;;  %v3898_v30 = vld [vmem:[#allocation2 + $0x1e8] sm:$0xff] }
 0x567   : > { %4150 = vmatpush2.msra.mxu0 %v3989_v51  ;;  %4306 = vmatprep.subr.mxu1 %v3964_v19  ;;  %v3931_v51 = vld [vmem:[#allocation2 + $0x2f0] sm:$0xff]  ;;  %v3897_v19 = vld [vmem:[#allocation2 + $0x1e0] sm:$0xff] }
 0x568   : > { %4151 = vmatprep.subr.mxu0 %v3982_v16  ;;  %v3924_v16 = vld [vmem:[#allocation2 + $0x2b8] sm:$0xff] }
 0x569   : > { %4152 = vmatpush2.msra.mxu0 %v3981_v44  ;;  %v3923_v44 = vld [vmem:[#allocation2 + $0x2b0] sm:$0xff] }
 0x56a   : > { %4153 = vmatprep.subr.mxu0 %v3974_v22  ;;  %v3916_v22 = vld [vmem:[#allocation2 + $0x278] sm:$0xff] }
 0x56b   : > { %4154 = vmatpush2.msra.mxu0 %v3973_v45  ;;  %v3915_v45 = vld [vmem:[#allocation2 + $0x270] sm:$0xff] }
 0x56c   : > { %4155 = vmatprep.subr.mxu0 %v3966_v33  ;;  %v3908_v33 = vld [vmem:[#allocation2 + $0x238] sm:$0xff] }
 0x56d   : > { %4156 = vmatpush2.msra.mxu0 %v3965_v25  ;;  %v3907_v25 = vld [vmem:[#allocation2 + $0x230] sm:$0xff] }
 0x56e   : > { %4235 = vmatprep.subr.mxu0 %v3962_v57  ;;  %v3900_v57 = vld [vmem:[#allocation2 + $0x1f8] sm:$0xff] }
 0x5a4   : > { %v3520_v13 = vpop.f32.mrf.mxu0  ;;  %v3591_v28 = vpop.f32.mrf.mxu1 }
 0x5a6   : > { %v3522_v0 = vpop.f32.mrf.mxu0  ;;  %v3593_v17 = vpop.f32.mrf.mxu1 }
 0x5a7   : > { %v3746_v60 = vcombine.low %v3520_v13, %v3522_v0  ;;  %v3747_v36 = vcombine.low %v3591_v28, %v3593_v17  ;;  %v3882_v13 = vld [vmem:[#allocation2 + $0x168] sm:$0xff]  ;;  %v3884_v28 = vld [vmem:[#allocation2 + $0x178] sm:$0xff]  ;;  %v3881_v0 = vld [vmem:[#allocation2 + $0x160] sm:$0xff] }
 0x5a8   : > { %v3883_v17 = vld [vmem:[#allocation2 + $0x170] sm:$0xff] }
 0x5a9   : > { %v3754_v5 = vrot.slane %v3746_v60, %v6511_v14  ;;  %v3761_v49 = vrot.slane %v3747_v36, %v6511_v14  ;;  %v3874_v60 = vld [vmem:[#allocation2 + $0x128] sm:$0xff]  ;;  %v3876_v36 = vld [vmem:[#allocation2 + $0x138] sm:$0xff] }
 0x5ab   : > { %v3762_v48 = vcombine.low %v3754_v5, %v3761_v49  ;;  %v3873_v5 = vld [vmem:[#allocation2 + $0x120] sm:$0xff]  ;;  %v3875_v49 = vld [vmem:[#allocation2 + $0x130] sm:$0xff] }
 0x5ad   : > { %3782 = vst [vmem:[%s6517_s26] sm:$0xff] %v3762_v48  ;;  %v3866_v48 = vld [vmem:[#allocation2 + $0xe8] sm:$0xff] }
 0x5e5   : > { %v3662_v29 = vpop.f32.mrf.mxu0  ;;  %v3733_v52 = vpop.f32.mrf.mxu1 }
 0x5e7   : > { %v3664_v7 = vpop.f32.mrf.mxu0  ;;  %v3735_v21 = vpop.f32.mrf.mxu1 }
 0x5e8   : > { %v3763_v8 = vcombine.low %v3662_v29, %v3664_v7  ;;  %v3764_v34 = vcombine.low %v3733_v52, %v3735_v21  ;;  %v3868_v29 = vld [vmem:[#allocation2 + $0xf8] sm:$0xff]  ;;  %v3865_v52 = vld [vmem:[#allocation2 + $0xe0] sm:$0xff]  ;;  %v3867_v7 = vld [vmem:[#allocation2 + $0xf0] sm:$0xff] }
 0x5e9   : > { %v3858_v21 = vld [vmem:[#allocation2 + $0xa8] sm:$0xff] }
 0x5ea   : > { %v3771_v1 = vrot.slane %v3763_v8, %v6511_v14  ;;  %v3778_v12 = vrot.slane %v3764_v34, %v6511_v14  ;;  %v3860_v8 = vld [vmem:[#allocation2 + $0xb8] sm:$0xff]  ;;  %v3857_v34 = vld [vmem:[#allocation2 + $0xa0] sm:$0xff] }
 0x5ec   : > { %v3779_v6 = vcombine.low %v3771_v1, %v3778_v12  ;;  %v3859_v1 = vld [vmem:[#allocation2 + $0xb0] sm:$0xff]  ;;  %v3850_v12 = vld [vmem:[#allocation2 + $0x68] sm:$0xff] }
 0x5ee   : > { %3783 = vst [vmem:[%s6517_s26 + $0x8] sm:$0xff] %v3779_v6  ;;  %v3830_v32 = vpop.f32.mrf.mxu0  ;;  %v3852_v6 = vld [vmem:[#allocation2 + $0x78] sm:$0xff] }
 0x5ef   : > { %v6523_v63 = vadd.f32 %v3830_v32, %v3791_v11  ;;  %v3849_v32 = vld [vmem:[#allocation2 + $0x60] sm:$0xff] }
 0x5f0   : > { %v3832_v62 = vpop.f32.mrf.mxu0 }
 0x5f1   : > { %v3833_v55 = vadd.f32 %v3832_v62, %v3791_v11  ;;  %v3851_v11 = vld [vmem:[#allocation2 + $0x70] sm:$0xff]  ;;  %v3842_v62 = vld [vmem:[#allocation2 + $0x28] sm:$0xff] }
 0x5f2   : > { %v3834_v18 = vpop.f32.mrf.mxu0 }
 0x5f3   : > { %4157 = vmatprep.mubr.f32.mxu0 %v3833_v55  ;;  %4228 = vmatprep.mubr.f32.mxu1 %v3833_v55  ;;  %v4090_v18 = vld [vmem:[#allocation2 + $0x7e8] sm:$0xff] }
 0x5f4   : > { %4158 = vmatmul.mubr.f32.vlgmr.msra.gmra.mxu0 %v6523_v63  ;;  %4229 = vmatmul.mubr.f32.vlgmr.msra.gmra.mxu1 %v6523_v63  ;;  %v3835_v40 = vpop.f32.mrf.mxu0 }
 0x5f5   : > { %4236 = vmatpush1.msra.mxu0 %v3961_v42  ;;  %4307 = vmatpush1.msra.mxu1 %v3963_v53  ;;  %v3841_v42 = vld [vmem:[#allocation2 + $0x20] sm:$0xff]  ;;  %v3843_v53 = vld [vmem:[#allocation2 + $0x30] sm:$0xff] }
 0x5f6   : > { %4237 = vmatprep.subr.mxu0 %v3954_v20  ;;  %4299 = vmatprep.mubr.f32.mxu0 %v3833_v55  ;;  %v4092_v20 = vld [vmem:[#allocation2 + $0x7f8] sm:$0xff]  ;;  %v4091_v40 = vld [vmem:[#allocation2 + $0x7f0] sm:$0xff] }
 0x5f7   : > { %4308 = vmatprep.subr.mxu1 %v3956_v61  ;;  %4370 = vmatprep.mubr.f32.mxu1 %v3833_v55  ;;  %v3844_v55 = vld [vmem:[#allocation2 + $0x38] sm:$0xff]  ;;  %v4089_v61 = vld [vmem:[#allocation2 + $0x7e0] sm:$0xff] }
 0x5f8   : > { %4238 = vmatpush1.msra.mxu0 %v3953_v10  ;;  %4309 = vmatpush1.msra.mxu1 %v3955_v58  ;;  %v4082_v10 = vld [vmem:[#allocation2 + $0x7a8] sm:$0xff]  ;;  %v4084_v58 = vld [vmem:[#allocation2 + $0x7b8] sm:$0xff] }
 0x5f9   : > { %4239 = vmatprep.subr.mxu0 %v3946_v37  ;;  %4310 = vmatprep.subr.mxu1 %v3948_v31  ;;  %v4081_v37 = vld [vmem:[#allocation2 + $0x7a0] sm:$0xff]  ;;  %v4083_v31 = vld [vmem:[#allocation2 + $0x7b0] sm:$0xff] }
 0x5fa   : > { %4240 = vmatpush1.msra.mxu0 %v3945_v35  ;;  %4311 = vmatpush1.msra.mxu1 %v3947_v41  ;;  %v4074_v35 = vld [vmem:[#allocation2 + $0x768] sm:$0xff]  ;;  %v4076_v41 = vld [vmem:[#allocation2 + $0x778] sm:$0xff] }
 0x5fb   : > { %4241 = vmatprep.subr.mxu0 %v3938_v4  ;;  %4312 = vmatprep.subr.mxu1 %v3940_v3  ;;  %v4073_v4 = vld [vmem:[#allocation2 + $0x760] sm:$0xff]  ;;  %v4075_v3 = vld [vmem:[#allocation2 + $0x770] sm:$0xff] }
 0x5fc   : > { %4242 = vmatpush1.msra.mxu0 %v3937_v15  ;;  %4313 = vmatpush1.msra.mxu1 %v3939_v54  ;;  %v4066_v15 = vld [vmem:[#allocation2 + $0x728] sm:$0xff]  ;;  %v4068_v54 = vld [vmem:[#allocation2 + $0x738] sm:$0xff] }
 0x5fd   : > { %4243 = vmatprep.subr.mxu0 %v3930_v46  ;;  %4314 = vmatprep.subr.mxu1 %v3932_v24  ;;  %v4065_v46 = vld [vmem:[#allocation2 + $0x720] sm:$0xff]  ;;  %v4067_v24 = vld [vmem:[#allocation2 + $0x730] sm:$0xff] }
 0x5fe   : > { %4244 = vmatpush1.msra.mxu0 %v3929_v59  ;;  %4315 = vmatpush1.msra.mxu1 %v3931_v51  ;;  %v4058_v59 = vld [vmem:[#allocation2 + $0x6e8] sm:$0xff]  ;;  %v4060_v51 = vld [vmem:[#allocation2 + $0x6f8] sm:$0xff] }
 0x5ff   : > { %4245 = vmatprep.subr.mxu0 %v3922_v27  ;;  %4316 = vmatprep.subr.mxu1 %v3924_v16  ;;  %v4057_v27 = vld [vmem:[#allocation2 + $0x6e0] sm:$0xff]  ;;  %v4059_v16 = vld [vmem:[#allocation2 + $0x6f0] sm:$0xff] }
 0x600   : > { %4246 = vmatpush1.msra.mxu0 %v3921_v38  ;;  %4317 = vmatpush1.msra.mxu1 %v3923_v44  ;;  %v4050_v38 = vld [vmem:[#allocation2 + $0x6a8] sm:$0xff]  ;;  %v4052_v44 = vld [vmem:[#allocation2 + $0x6b8] sm:$0xff] }
 0x601   : > { %4247 = vmatprep.subr.mxu0 %v3914_v9  ;;  %4318 = vmatprep.subr.mxu1 %v3916_v22  ;;  %v4049_v9 = vld [vmem:[#allocation2 + $0x6a0] sm:$0xff]  ;;  %v4051_v22 = vld [vmem:[#allocation2 + $0x6b0] sm:$0xff] }
 0x602   : > { %4248 = vmatpush1.msra.mxu0 %v3913_v26  ;;  %4319 = vmatpush1.msra.mxu1 %v3915_v45  ;;  %v4042_v26 = vld [vmem:[#allocation2 + $0x668] sm:$0xff]  ;;  %v4044_v45 = vld [vmem:[#allocation2 + $0x678] sm:$0xff] }
 0x603   : > { %4249 = vmatprep.subr.mxu0 %v3906_v50  ;;  %4320 = vmatprep.subr.mxu1 %v3908_v33  ;;  %v4041_v50 = vld [vmem:[#allocation2 + $0x660] sm:$0xff]  ;;  %v4043_v33 = vld [vmem:[#allocation2 + $0x670] sm:$0xff] }
 0x604   : > { %4250 = vmatpush1.msra.mxu0 %v3905_v47  ;;  %4321 = vmatpush1.msra.mxu1 %v3907_v25  ;;  %v4034_v47 = vld [vmem:[#allocation2 + $0x628] sm:$0xff]  ;;  %v4036_v25 = vld [vmem:[#allocation2 + $0x638] sm:$0xff] }
 0x605   : > { %4251 = vmatprep.subr.mxu0 %v3898_v30  ;;  %4322 = vmatprep.subr.mxu1 %v3900_v57  ;;  %v4033_v30 = vld [vmem:[#allocation2 + $0x620] sm:$0xff]  ;;  %v4035_v57 = vld [vmem:[#allocation2 + $0x630] sm:$0xff] }
 0x606   : > { %4252 = vmatpush1.msra.mxu0 %v3897_v19  ;;  %4323 = vmatpush1.msra.mxu1 %v3899_v43  ;;  %v4026_v19 = vld [vmem:[#allocation2 + $0x5e8] sm:$0xff]  ;;  %v4028_v43 = vld [vmem:[#allocation2 + $0x5f8] sm:$0xff] }
 0x607   : > { %4253 = vmatprep.subr.mxu0 %v3890_v2  ;;  %4324 = vmatprep.subr.mxu1 %v3892_v23  ;;  %v4025_v2 = vld [vmem:[#allocation2 + $0x5e0] sm:$0xff]  ;;  %v4027_v23 = vld [vmem:[#allocation2 + $0x5f0] sm:$0xff] }
 0x608   : > { %4254 = vmatpush1.msra.mxu0 %v3889_v39  ;;  %4325 = vmatpush1.msra.mxu1 %v3891_v56  ;;  %v4018_v39 = vld [vmem:[#allocation2 + $0x5a8] sm:$0xff]  ;;  %v4020_v56 = vld [vmem:[#allocation2 + $0x5b8] sm:$0xff] }
 0x609   : > { %4255 = vmatprep.subr.mxu0 %v3882_v13  ;;  %4326 = vmatprep.subr.mxu1 %v3884_v28  ;;  %v4017_v13 = vld [vmem:[#allocation2 + $0x5a0] sm:$0xff]  ;;  %v4019_v28 = vld [vmem:[#allocation2 + $0x5b0] sm:$0xff] }
 0x60a   : > { %4256 = vmatpush1.msra.mxu0 %v3881_v0  ;;  %4327 = vmatpush1.msra.mxu1 %v3883_v17  ;;  %v4010_v0 = vld [vmem:[#allocation2 + $0x568] sm:$0xff]  ;;  %v4012_v17 = vld [vmem:[#allocation2 + $0x578] sm:$0xff] }
 0x60b   : > { %4257 = vmatprep.subr.mxu0 %v3874_v60  ;;  %4328 = vmatprep.subr.mxu1 %v3876_v36  ;;  %v4009_v60 = vld [vmem:[#allocation2 + $0x560] sm:$0xff]  ;;  %v4011_v36 = vld [vmem:[#allocation2 + $0x570] sm:$0xff] }
 0x60c   : > { %4258 = vmatpush1.msra.mxu0 %v3873_v5  ;;  %4329 = vmatpush1.msra.mxu1 %v3875_v49  ;;  %v4002_v5 = vld [vmem:[#allocation2 + $0x528] sm:$0xff]  ;;  %v4004_v49 = vld [vmem:[#allocation2 + $0x538] sm:$0xff] }
 0x60d   : > { %4259 = vmatprep.subr.mxu0 %v3866_v48  ;;  %4330 = vmatprep.subr.mxu1 %v3868_v29  ;;  %v4001_v48 = vld [vmem:[#allocation2 + $0x520] sm:$0xff]  ;;  %v4003_v29 = vld [vmem:[#allocation2 + $0x530] sm:$0xff] }
 0x60e   : > { %4260 = vmatpush1.msra.mxu0 %v3865_v52  ;;  %4331 = vmatpush1.msra.mxu1 %v3867_v7  ;;  %v3994_v52 = vld [vmem:[#allocation2 + $0x4e8] sm:$0xff]  ;;  %v3996_v7 = vld [vmem:[#allocation2 + $0x4f8] sm:$0xff] }
 0x60f   : > { %4261 = vmatprep.subr.mxu0 %v3858_v21  ;;  %4332 = vmatprep.subr.mxu1 %v3860_v8  ;;  %v3993_v21 = vld [vmem:[#allocation2 + $0x4e0] sm:$0xff]  ;;  %v3995_v8 = vld [vmem:[#allocation2 + $0x4f0] sm:$0xff] }
 0x610   : > { %4262 = vmatpush1.msra.mxu0 %v3857_v34  ;;  %4333 = vmatpush1.msra.mxu1 %v3859_v1  ;;  %v3986_v34 = vld [vmem:[#allocation2 + $0x4a8] sm:$0xff]  ;;  %v3988_v1 = vld [vmem:[#allocation2 + $0x4b8] sm:$0xff] }
 0x611   : > { %4263 = vmatprep.subr.mxu0 %v3850_v12  ;;  %4334 = vmatprep.subr.mxu1 %v3852_v6  ;;  %v3985_v12 = vld [vmem:[#allocation2 + $0x4a0] sm:$0xff]  ;;  %v3987_v6 = vld [vmem:[#allocation2 + $0x4b0] sm:$0xff] }
 0x612   : > { %4264 = vmatpush1.msra.mxu0 %v3849_v32  ;;  %4335 = vmatpush1.msra.mxu1 %v3851_v11  ;;  %v3978_v32 = vld [vmem:[#allocation2 + $0x468] sm:$0xff]  ;;  %v3980_v11 = vld [vmem:[#allocation2 + $0x478] sm:$0xff] }
 0x613   : > { %4265 = vmatprep.subr.mxu0 %v3842_v62  ;;  %4336 = vmatprep.subr.mxu1 %v3844_v55  ;;  %v3977_v62 = vld [vmem:[#allocation2 + $0x460] sm:$0xff]  ;;  %v3979_v55 = vld [vmem:[#allocation2 + $0x470] sm:$0xff] }
 0x614   : > { %4266 = vmatpush1.msra.mxu0 %v3841_v42  ;;  %4337 = vmatpush1.msra.mxu1 %v3843_v53  ;;  %v3970_v42 = vld [vmem:[#allocation2 + $0x428] sm:$0xff]  ;;  %v3972_v53 = vld [vmem:[#allocation2 + $0x438] sm:$0xff] }
 0x615   : > { %4267 = vmatprep.subr.mxu0 %v4090_v18  ;;  %4338 = vmatprep.subr.mxu1 %v4092_v20  ;;  %v3969_v18 = vld [vmem:[#allocation2 + $0x420] sm:$0xff]  ;;  %v3971_v20 = vld [vmem:[#allocation2 + $0x430] sm:$0xff] }
 0x616   : > { %4268 = vmatpush2.msra.mxu0 %v4089_v61  ;;  %4339 = vmatpush2.msra.mxu1 %v4091_v40 }
 0x617   : > { %4269 = vmatprep.subr.mxu0 %v4082_v10  ;;  %4340 = vmatprep.subr.mxu1 %v4084_v58 }
 0x618   : > { %4270 = vmatpush2.msra.mxu0 %v4081_v37  ;;  %4341 = vmatpush2.msra.mxu1 %v4083_v31 }
 0x619   : > { %4271 = vmatprep.subr.mxu0 %v4074_v35  ;;  %4342 = vmatprep.subr.mxu1 %v4076_v41 }
 0x61a   : > { %4272 = vmatpush2.msra.mxu0 %v4073_v4  ;;  %4343 = vmatpush2.msra.mxu1 %v4075_v3 }
 0x61b   : > { %4273 = vmatprep.subr.mxu0 %v4066_v15  ;;  %4344 = vmatprep.subr.mxu1 %v4068_v54 }
 0x61c   : > { %4274 = vmatpush2.msra.mxu0 %v4065_v46  ;;  %4345 = vmatpush2.msra.mxu1 %v4067_v24 }
 0x61d   : > { %4275 = vmatprep.subr.mxu0 %v4058_v59  ;;  %4346 = vmatprep.subr.mxu1 %v4060_v51 }
 0x61e   : > { %4276 = vmatpush2.msra.mxu0 %v4057_v27  ;;  %4347 = vmatpush2.msra.mxu1 %v4059_v16 }
 0x61f   : > { %4277 = vmatprep.subr.mxu0 %v4050_v38  ;;  %4348 = vmatprep.subr.mxu1 %v4052_v44 }
 0x620   : > { %4278 = vmatpush2.msra.mxu0 %v4049_v9  ;;  %4349 = vmatpush2.msra.mxu1 %v4051_v22 }
 0x621   : > { %4279 = vmatprep.subr.mxu0 %v4042_v26  ;;  %4350 = vmatprep.subr.mxu1 %v4044_v45 }
 0x622   : > { %4280 = vmatpush2.msra.mxu0 %v4041_v50  ;;  %4351 = vmatpush2.msra.mxu1 %v4043_v33 }
 0x623   : > { %4281 = vmatprep.subr.mxu0 %v4034_v47  ;;  %4352 = vmatprep.subr.mxu1 %v4036_v25 }
 0x624   : > { %4282 = vmatpush2.msra.mxu0 %v4033_v30  ;;  %4353 = vmatpush2.msra.mxu1 %v4035_v57 }
 0x625   : > { %4283 = vmatprep.subr.mxu0 %v4026_v19  ;;  %4354 = vmatprep.subr.mxu1 %v4028_v43 }
 0x626   : > { %4284 = vmatpush2.msra.mxu0 %v4025_v2  ;;  %4355 = vmatpush2.msra.mxu1 %v4027_v23 }
 0x627   : > { %4285 = vmatprep.subr.mxu0 %v4018_v39  ;;  %4356 = vmatprep.subr.mxu1 %v4020_v56 }
 0x628   : > { %4286 = vmatpush2.msra.mxu0 %v4017_v13  ;;  %4357 = vmatpush2.msra.mxu1 %v4019_v28 }
 0x629   : > { %4287 = vmatprep.subr.mxu0 %v4010_v0  ;;  %4358 = vmatprep.subr.mxu1 %v4012_v17 }
 0x62a   : > { %4288 = vmatpush2.msra.mxu0 %v4009_v60  ;;  %4359 = vmatpush2.msra.mxu1 %v4011_v36 }
 0x62b   : > { %4289 = vmatprep.subr.mxu0 %v4002_v5  ;;  %4360 = vmatprep.subr.mxu1 %v4004_v49 }
 0x62c   : > { %4290 = vmatpush2.msra.mxu0 %v4001_v48  ;;  %4361 = vmatpush2.msra.mxu1 %v4003_v29 }
 0x62d   : > { %4291 = vmatprep.subr.mxu0 %v3994_v52  ;;  %4362 = vmatprep.subr.mxu1 %v3996_v7 }
 0x62e   : > { %4292 = vmatpush2.msra.mxu0 %v3993_v21  ;;  %4363 = vmatpush2.msra.mxu1 %v3995_v8 }
 0x62f   : > { %4293 = vmatprep.subr.mxu0 %v3986_v34  ;;  %4364 = vmatprep.subr.mxu1 %v3988_v1 }
 0x630   : > { %4294 = vmatpush2.msra.mxu0 %v3985_v12  ;;  %4365 = vmatpush2.msra.mxu1 %v3987_v6 }
 0x631   : > { %4295 = vmatprep.subr.mxu0 %v3978_v32  ;;  %4366 = vmatprep.subr.mxu1 %v3980_v11 }
 0x632   : > { %4296 = vmatpush2.msra.mxu0 %v3977_v62  ;;  %4367 = vmatpush2.msra.mxu1 %v3979_v55 }
 0x633   : > { %4297 = vmatprep.subr.mxu0 %v3970_v42  ;;  %4368 = vmatprep.subr.mxu1 %v3972_v53 }
 0x634   : > { %4298 = vmatpush2.msra.mxu0 %v3969_v18  ;;  %4369 = vmatpush2.msra.mxu1 %v3971_v20 }
 0x635   : > { %4300 = vmatmul.mubr.f32.vlgmr.msra.gmra.mxu0 %v6523_v63  ;;  %4371 = vmatmul.mubr.f32.vlgmr.msra.gmra.mxu1 %v6523_v63 }
 0x6b4   : > { %v4159_v61 = vpop.f32.mrf.mxu0  ;;  %v4230_v40 = vpop.f32.mrf.mxu1 }
 0x6b6   : > { %v4161_v10 = vpop.f32.mrf.mxu0  ;;  %v4232_v58 = vpop.f32.mrf.mxu1 }
 0x6b7   : > { %v4385_v37 = vcombine.low %v4159_v61, %v4161_v10  ;;  %v4386_v31 = vcombine.low %v4230_v40, %v4232_v58 }
 0x6b9   : > { %v4393_v35 = vrot.slane %v4385_v37, %v6511_v14  ;;  %v4400_v41 = vrot.slane %v4386_v31, %v6511_v14 }
 0x6bb   : > { %v4401_v4 = vcombine.low %v4393_v35, %v4400_v41 }
 0x6bd   : > { %4578 = vst [vmem:[%s6517_s26 + $0x10] sm:$0xff] %v4401_v4 }
 0x6f5   : > { %v4301_v3 = vpop.f32.mrf.mxu0  ;;  %v4372_v15 = vpop.f32.mrf.mxu1 }
 0x6f7   : > { %v4303_v54 = vpop.f32.mrf.mxu0  ;;  %v4374_v63 = vpop.f32.mrf.mxu1 }
 0x6f8   : > { %v4402_v46 = vcombine.low %v4301_v3, %v4303_v54  ;;  %v4403_v24 = vcombine.low %v4372_v15, %v4374_v63 }
 0x6fa   : > { %v4410_v59 = vrot.slane %v4402_v46, %v6511_v14  ;;  %v4417_v51 = vrot.slane %v4403_v24, %v6511_v14 }
 0x6fc   : > { %v4418_v27 = vcombine.low %v4410_v59, %v4417_v51 }
 0x6fe   : > { %4579 = vst [vmem:[%s6517_s26 + $0x18] sm:$0xff] %v4418_v27 }
 0x6ff   : > { %4823 = shalt.err (!%p4820_p0)
}
 0x700   : > { %s4824_s27 = scalar_lea.hbm %s6541_s30, 512  ;;  %s4828_s20 = scalar_lea.hbm %s6597_s10, 1024 }
 0x701   : > { %p4825_p1 = scmp.ne.s32.totalorder %s6541_s30, %s4824_s27  ;;  %p4829_p4 = scmp.lt.s32.totalorder %s6541_s30, %s6597_s10 }
 0x702   : > { %p4830_p7 = scmp.lt.s32.totalorder %s4828_s20, %s4824_s27 }
 0x703   : > { %p4826_p2 = pnand %p4825_p1, %p4986_p5 }
 0x704   : > { %p4831_p6 = por %p4830_p7, %p4829_p4 }
 0x705   : > { %p4827_p3 = pneg %p4826_p2 }
 0x707   : > { %p4832_p8 = pnand %p4831_p6, %p4827_p3 }
 0x709   : > { %4835 = shalt.err (!%p4832_p8)
}
 0x70a   : > { %s4892_s12 = smov 256   ;;  %s6670_s17 = smov 16  }
 0x70b   : > { %4681 = dma.vmem_to_hbm [thread:$0]  (%p4986_p5), %s6536_s29, 512, %s6541_s30, %s6546_s18, %s4892_s12, %s4892_s12, %s6670_s17  }
 0x70c PF: > { %p4693_p9 = scmp.ge.s32.totalorder %s4874_s16, 2  ;;  %s4453_s28 = sand.u32 1, %s4862_s13  }
 0x70d   : > { %p6671_p10 = scmp.ne.s32.totalorder %s6621_s24, 0  ;;  %s4454_s27 = scalar_lea.sflag [#allocation4], %s4453_s28 }
 0x70f   : > { %p4688_p11 = pnand %p4693_p9, %p6671_p10 }
 0x711   : > { %p4689_p12 = pneg %p4688_p11 }
 0x713   : > { %4857 = dma.done.wait (%p4689_p12), %s4454_s27, 512  }
 0x714   : > { %4859 = vsyncadd (%p4689_p12), %s4454_s27, 4294966784  ;;  %p21_p13 = scmp.ge.s32.totalorder %s4973_s19, 4   ;;  %s6672_s13 = smov %s4866_s14 }
 0x715   : > { %s6673_s14 = smov %s4870_s15  ;;  %s6674_s15 = smov %s4984_s22 }
 0x716   : > { %s6675_s16 = smov %s4973_s19  ;;  %23 = sbr.rel (!%p21_p13) target bundleno = 4 (0x4), region = 103 }
 0x71b   :  { %4459 = vsyncpa [#allocation3], 1 }
 0x71c   :  { %4461 = vsyncpa [#allocation3 + $0x1], 1 }
 0x71d   :  { %4462 = vsyncpa [#allocation4], 1 }
 0x71e   :  { %4464 = vsyncpa [#allocation4 + $0x1], 1 }

</bundles_post_ra>
